<compile_context>
chip_gen: v5e
topology: v5e:2x2
jax: 0.10.0
libtpu: 0.0.40
codegen_flags: <defaults>
</compile_context>

<pallas_src>
import jax
import jax.numpy as jnp
from jax import lax
from jax.experimental import pallas as pl
from jax.experimental.pallas import tpu as pltpu

# ---------------- small configuration consistent with the CCT forward ----------------
B = 2          # batch
CIN = 4        # n_input_channels
IMG = 16       # img_size
EMB = 32       # embedding_dim
K, STRIDE, PAD = 3, 2, 1            # tokenizer conv
PK, PS, PP = 3, 2, 1                # tokenizer max-pool
LAYERS = 2     # num_layers
HEADS = 4      # num_heads
MLP_RATIO = 2.0
HIDDEN = int(EMB * MLP_RATIO)
CLASSES = 10   # num_classes

H1 = (IMG + 2 * PAD - K) // STRIDE + 1     # conv output spatial (8)
H2 = (H1 + 2 * PP - PK) // PS + 1          # pool output spatial (4)
SEQ = H2 * H2                              # tokenizer sequence length (16)
HD = EMB // HEADS                          # head dim (8)

# static pooling windows (start, stop) per pooled index -- used for both spatial axes
_POOL_RANGES = tuple(
    (max(0, o * PS - PP), min(H1, o * PS - PP + PK)) for o in range(H2)
)


# ---------------------------------- Pallas kernel ------------------------------------
def _layer_norm(x, g, b, eps=1e-5):
    mu = jnp.mean(x, axis=-1, keepdims=True)
    xc = x - mu
    var = jnp.mean(xc * xc, axis=-1, keepdims=True)
    return xc * jax.lax.rsqrt(var + eps) * g + b


def cct_kernel(patches_ref, convw_ref, pos_ref,
               ln0g_ref, ln0b_ref, wqkv_ref, wproj_ref, bproj_ref,
               ln1g_ref, ln1b_ref, w1_ref, b1_ref, w2_ref, b2_ref,
               normg_ref, normb_ref, poolw_ref, poolb_ref,
               fcw_ref, fcb_ref,
               out_ref,
               wp_ref, xbuf_ref):
    f32 = jnp.float32

    # ---- Tokenizer: Conv2d(bias=False) as im2col matmul + ReLU ----
    conv = jnp.maximum(
        jnp.dot(patches_ref[...], convw_ref[...], preferred_element_type=f32), 0.0)
    conv = conv.reshape(B, H1, H1, EMB)                      # tile-aligned leading split

    # ---- Tokenizer: MaxPool2d(3, stride 2, pad 1), separable, static windows ----
    # (padding never contributes: post-ReLU values are >= 0 and every window has real data)
    for q, (c0, c1) in enumerate(_POOL_RANGES):              # width pool
        wp_ref[:, :, q:q + 1, :] = jnp.max(conv[:, :, c0:c1, :], axis=2, keepdims=True)
    wp = wp_ref[...]                                         # (B, H1, H2, EMB)
    for p, (r0, r1) in enumerate(_POOL_RANGES):              # height pool -> seq = p*H2 + q
        xbuf_ref[:, p * H2:(p + 1) * H2, :] = jnp.max(wp[:, r0:r1, :, :], axis=1)

    # ---- TransformerClassifier: whole batch folded into the matmul M dimension ----
    x = (xbuf_ref[...] + pos_ref[...]).reshape(B * SEQ, EMB)  # (32, 32)
    scale = float(HD) ** -0.5

    for l in range(LAYERS):                                   # static unroll over layers
        # --- pre-norm multi-head self attention (fused QKV) + residual ---
        h = _layer_norm(x, ln0g_ref[l], ln0b_ref[l])
        qkv = jnp.dot(h, wqkv_ref[l], preferred_element_type=f32)   # (B*SEQ, 3*EMB)

        def heads(base, _qkv=qkv):
            # gather per-head slabs -> (HEADS*B, SEQ, HD); group g = head*B + batch
            return jnp.concatenate(
                [_qkv[:, base + i * HD: base + (i + 1) * HD].reshape(B, SEQ, HD)
                 for i in range(HEADS)], axis=0)

        qg = heads(0) * scale
        kg = heads(EMB)
        vg = heads(2 * EMB)

        s = jnp.einsum('gqd,gkd->gqk', qg, kg, preferred_element_type=f32)  # (8,16,16)
        s = s - jnp.max(s, axis=-1, keepdims=True)
        e = jnp.exp(s)
        prob = e * pl.reciprocal(jnp.sum(e, axis=-1, keepdims=True), approx=True)
        og = jnp.einsum('gqk,gkd->gqd', prob, vg, preferred_element_type=f32)  # (8,16,8)

        # proj(concat(heads)) == sum_i head_i @ Wproj[rows of head i]  (avoids lane concat)
        wproj_l = wproj_ref[l]
        attn = bproj_ref[l]
        for i in range(HEADS):
            oh = og[i * B:(i + 1) * B].reshape(B * SEQ, HD)
            attn = attn + jnp.dot(oh, wproj_l[i * HD:(i + 1) * HD, :],
                                  preferred_element_type=f32)
        x = x + attn

        # --- post-attention LayerNorm, MLP, residual (CCT encoder-layer ordering) ---
        x = _layer_norm(x, ln1g_ref[l], ln1b_ref[l])
        ff = jnp.dot(x, w1_ref[l], preferred_element_type=f32) + b1_ref[l]
        # TODO(synk): PyTorch F.gelu default is exact erf-GELU; tanh approximation used (Mosaic-safe).
        ff = jax.nn.gelu(ff, approximate=True)
        ff = jnp.dot(ff, w2_ref[l], preferred_element_type=f32) + b2_ref[l]
        x = x + ff

    # ---- final LayerNorm + softmax sequence pooling + classifier head ----
    x = _layer_norm(x, normg_ref[...], normb_ref[...])                       # (B*SEQ, EMB)
    sp = jnp.dot(x, poolw_ref[...], preferred_element_type=f32) + poolb_ref[...]  # (B*SEQ, 1)
    sp = sp.reshape(B, SEQ, 1)
    sp = sp - jnp.max(sp, axis=1, keepdims=True)
    ep = jnp.exp(sp)
    wgt = ep * pl.reciprocal(jnp.sum(ep, axis=1, keepdims=True), approx=True)  # (B, SEQ, 1)
    wx = wgt.reshape(B * SEQ, 1) * x                                           # (B*SEQ, EMB)

    # per-batch segment sum as one tiny matmul with a constant selection matrix
    bi = lax.broadcasted_iota(jnp.int32, (B, B * SEQ), 0)
    ri = lax.broadcasted_iota(jnp.int32, (B, B * SEQ), 1)
    sel = ((ri >= bi * SEQ) & (ri < bi * SEQ + SEQ)).astype(f32)               # (B, B*SEQ)
    pooled = jnp.dot(sel, wx, preferred_element_type=f32)                      # (B, EMB)

    out_ref[...] = (jnp.dot(pooled, fcw_ref[...], preferred_element_type=f32)
                    + fcb_ref[...])


# ------------------------------------- glue ------------------------------------------
def _im2col(x_nhwc, k, stride, pad):
    """Extract kxk strided windows of the raw input (plain-JAX layout glue)."""
    b, h, w, c = x_nhwc.shape
    xp = jnp.pad(x_nhwc, ((0, 0), (pad, pad), (pad, pad), (0, 0)))
    ho = (h + 2 * pad - k) // stride + 1
    wo = (w + 2 * pad - k) // stride + 1
    cols = []
    for di in range(k):
        for dj in range(k):
            cols.append(xp[:, di:di + stride * ho:stride, dj:dj + stride * wo:stride, :])
    cols = jnp.stack(cols, axis=3)                    # (b, ho, wo, k*k, c)
    return cols.reshape(b * ho * wo, k * k * c)


def init_params(key):
    ks = jax.random.split(key, 16)

    def nrm(k_, shape, s=0.05):
        return jax.random.normal(k_, shape, jnp.float32) * s

    p = {}
    # conv weight stored as (K, K, Cin, Cout) to match im2col (di, dj, ci) ordering
    p["conv_w"] = nrm(ks[0], (K, K, CIN, EMB))
    p["pos"] = nrm(ks[1], (1, SEQ, EMB), 0.02)
    p["ln0_g"] = jnp.ones((LAYERS, 1, EMB), jnp.float32)
    p["ln0_b"] = jnp.zeros((LAYERS, 1, EMB), jnp.float32)
    # fused QKV weight: columns ordered [q | k | v], head-major inside each block
    p["wqkv"] = nrm(ks[2], (LAYERS, EMB, 3 * EMB))
    p["wproj"] = nrm(ks[5], (LAYERS, EMB, EMB))
    p["bproj"] = nrm(ks[6], (LAYERS, 1, EMB), 0.02)
    p["ln1_g"] = jnp.ones((LAYERS, 1, EMB), jnp.float32)
    p["ln1_b"] = jnp.zeros((LAYERS, 1, EMB), jnp.float32)
    p["w1"] = nrm(ks[7], (LAYERS, EMB, HIDDEN))
    p["b1"] = nrm(ks[8], (LAYERS, 1, HIDDEN), 0.02)
    p["w2"] = nrm(ks[9], (LAYERS, HIDDEN, EMB))
    p["b2"] = nrm(ks[10], (LAYERS, 1, EMB), 0.02)
    p["norm_g"] = jnp.ones((1, EMB), jnp.float32)
    p["norm_b"] = jnp.zeros((1, EMB), jnp.float32)
    p["pool_w"] = nrm(ks[11], (EMB, 1))
    p["pool_b"] = nrm(ks[12], (1, 1), 0.02)
    p["fc_w"] = nrm(ks[13], (EMB, CLASSES))
    p["fc_b"] = nrm(ks[14], (1, CLASSES), 0.02)
    return p


@jax.jit
def cct_forward(x_nchw, params):
    # NCHW (PyTorch convention) -> NHWC; im2col of the raw input only
    x = jnp.transpose(x_nchw, (0, 2, 3, 1)).astype(jnp.float32)
    patches = _im2col(x, K, STRIDE, PAD)                       # (B*H1*H1, K*K*CIN)
    w_mat = params["conv_w"].reshape(K * K * CIN, EMB)

    # single fused pallas_call: tokenizer + transformer classifier, no grid
    # (every operand fits in VMEM; default full-array blocks)
    logits = pl.pallas_call(
        cct_kernel,
        out_shape=jax.ShapeDtypeStruct((B, CLASSES), jnp.float32),
        scratch_shapes=[
            pltpu.VMEM((B, H1, H2, EMB), jnp.float32),   # width-pooled intermediate
            pltpu.VMEM((B, SEQ, EMB), jnp.float32),      # assembled tokens
        ],
    )(patches, w_mat,
      params["pos"],
      params["ln0_g"], params["ln0_b"],
      params["wqkv"], params["wproj"], params["bproj"],
      params["ln1_g"], params["ln1_b"],
      params["w1"], params["b1"], params["w2"], params["b2"],
      params["norm_g"], params["norm_b"],
      params["pool_w"], params["pool_b"],
      params["fc_w"], params["fc_b"])
    return logits


if __name__ == "__main__":
    key = jax.random.PRNGKey(0)
    kx, kp = jax.random.split(key)
    x = jax.random.normal(kx, (B, CIN, IMG, IMG), jnp.float32)   # NCHW like PyTorch
    params = init_params(kp)
    logits = cct_forward(x, params)
    jax.block_until_ready(logits)
    assert logits.shape == (B, CLASSES) and logits.dtype == jnp.float32
    assert bool(jnp.all(jnp.isfinite(logits)))
    print("KERNEL_OK")
</pallas_src>

<mosaic_0001>
module attributes {stable_mosaic.version = 11 : i64} {
  func.func @cct_kernel(%arg0: memref<128x36xf32, #tpu.memory_space<vmem>>, %arg1: memref<36x32xf32, #tpu.memory_space<vmem>>, %arg2: memref<1x16x32xf32, #tpu.memory_space<vmem>>, %arg3: memref<2x1x32xf32, #tpu.memory_space<vmem>>, %arg4: memref<2x1x32xf32, #tpu.memory_space<vmem>>, %arg5: memref<2x32x96xf32, #tpu.memory_space<vmem>>, %arg6: memref<2x32x32xf32, #tpu.memory_space<vmem>>, %arg7: memref<2x1x32xf32, #tpu.memory_space<vmem>>, %arg8: memref<2x1x32xf32, #tpu.memory_space<vmem>>, %arg9: memref<2x1x32xf32, #tpu.memory_space<vmem>>, %arg10: memref<2x32x64xf32, #tpu.memory_space<vmem>>, %arg11: memref<2x1x64xf32, #tpu.memory_space<vmem>>, %arg12: memref<2x64x32xf32, #tpu.memory_space<vmem>>, %arg13: memref<2x1x32xf32, #tpu.memory_space<vmem>>, %arg14: memref<1x32xf32, #tpu.memory_space<vmem>>, %arg15: memref<1x32xf32, #tpu.memory_space<vmem>>, %arg16: memref<32x1xf32, #tpu.memory_space<vmem>>, %arg17: memref<1x1xf32, #tpu.memory_space<vmem>>, %arg18: memref<32x10xf32, #tpu.memory_space<vmem>>, %arg19: memref<1x10xf32, #tpu.memory_space<vmem>>, %arg20: memref<2x10xf32, #tpu.memory_space<vmem>>, %arg21: memref<2x8x4x32xf32, #tpu.memory_space<vmem>>, %arg22: memref<2x16x32xf32, #tpu.memory_space<vmem>>) attributes {dimension_semantics = [], scalar_prefetch = 0 : i64, scratch_operands = 2 : i64, tpu.core_type = #tpu.core_type<tc>} {
    %c0 = arith.constant 0 : index
    %c0_0 = arith.constant 0 : index
    %0 = vector.load %arg0[%c0, %c0_0] : memref<128x36xf32, #tpu.memory_space<vmem>>, vector<128x36xf32>
    %c0_1 = arith.constant 0 : index
    %c0_2 = arith.constant 0 : index
    %1 = vector.load %arg1[%c0_1, %c0_2] : memref<36x32xf32, #tpu.memory_space<vmem>>, vector<36x32xf32>
    %cst = arith.constant dense<0.000000e+00> : vector<128x32xf32>
    %2 = tpu.matmul %0, %1, %cst {dimension_numbers = #tpu.dot_dimension_numbers<[1], [0], [0], [1], [0, 0, 1, 1], [], []>} : vector<128x36xf32>, vector<36x32xf32>, vector<128x32xf32> -> vector<128x32xf32>
    %cst_3 = arith.constant 0.000000e+00 : f32
    %3 = vector.broadcast %cst_3 : f32 to vector<128x32xf32>
    %4 = arith.maximumf %2, %3 : vector<128x32xf32>
    %5 = vector.shape_cast %4 : vector<128x32xf32> to vector<2x8x8x32xf32>
    %6 = vector.extract_strided_slice %5 {offsets = [0, 0, 0, 0], sizes = [2, 8, 2, 32], strides = [1, 1, 1, 1]} : vector<2x8x8x32xf32> to vector<2x8x2x32xf32>
    %cst_4 = arith.constant dense<0xFF800000> : vector<2x8x32xf32>
    %7 = vector.multi_reduction <maximumf>, %6, %cst_4 [2] : vector<2x8x2x32xf32> to vector<2x8x32xf32>
    %8 = vector.shape_cast %7 : vector<2x8x32xf32> to vector<2x8x1x32xf32>
    %c0_5 = arith.constant 0 : index
    %c0_6 = arith.constant 0 : index
    %c0_7 = arith.constant 0 : index
    %c0_8 = arith.constant 0 : index
    %9 = vector.load %arg21[%c0_5, %c0_6, %c0_7, %c0_8] : memref<2x8x4x32xf32, #tpu.memory_space<vmem>>, vector<2x8x1x32xf32>
    tpu.vector_store %arg21[%c0_5, %c0_6, %c0_7, %c0_8], %8 {strides = array<i32>} : memref<2x8x4x32xf32, #tpu.memory_space<vmem>>, vector<2x8x1x32xf32>,
    %10 = vector.extract_strided_slice %5 {offsets = [0, 0, 1, 0], sizes = [2, 8, 3, 32], strides = [1, 1, 1, 1]} : vector<2x8x8x32xf32> to vector<2x8x3x32xf32>
    %cst_9 = arith.constant dense<0xFF800000> : vector<2x8x32xf32>
    %11 = vector.multi_reduction <maximumf>, %10, %cst_9 [2] : vector<2x8x3x32xf32> to vector<2x8x32xf32>
    %12 = vector.shape_cast %11 : vector<2x8x32xf32> to vector<2x8x1x32xf32>
    %c0_10 = arith.constant 0 : index
    %c0_11 = arith.constant 0 : index
    %c1 = arith.constant 1 : index
    %c0_12 = arith.constant 0 : index
    %13 = vector.load %arg21[%c0_10, %c0_11, %c1, %c0_12] : memref<2x8x4x32xf32, #tpu.memory_space<vmem>>, vector<2x8x1x32xf32>
    tpu.vector_store %arg21[%c0_10, %c0_11, %c1, %c0_12], %12 {strides = array<i32>} : memref<2x8x4x32xf32, #tpu.memory_space<vmem>>, vector<2x8x1x32xf32>,
    %14 = vector.extract_strided_slice %5 {offsets = [0, 0, 3, 0], sizes = [2, 8, 3, 32], strides = [1, 1, 1, 1]} : vector<2x8x8x32xf32> to vector<2x8x3x32xf32>
    %cst_13 = arith.constant dense<0xFF800000> : vector<2x8x32xf32>
    %15 = vector.multi_reduction <maximumf>, %14, %cst_13 [2] : vector<2x8x3x32xf32> to vector<2x8x32xf32>
    %16 = vector.shape_cast %15 : vector<2x8x32xf32> to vector<2x8x1x32xf32>
    %c0_14 = arith.constant 0 : index
    %c0_15 = arith.constant 0 : index
    %c2 = arith.constant 2 : index
    %c0_16 = arith.constant 0 : index
    %17 = vector.load %arg21[%c0_14, %c0_15, %c2, %c0_16] : memref<2x8x4x32xf32, #tpu.memory_space<vmem>>, vector<2x8x1x32xf32>
    tpu.vector_store %arg21[%c0_14, %c0_15, %c2, %c0_16], %16 {strides = array<i32>} : memref<2x8x4x32xf32, #tpu.memory_space<vmem>>, vector<2x8x1x32xf32>,
    %18 = vector.extract_strided_slice %5 {offsets = [0, 0, 5, 0], sizes = [2, 8, 3, 32], strides = [1, 1, 1, 1]} : vector<2x8x8x32xf32> to vector<2x8x3x32xf32>
    %cst_17 = arith.constant dense<0xFF800000> : vector<2x8x32xf32>
    %19 = vector.multi_reduction <maximumf>, %18, %cst_17 [2] : vector<2x8x3x32xf32> to vector<2x8x32xf32>
    %20 = vector.shape_cast %19 : vector<2x8x32xf32> to vector<2x8x1x32xf32>
    %c0_18 = arith.constant 0 : index
    %c0_19 = arith.constant 0 : index
    %c3 = arith.constant 3 : index
    %c0_20 = arith.constant 0 : index
    %21 = vector.load %arg21[%c0_18, %c0_19, %c3, %c0_20] : memref<2x8x4x32xf32, #tpu.memory_space<vmem>>, vector<2x8x1x32xf32>
    tpu.vector_store %arg21[%c0_18, %c0_19, %c3, %c0_20], %20 {strides = array<i32>} : memref<2x8x4x32xf32, #tpu.memory_space<vmem>>, vector<2x8x1x32xf32>,
    %c0_21 = arith.constant 0 : index
    %c0_22 = arith.constant 0 : index
    %c0_23 = arith.constant 0 : index
    %c0_24 = arith.constant 0 : index
    %22 = vector.load %arg21[%c0_21, %c0_22, %c0_23, %c0_24] : memref<2x8x4x32xf32, #tpu.memory_space<vmem>>, vector<2x8x4x32xf32>
    %23 = vector.extract_strided_slice %22 {offsets = [0, 0, 0, 0], sizes = [2, 2, 4, 32], strides = [1, 1, 1, 1]} : vector<2x8x4x32xf32> to vector<2x2x4x32xf32>
    %cst_25 = arith.constant dense<0xFF800000> : vector<2x4x32xf32>
    %24 = vector.multi_reduction <maximumf>, %23, %cst_25 [1] : vector<2x2x4x32xf32> to vector<2x4x32xf32>
    %c0_26 = arith.constant 0 : index
    %c0_27 = arith.constant 0 : index
    %c0_28 = arith.constant 0 : index
    %25 = vector.load %arg22[%c0_26, %c0_27, %c0_28] : memref<2x16x32xf32, #tpu.memory_space<vmem>>, vector<2x4x32xf32>
    tpu.vector_store %arg22[%c0_26, %c0_27, %c0_28], %24 {strides = array<i32>} : memref<2x16x32xf32, #tpu.memory_space<vmem>>, vector<2x4x32xf32>,
    %26 = vector.extract_strided_slice %22 {offsets = [0, 1, 0, 0], sizes = [2, 3, 4, 32], strides = [1, 1, 1, 1]} : vector<2x8x4x32xf32> to vector<2x3x4x32xf32>
    %cst_29 = arith.constant dense<0xFF800000> : vector<2x4x32xf32>
    %27 = vector.multi_reduction <maximumf>, %26, %cst_29 [1] : vector<2x3x4x32xf32> to vector<2x4x32xf32>
    %c0_30 = arith.constant 0 : index
    %c4 = arith.constant 4 : index
    %c0_31 = arith.constant 0 : index
    %28 = vector.load %arg22[%c0_30, %c4, %c0_31] : memref<2x16x32xf32, #tpu.memory_space<vmem>>, vector<2x4x32xf32>
    tpu.vector_store %arg22[%c0_30, %c4, %c0_31], %27 {strides = array<i32>} : memref<2x16x32xf32, #tpu.memory_space<vmem>>, vector<2x4x32xf32>,
    %29 = vector.extract_strided_slice %22 {offsets = [0, 3, 0, 0], sizes = [2, 3, 4, 32], strides = [1, 1, 1, 1]} : vector<2x8x4x32xf32> to vector<2x3x4x32xf32>
    %cst_32 = arith.constant dense<0xFF800000> : vector<2x4x32xf32>
    %30 = vector.multi_reduction <maximumf>, %29, %cst_32 [1] : vector<2x3x4x32xf32> to vector<2x4x32xf32>
    %c0_33 = arith.constant 0 : index
    %c8 = arith.constant 8 : index
    %c0_34 = arith.constant 0 : index
    %31 = vector.load %arg22[%c0_33, %c8, %c0_34] : memref<2x16x32xf32, #tpu.memory_space<vmem>>, vector<2x4x32xf32>
    tpu.vector_store %arg22[%c0_33, %c8, %c0_34], %30 {strides = array<i32>} : memref<2x16x32xf32, #tpu.memory_space<vmem>>, vector<2x4x32xf32>,
    %32 = vector.extract_strided_slice %22 {offsets = [0, 5, 0, 0], sizes = [2, 3, 4, 32], strides = [1, 1, 1, 1]} : vector<2x8x4x32xf32> to vector<2x3x4x32xf32>
    %cst_35 = arith.constant dense<0xFF800000> : vector<2x4x32xf32>
    %33 = vector.multi_reduction <maximumf>, %32, %cst_35 [1] : vector<2x3x4x32xf32> to vector<2x4x32xf32>
    %c0_36 = arith.constant 0 : index
    %c12 = arith.constant 12 : index
    %c0_37 = arith.constant 0 : index
    %34 = vector.load %arg22[%c0_36, %c12, %c0_37] : memref<2x16x32xf32, #tpu.memory_space<vmem>>, vector<2x4x32xf32>
    tpu.vector_store %arg22[%c0_36, %c12, %c0_37], %33 {strides = array<i32>} : memref<2x16x32xf32, #tpu.memory_space<vmem>>, vector<2x4x32xf32>,
    %c0_38 = arith.constant 0 : index
    %c0_39 = arith.constant 0 : index
    %c0_40 = arith.constant 0 : index
    %35 = vector.load %arg22[%c0_38, %c0_39, %c0_40] : memref<2x16x32xf32, #tpu.memory_space<vmem>>, vector<2x16x32xf32>
    %c0_41 = arith.constant 0 : index
    %c0_42 = arith.constant 0 : index
    %c0_43 = arith.constant 0 : index
    %36 = vector.load %arg2[%c0_41, %c0_42, %c0_43] : memref<1x16x32xf32, #tpu.memory_space<vmem>>, vector<1x16x32xf32>
    %37 = vector.broadcast %36 : vector<1x16x32xf32> to vector<2x16x32xf32>
    %38 = arith.addf %35, %37 : vector<2x16x32xf32>
    %39 = vector.shape_cast %38 : vector<2x16x32xf32> to vector<32x32xf32>
    %c0_44 = arith.constant 0 : index
    %c0_45 = arith.constant 0 : index
    %c0_46 = arith.constant 0 : index
    %40 = vector.load %arg3[%c0_44, %c0_45, %c0_46] : memref<2x1x32xf32, #tpu.memory_space<vmem>>, vector<1x1x32xf32>
    %41 = vector.shape_cast %40 : vector<1x1x32xf32> to vector<1x32xf32>
    %c0_47 = arith.constant 0 : index
    %c0_48 = arith.constant 0 : index
    %c0_49 = arith.constant 0 : index
    %42 = vector.load %arg4[%c0_47, %c0_48, %c0_49] : memref<2x1x32xf32, #tpu.memory_space<vmem>>, vector<1x1x32xf32>
    %43 = vector.shape_cast %42 : vector<1x1x32xf32> to vector<1x32xf32>
    %cst_50 = arith.constant dense<0.000000e+00> : vector<32xf32>
    %44 = vector.multi_reduction <add>, %39, %cst_50 [1] : vector<32x32xf32> to vector<32xf32>
    %45 = vector.shape_cast %44 : vector<32xf32> to vector<32x1xf32>
    %cst_51 = arith.constant 3.200000e+01 : f32
    %46 = vector.broadcast %cst_51 : f32 to vector<32x1xf32>
    %47 = arith.divf %45, %46 : vector<32x1xf32>
    %48 = vector.broadcast %47 : vector<32x1xf32> to vector<32x32xf32>
    %49 = arith.subf %39, %48 : vector<32x32xf32>
    %50 = arith.mulf %49, %49 : vector<32x32xf32>
    %cst_52 = arith.constant dense<0.000000e+00> : vector<32xf32>
    %51 = vector.multi_reduction <add>, %50, %cst_52 [1] : vector<32x32xf32> to vector<32xf32>
    %52 = vector.shape_cast %51 : vector<32xf32> to vector<32x1xf32>
    %cst_53 = arith.constant 3.200000e+01 : f32
    %53 = vector.broadcast %cst_53 : f32 to vector<32x1xf32>
    %54 = arith.divf %52, %53 : vector<32x1xf32>
    %cst_54 = arith.constant 9.99999974E-6 : f32
    %55 = vector.broadcast %cst_54 : f32 to vector<32x1xf32>
    %56 = arith.addf %54, %55 : vector<32x1xf32>
    %57 = math.rsqrt %56 : vector<32x1xf32>
    %58 = vector.broadcast %57 : vector<32x1xf32> to vector<32x32xf32>
    %59 = arith.mulf %49, %58 : vector<32x32xf32>
    %60 = vector.broadcast %41 : vector<1x32xf32> to vector<32x32xf32>
    %61 = arith.mulf %59, %60 : vector<32x32xf32>
    %62 = vector.broadcast %43 : vector<1x32xf32> to vector<32x32xf32>
    %63 = arith.addf %61, %62 : vector<32x32xf32>
    %c0_55 = arith.constant 0 : index
    %c0_56 = arith.constant 0 : index
    %c0_57 = arith.constant 0 : index
    %64 = vector.load %arg5[%c0_55, %c0_56, %c0_57] : memref<2x32x96xf32, #tpu.memory_space<vmem>>, vector<1x32x96xf32>
    %65 = vector.shape_cast %64 : vector<1x32x96xf32> to vector<32x96xf32>
    %cst_58 = arith.constant dense<0.000000e+00> : vector<32x96xf32>
    %66 = tpu.matmul %63, %65, %cst_58 {dimension_numbers = #tpu.dot_dimension_numbers<[1], [0], [0], [1], [0, 0, 1, 1], [], []>} : vector<32x32xf32>, vector<32x96xf32>, vector<32x96xf32> -> vector<32x96xf32>
    %67 = vector.extract_strided_slice %66 {offsets = [0, 0], sizes = [32, 8], strides = [1, 1]} : vector<32x96xf32> to vector<32x8xf32>
    %68 = vector.shape_cast %67 : vector<32x8xf32> to vector<2x16x8xf32>
    %69 = vector.extract_strided_slice %66 {offsets = [0, 8], sizes = [32, 8], strides = [1, 1]} : vector<32x96xf32> to vector<32x8xf32>
    %70 = vector.shape_cast %69 : vector<32x8xf32> to vector<2x16x8xf32>
    %71 = vector.extract_strided_slice %66 {offsets = [0, 16], sizes = [32, 8], strides = [1, 1]} : vector<32x96xf32> to vector<32x8xf32>
    %72 = vector.shape_cast %71 : vector<32x8xf32> to vector<2x16x8xf32>
    %73 = vector.extract_strided_slice %66 {offsets = [0, 24], sizes = [32, 8], strides = [1, 1]} : vector<32x96xf32> to vector<32x8xf32>
    %74 = vector.shape_cast %73 : vector<32x8xf32> to vector<2x16x8xf32>
    %75 = tpu.concatenate %68, %70, %72, %74 in 0 : vector<2x16x8xf32>, vector<2x16x8xf32>, vector<2x16x8xf32>, vector<2x16x8xf32> -> vector<8x16x8xf32>
    %cst_59 = arith.constant 0.353553385 : f32
    %76 = vector.broadcast %cst_59 : f32 to vector<8x16x8xf32>
    %77 = arith.mulf %75, %76 : vector<8x16x8xf32>
    %78 = vector.extract_strided_slice %66 {offsets = [0, 32], sizes = [32, 8], strides = [1, 1]} : vector<32x96xf32> to vector<32x8xf32>
    %79 = vector.shape_cast %78 : vector<32x8xf32> to vector<2x16x8xf32>
    %80 = vector.extract_strided_slice %66 {offsets = [0, 40], sizes = [32, 8], strides = [1, 1]} : vector<32x96xf32> to vector<32x8xf32>
    %81 = vector.shape_cast %80 : vector<32x8xf32> to vector<2x16x8xf32>
    %82 = vector.extract_strided_slice %66 {offsets = [0, 48], sizes = [32, 8], strides = [1, 1]} : vector<32x96xf32> to vector<32x8xf32>
    %83 = vector.shape_cast %82 : vector<32x8xf32> to vector<2x16x8xf32>
    %84 = vector.extract_strided_slice %66 {offsets = [0, 56], sizes = [32, 8], strides = [1, 1]} : vector<32x96xf32> to vector<32x8xf32>
    %85 = vector.shape_cast %84 : vector<32x8xf32> to vector<2x16x8xf32>
    %86 = tpu.concatenate %79, %81, %83, %85 in 0 : vector<2x16x8xf32>, vector<2x16x8xf32>, vector<2x16x8xf32>, vector<2x16x8xf32> -> vector<8x16x8xf32>
    %87 = vector.extract_strided_slice %66 {offsets = [0, 64], sizes = [32, 8], strides = [1, 1]} : vector<32x96xf32> to vector<32x8xf32>
    %88 = vector.shape_cast %87 : vector<32x8xf32> to vector<2x16x8xf32>
    %89 = vector.extract_strided_slice %66 {offsets = [0, 72], sizes = [32, 8], strides = [1, 1]} : vector<32x96xf32> to vector<32x8xf32>
    %90 = vector.shape_cast %89 : vector<32x8xf32> to vector<2x16x8xf32>
    %91 = vector.extract_strided_slice %66 {offsets = [0, 80], sizes = [32, 8], strides = [1, 1]} : vector<32x96xf32> to vector<32x8xf32>
    %92 = vector.shape_cast %91 : vector<32x8xf32> to vector<2x16x8xf32>
    %93 = vector.extract_strided_slice %66 {offsets = [0, 88], sizes = [32, 8], strides = [1, 1]} : vector<32x96xf32> to vector<32x8xf32>
    %94 = vector.shape_cast %93 : vector<32x8xf32> to vector<2x16x8xf32>
    %95 = tpu.concatenate %88, %90, %92, %94 in 0 : vector<2x16x8xf32>, vector<2x16x8xf32>, vector<2x16x8xf32>, vector<2x16x8xf32> -> vector<8x16x8xf32>
    "tpu.trace_start"() <{level = 10 : i32, message = "gqd,gkd->gqk"}> : () -> ()
    %cst_60 = arith.constant dense<0.000000e+00> : vector<8x16x16xf32>
    %96 = tpu.matmul %77, %86, %cst_60 {dimension_numbers = #tpu.dot_dimension_numbers<[2], [2], [1], [1], [0, 0, 0, 1, 1, 1], [0], [0]>} : vector<8x16x8xf32>, vector<8x16x8xf32>, vector<8x16x16xf32> -> vector<8x16x16xf32>
    "tpu.trace_stop"() : () -> ()
    %cst_61 = arith.constant dense<0xFF800000> : vector<8x16xf32>
    %97 = vector.multi_reduction <maximumf>, %96, %cst_61 [2] : vector<8x16x16xf32> to vector<8x16xf32>
    %98 = vector.shape_cast %97 : vector<8x16xf32> to vector<8x16x1xf32>
    %99 = vector.broadcast %98 : vector<8x16x1xf32> to vector<8x16x16xf32>
    %100 = arith.subf %96, %99 : vector<8x16x16xf32>
    %101 = math.exp %100 : vector<8x16x16xf32>
    %cst_62 = arith.constant dense<0.000000e+00> : vector<8x16xf32>
    %102 = vector.multi_reduction <add>, %101, %cst_62 [2] : vector<8x16x16xf32> to vector<8x16xf32>
    %103 = vector.shape_cast %102 : vector<8x16xf32> to vector<8x16x1xf32>
    %104 = tpu.reciprocal %103 {approx = true} : vector<8x16x1xf32> -> vector<8x16x1xf32>
    %105 = vector.broadcast %104 : vector<8x16x1xf32> to vector<8x16x16xf32>
    %106 = arith.mulf %101, %105 : vector<8x16x16xf32>
    "tpu.trace_start"() <{level = 10 : i32, message = "gqk,gkd->gqd"}> : () -> ()
    %cst_63 = arith.constant dense<0.000000e+00> : vector<8x16x8xf32>
    %107 = tpu.matmul %106, %95, %cst_63 {dimension_numbers = #tpu.dot_dimension_numbers<[2], [1], [1], [2], [0, 0, 0, 1, 1, 2], [0], [0]>} : vector<8x16x16xf32>, vector<8x16x8xf32>, vector<8x16x8xf32> -> vector<8x16x8xf32>
    "tpu.trace_stop"() : () -> ()
    %c0_64 = arith.constant 0 : index
    %c0_65 = arith.constant 0 : index
    %c0_66 = arith.constant 0 : index
    %108 = vector.load %arg6[%c0_64, %c0_65, %c0_66] : memref<2x32x32xf32, #tpu.memory_space<vmem>>, vector<1x32x32xf32>
    %109 = vector.shape_cast %108 : vector<1x32x32xf32> to vector<32x32xf32>
    %c0_67 = arith.constant 0 : index
    %c0_68 = arith.constant 0 : index
    %c0_69 = arith.constant 0 : index
    %110 = vector.load %arg7[%c0_67, %c0_68, %c0_69] : memref<2x1x32xf32, #tpu.memory_space<vmem>>, vector<1x1x32xf32>
    %111 = vector.shape_cast %110 : vector<1x1x32xf32> to vector<1x32xf32>
    %112 = vector.extract_strided_slice %107 {offsets = [0, 0, 0], sizes = [2, 16, 8], strides = [1, 1, 1]} : vector<8x16x8xf32> to vector<2x16x8xf32>
    %113 = vector.shape_cast %112 : vector<2x16x8xf32> to vector<32x8xf32>
    %114 = vector.extract_strided_slice %109 {offsets = [0, 0], sizes = [8, 32], strides = [1, 1]} : vector<32x32xf32> to vector<8x32xf32>
    %cst_70 = arith.constant dense<0.000000e+00> : vector<32x32xf32>
    %115 = tpu.matmul %113, %114, %cst_70 {dimension_numbers = #tpu.dot_dimension_numbers<[1], [0], [0], [1], [0, 0, 1, 1], [], []>} : vector<32x8xf32>, vector<8x32xf32>, vector<32x32xf32> -> vector<32x32xf32>
    %116 = vector.broadcast %111 : vector<1x32xf32> to vector<32x32xf32>
    %117 = arith.addf %116, %115 : vector<32x32xf32>
    %118 = vector.extract_strided_slice %107 {offsets = [2, 0, 0], sizes = [2, 16, 8], strides = [1, 1, 1]} : vector<8x16x8xf32> to vector<2x16x8xf32>
    %119 = vector.shape_cast %118 : vector<2x16x8xf32> to vector<32x8xf32>
    %120 = vector.extract_strided_slice %109 {offsets = [8, 0], sizes = [8, 32], strides = [1, 1]} : vector<32x32xf32> to vector<8x32xf32>
    %cst_71 = arith.constant dense<0.000000e+00> : vector<32x32xf32>
    %121 = tpu.matmul %119, %120, %cst_71 {dimension_numbers = #tpu.dot_dimension_numbers<[1], [0], [0], [1], [0, 0, 1, 1], [], []>} : vector<32x8xf32>, vector<8x32xf32>, vector<32x32xf32> -> vector<32x32xf32>
    %122 = arith.addf %117, %121 : vector<32x32xf32>
    %123 = vector.extract_strided_slice %107 {offsets = [4, 0, 0], sizes = [2, 16, 8], strides = [1, 1, 1]} : vector<8x16x8xf32> to vector<2x16x8xf32>
    %124 = vector.shape_cast %123 : vector<2x16x8xf32> to vector<32x8xf32>
    %125 = vector.extract_strided_slice %109 {offsets = [16, 0], sizes = [8, 32], strides = [1, 1]} : vector<32x32xf32> to vector<8x32xf32>
    %cst_72 = arith.constant dense<0.000000e+00> : vector<32x32xf32>
    %126 = tpu.matmul %124, %125, %cst_72 {dimension_numbers = #tpu.dot_dimension_numbers<[1], [0], [0], [1], [0, 0, 1, 1], [], []>} : vector<32x8xf32>, vector<8x32xf32>, vector<32x32xf32> -> vector<32x32xf32>
    %127 = arith.addf %122, %126 : vector<32x32xf32>
    %128 = vector.extract_strided_slice %107 {offsets = [6, 0, 0], sizes = [2, 16, 8], strides = [1, 1, 1]} : vector<8x16x8xf32> to vector<2x16x8xf32>
    %129 = vector.shape_cast %128 : vector<2x16x8xf32> to vector<32x8xf32>
    %130 = vector.extract_strided_slice %109 {offsets = [24, 0], sizes = [8, 32], strides = [1, 1]} : vector<32x32xf32> to vector<8x32xf32>
    %cst_73 = arith.constant dense<0.000000e+00> : vector<32x32xf32>
    %131 = tpu.matmul %129, %130, %cst_73 {dimension_numbers = #tpu.dot_dimension_numbers<[1], [0], [0], [1], [0, 0, 1, 1], [], []>} : vector<32x8xf32>, vector<8x32xf32>, vector<32x32xf32> -> vector<32x32xf32>
    %132 = arith.addf %127, %131 : vector<32x32xf32>
    %133 = arith.addf %39, %132 : vector<32x32xf32>
    %c0_74 = arith.constant 0 : index
    %c0_75 = arith.constant 0 : index
    %c0_76 = arith.constant 0 : index
    %134 = vector.load %arg8[%c0_74, %c0_75, %c0_76] : memref<2x1x32xf32, #tpu.memory_space<vmem>>, vector<1x1x32xf32>
    %135 = vector.shape_cast %134 : vector<1x1x32xf32> to vector<1x32xf32>
    %c0_77 = arith.constant 0 : index
    %c0_78 = arith.constant 0 : index
    %c0_79 = arith.constant 0 : index
    %136 = vector.load %arg9[%c0_77, %c0_78, %c0_79] : memref<2x1x32xf32, #tpu.memory_space<vmem>>, vector<1x1x32xf32>
    %137 = vector.shape_cast %136 : vector<1x1x32xf32> to vector<1x32xf32>
    %cst_80 = arith.constant dense<0.000000e+00> : vector<32xf32>
    %138 = vector.multi_reduction <add>, %133, %cst_80 [1] : vector<32x32xf32> to vector<32xf32>
    %139 = vector.shape_cast %138 : vector<32xf32> to vector<32x1xf32>
    %cst_81 = arith.constant 3.200000e+01 : f32
    %140 = vector.broadcast %cst_81 : f32 to vector<32x1xf32>
    %141 = arith.divf %139, %140 : vector<32x1xf32>
    %142 = vector.broadcast %141 : vector<32x1xf32> to vector<32x32xf32>
    %143 = arith.subf %133, %142 : vector<32x32xf32>
    %144 = arith.mulf %143, %143 : vector<32x32xf32>
    %cst_82 = arith.constant dense<0.000000e+00> : vector<32xf32>
    %145 = vector.multi_reduction <add>, %144, %cst_82 [1] : vector<32x32xf32> to vector<32xf32>
    %146 = vector.shape_cast %145 : vector<32xf32> to vector<32x1xf32>
    %cst_83 = arith.constant 3.200000e+01 : f32
    %147 = vector.broadcast %cst_83 : f32 to vector<32x1xf32>
    %148 = arith.divf %146, %147 : vector<32x1xf32>
    %cst_84 = arith.constant 9.99999974E-6 : f32
    %149 = vector.broadcast %cst_84 : f32 to vector<32x1xf32>
    %150 = arith.addf %148, %149 : vector<32x1xf32>
    %151 = math.rsqrt %150 : vector<32x1xf32>
    %152 = vector.broadcast %151 : vector<32x1xf32> to vector<32x32xf32>
    %153 = arith.mulf %143, %152 : vector<32x32xf32>
    %154 = vector.broadcast %135 : vector<1x32xf32> to vector<32x32xf32>
    %155 = arith.mulf %153, %154 : vector<32x32xf32>
    %156 = vector.broadcast %137 : vector<1x32xf32> to vector<32x32xf32>
    %157 = arith.addf %155, %156 : vector<32x32xf32>
    %c0_85 = arith.constant 0 : index
    %c0_86 = arith.constant 0 : index
    %c0_87 = arith.constant 0 : index
    %158 = vector.load %arg10[%c0_85, %c0_86, %c0_87] : memref<2x32x64xf32, #tpu.memory_space<vmem>>, vector<1x32x64xf32>
    %159 = vector.shape_cast %158 : vector<1x32x64xf32> to vector<32x64xf32>
    %cst_88 = arith.constant dense<0.000000e+00> : vector<32x64xf32>
    %160 = tpu.matmul %157, %159, %cst_88 {dimension_numbers = #tpu.dot_dimension_numbers<[1], [0], [0], [1], [0, 0, 1, 1], [], []>} : vector<32x32xf32>, vector<32x64xf32>, vector<32x64xf32> -> vector<32x64xf32>
    %c0_89 = arith.constant 0 : index
    %c0_90 = arith.constant 0 : index
    %c0_91 = arith.constant 0 : index
    %161 = vector.load %arg11[%c0_89, %c0_90, %c0_91] : memref<2x1x64xf32, #tpu.memory_space<vmem>>, vector<1x1x64xf32>
    %162 = vector.shape_cast %161 : vector<1x1x64xf32> to vector<1x64xf32>
    %163 = vector.broadcast %162 : vector<1x64xf32> to vector<32x64xf32>
    %164 = arith.addf %160, %163 : vector<32x64xf32>
    %165 = arith.mulf %164, %164 : vector<32x64xf32>
    %166 = arith.mulf %164, %165 : vector<32x64xf32>
    %cst_92 = arith.constant 4.471500e-02 : f32
    %167 = vector.broadcast %cst_92 : f32 to vector<32x64xf32>
    %168 = arith.mulf %167, %166 : vector<32x64xf32>
    %169 = arith.addf %164, %168 : vector<32x64xf32>
    %cst_93 = arith.constant 0.797884583 : f32
    %170 = vector.broadcast %cst_93 : f32 to vector<32x64xf32>
    %171 = arith.mulf %170, %169 : vector<32x64xf32>
    %172 = math.tanh %171 : vector<32x64xf32>
    %cst_94 = arith.constant 1.000000e+00 : f32
    %173 = vector.broadcast %cst_94 : f32 to vector<32x64xf32>
    %174 = arith.addf %173, %172 : vector<32x64xf32>
    %cst_95 = arith.constant 5.000000e-01 : f32
    %175 = vector.broadcast %cst_95 : f32 to vector<32x64xf32>
    %176 = arith.mulf %175, %174 : vector<32x64xf32>
    %177 = arith.mulf %164, %176 : vector<32x64xf32>
    %c0_96 = arith.constant 0 : index
    %c0_97 = arith.constant 0 : index
    %c0_98 = arith.constant 0 : index
    %178 = vector.load %arg12[%c0_96, %c0_97, %c0_98] : memref<2x64x32xf32, #tpu.memory_space<vmem>>, vector<1x64x32xf32>
    %179 = vector.shape_cast %178 : vector<1x64x32xf32> to vector<64x32xf32>
    %cst_99 = arith.constant dense<0.000000e+00> : vector<32x32xf32>
    %180 = tpu.matmul %177, %179, %cst_99 {dimension_numbers = #tpu.dot_dimension_numbers<[1], [0], [0], [1], [0, 0, 1, 1], [], []>} : vector<32x64xf32>, vector<64x32xf32>, vector<32x32xf32> -> vector<32x32xf32>
    %c0_100 = arith.constant 0 : index
    %c0_101 = arith.constant 0 : index
    %c0_102 = arith.constant 0 : index
    %181 = vector.load %arg13[%c0_100, %c0_101, %c0_102] : memref<2x1x32xf32, #tpu.memory_space<vmem>>, vector<1x1x32xf32>
    %182 = vector.shape_cast %181 : vector<1x1x32xf32> to vector<1x32xf32>
    %183 = vector.broadcast %182 : vector<1x32xf32> to vector<32x32xf32>
    %184 = arith.addf %180, %183 : vector<32x32xf32>
    %185 = arith.addf %157, %184 : vector<32x32xf32>
    %c1_103 = arith.constant 1 : index
    %c0_104 = arith.constant 0 : index
    %c0_105 = arith.constant 0 : index
    %186 = vector.load %arg3[%c1_103, %c0_104, %c0_105] : memref<2x1x32xf32, #tpu.memory_space<vmem>>, vector<1x1x32xf32>
    %187 = vector.shape_cast %186 : vector<1x1x32xf32> to vector<1x32xf32>
    %c1_106 = arith.constant 1 : index
    %c0_107 = arith.constant 0 : index
    %c0_108 = arith.constant 0 : index
    %188 = vector.load %arg4[%c1_106, %c0_107, %c0_108] : memref<2x1x32xf32, #tpu.memory_space<vmem>>, vector<1x1x32xf32>
    %189 = vector.shape_cast %188 : vector<1x1x32xf32> to vector<1x32xf32>
    %cst_109 = arith.constant dense<0.000000e+00> : vector<32xf32>
    %190 = vector.multi_reduction <add>, %185, %cst_109 [1] : vector<32x32xf32> to vector<32xf32>
    %191 = vector.shape_cast %190 : vector<32xf32> to vector<32x1xf32>
    %cst_110 = arith.constant 3.200000e+01 : f32
    %192 = vector.broadcast %cst_110 : f32 to vector<32x1xf32>
    %193 = arith.divf %191, %192 : vector<32x1xf32>
    %194 = vector.broadcast %193 : vector<32x1xf32> to vector<32x32xf32>
    %195 = arith.subf %185, %194 : vector<32x32xf32>
    %196 = arith.mulf %195, %195 : vector<32x32xf32>
    %cst_111 = arith.constant dense<0.000000e+00> : vector<32xf32>
    %197 = vector.multi_reduction <add>, %196, %cst_111 [1] : vector<32x32xf32> to vector<32xf32>
    %198 = vector.shape_cast %197 : vector<32xf32> to vector<32x1xf32>
    %cst_112 = arith.constant 3.200000e+01 : f32
    %199 = vector.broadcast %cst_112 : f32 to vector<32x1xf32>
    %200 = arith.divf %198, %199 : vector<32x1xf32>
    %cst_113 = arith.constant 9.99999974E-6 : f32
    %201 = vector.broadcast %cst_113 : f32 to vector<32x1xf32>
    %202 = arith.addf %200, %201 : vector<32x1xf32>
    %203 = math.rsqrt %202 : vector<32x1xf32>
    %204 = vector.broadcast %203 : vector<32x1xf32> to vector<32x32xf32>
    %205 = arith.mulf %195, %204 : vector<32x32xf32>
    %206 = vector.broadcast %187 : vector<1x32xf32> to vector<32x32xf32>
    %207 = arith.mulf %205, %206 : vector<32x32xf32>
    %208 = vector.broadcast %189 : vector<1x32xf32> to vector<32x32xf32>
    %209 = arith.addf %207, %208 : vector<32x32xf32>
    %c1_114 = arith.constant 1 : index
    %c0_115 = arith.constant 0 : index
    %c0_116 = arith.constant 0 : index
    %210 = vector.load %arg5[%c1_114, %c0_115, %c0_116] : memref<2x32x96xf32, #tpu.memory_space<vmem>>, vector<1x32x96xf32>
    %211 = vector.shape_cast %210 : vector<1x32x96xf32> to vector<32x96xf32>
    %cst_117 = arith.constant dense<0.000000e+00> : vector<32x96xf32>
    %212 = tpu.matmul %209, %211, %cst_117 {dimension_numbers = #tpu.dot_dimension_numbers<[1], [0], [0], [1], [0, 0, 1, 1], [], []>} : vector<32x32xf32>, vector<32x96xf32>, vector<32x96xf32> -> vector<32x96xf32>
    %213 = vector.extract_strided_slice %212 {offsets = [0, 0], sizes = [32, 8], strides = [1, 1]} : vector<32x96xf32> to vector<32x8xf32>
    %214 = vector.shape_cast %213 : vector<32x8xf32> to vector<2x16x8xf32>
    %215 = vector.extract_strided_slice %212 {offsets = [0, 8], sizes = [32, 8], strides = [1, 1]} : vector<32x96xf32> to vector<32x8xf32>
    %216 = vector.shape_cast %215 : vector<32x8xf32> to vector<2x16x8xf32>
    %217 = vector.extract_strided_slice %212 {offsets = [0, 16], sizes = [32, 8], strides = [1, 1]} : vector<32x96xf32> to vector<32x8xf32>
    %218 = vector.shape_cast %217 : vector<32x8xf32> to vector<2x16x8xf32>
    %219 = vector.extract_strided_slice %212 {offsets = [0, 24], sizes = [32, 8], strides = [1, 1]} : vector<32x96xf32> to vector<32x8xf32>
    %220 = vector.shape_cast %219 : vector<32x8xf32> to vector<2x16x8xf32>
    %221 = tpu.concatenate %214, %216, %218, %220 in 0 : vector<2x16x8xf32>, vector<2x16x8xf32>, vector<2x16x8xf32>, vector<2x16x8xf32> -> vector<8x16x8xf32>
    %cst_118 = arith.constant 0.353553385 : f32
    %222 = vector.broadcast %cst_118 : f32 to vector<8x16x8xf32>
    %223 = arith.mulf %221, %222 : vector<8x16x8xf32>
    %224 = vector.extract_strided_slice %212 {offsets = [0, 32], sizes = [32, 8], strides = [1, 1]} : vector<32x96xf32> to vector<32x8xf32>
    %225 = vector.shape_cast %224 : vector<32x8xf32> to vector<2x16x8xf32>
    %226 = vector.extract_strided_slice %212 {offsets = [0, 40], sizes = [32, 8], strides = [1, 1]} : vector<32x96xf32> to vector<32x8xf32>
    %227 = vector.shape_cast %226 : vector<32x8xf32> to vector<2x16x8xf32>
    %228 = vector.extract_strided_slice %212 {offsets = [0, 48], sizes = [32, 8], strides = [1, 1]} : vector<32x96xf32> to vector<32x8xf32>
    %229 = vector.shape_cast %228 : vector<32x8xf32> to vector<2x16x8xf32>
    %230 = vector.extract_strided_slice %212 {offsets = [0, 56], sizes = [32, 8], strides = [1, 1]} : vector<32x96xf32> to vector<32x8xf32>
    %231 = vector.shape_cast %230 : vector<32x8xf32> to vector<2x16x8xf32>
    %232 = tpu.concatenate %225, %227, %229, %231 in 0 : vector<2x16x8xf32>, vector<2x16x8xf32>, vector<2x16x8xf32>, vector<2x16x8xf32> -> vector<8x16x8xf32>
    %233 = vector.extract_strided_slice %212 {offsets = [0, 64], sizes = [32, 8], strides = [1, 1]} : vector<32x96xf32> to vector<32x8xf32>
    %234 = vector.shape_cast %233 : vector<32x8xf32> to vector<2x16x8xf32>
    %235 = vector.extract_strided_slice %212 {offsets = [0, 72], sizes = [32, 8], strides = [1, 1]} : vector<32x96xf32> to vector<32x8xf32>
    %236 = vector.shape_cast %235 : vector<32x8xf32> to vector<2x16x8xf32>
    %237 = vector.extract_strided_slice %212 {offsets = [0, 80], sizes = [32, 8], strides = [1, 1]} : vector<32x96xf32> to vector<32x8xf32>
    %238 = vector.shape_cast %237 : vector<32x8xf32> to vector<2x16x8xf32>
    %239 = vector.extract_strided_slice %212 {offsets = [0, 88], sizes = [32, 8], strides = [1, 1]} : vector<32x96xf32> to vector<32x8xf32>
    %240 = vector.shape_cast %239 : vector<32x8xf32> to vector<2x16x8xf32>
    %241 = tpu.concatenate %234, %236, %238, %240 in 0 : vector<2x16x8xf32>, vector<2x16x8xf32>, vector<2x16x8xf32>, vector<2x16x8xf32> -> vector<8x16x8xf32>
    "tpu.trace_start"() <{level = 10 : i32, message = "gqd,gkd->gqk"}> : () -> ()
    %cst_119 = arith.constant dense<0.000000e+00> : vector<8x16x16xf32>
    %242 = tpu.matmul %223, %232, %cst_119 {dimension_numbers = #tpu.dot_dimension_numbers<[2], [2], [1], [1], [0, 0, 0, 1, 1, 1], [0], [0]>} : vector<8x16x8xf32>, vector<8x16x8xf32>, vector<8x16x16xf32> -> vector<8x16x16xf32>
    "tpu.trace_stop"() : () -> ()
    %cst_120 = arith.constant dense<0xFF800000> : vector<8x16xf32>
    %243 = vector.multi_reduction <maximumf>, %242, %cst_120 [2] : vector<8x16x16xf32> to vector<8x16xf32>
    %244 = vector.shape_cast %243 : vector<8x16xf32> to vector<8x16x1xf32>
    %245 = vector.broadcast %244 : vector<8x16x1xf32> to vector<8x16x16xf32>
    %246 = arith.subf %242, %245 : vector<8x16x16xf32>
    %247 = math.exp %246 : vector<8x16x16xf32>
    %cst_121 = arith.constant dense<0.000000e+00> : vector<8x16xf32>
    %248 = vector.multi_reduction <add>, %247, %cst_121 [2] : vector<8x16x16xf32> to vector<8x16xf32>
    %249 = vector.shape_cast %248 : vector<8x16xf32> to vector<8x16x1xf32>
    %250 = tpu.reciprocal %249 {approx = true} : vector<8x16x1xf32> -> vector<8x16x1xf32>
    %251 = vector.broadcast %250 : vector<8x16x1xf32> to vector<8x16x16xf32>
    %252 = arith.mulf %247, %251 : vector<8x16x16xf32>
    "tpu.trace_start"() <{level = 10 : i32, message = "gqk,gkd->gqd"}> : () -> ()
    %cst_122 = arith.constant dense<0.000000e+00> : vector<8x16x8xf32>
    %253 = tpu.matmul %252, %241, %cst_122 {dimension_numbers = #tpu.dot_dimension_numbers<[2], [1], [1], [2], [0, 0, 0, 1, 1, 2], [0], [0]>} : vector<8x16x16xf32>, vector<8x16x8xf32>, vector<8x16x8xf32> -> vector<8x16x8xf32>
    "tpu.trace_stop"() : () -> ()
    %c1_123 = arith.constant 1 : index
    %c0_124 = arith.constant 0 : index
    %c0_125 = arith.constant 0 : index
    %254 = vector.load %arg6[%c1_123, %c0_124, %c0_125] : memref<2x32x32xf32, #tpu.memory_space<vmem>>, vector<1x32x32xf32>
    %255 = vector.shape_cast %254 : vector<1x32x32xf32> to vector<32x32xf32>
    %c1_126 = arith.constant 1 : index
    %c0_127 = arith.constant 0 : index
    %c0_128 = arith.constant 0 : index
    %256 = vector.load %arg7[%c1_126, %c0_127, %c0_128] : memref<2x1x32xf32, #tpu.memory_space<vmem>>, vector<1x1x32xf32>
    %257 = vector.shape_cast %256 : vector<1x1x32xf32> to vector<1x32xf32>
    %258 = vector.extract_strided_slice %253 {offsets = [0, 0, 0], sizes = [2, 16, 8], strides = [1, 1, 1]} : vector<8x16x8xf32> to vector<2x16x8xf32>
    %259 = vector.shape_cast %258 : vector<2x16x8xf32> to vector<32x8xf32>
    %260 = vector.extract_strided_slice %255 {offsets = [0, 0], sizes = [8, 32], strides = [1, 1]} : vector<32x32xf32> to vector<8x32xf32>
    %cst_129 = arith.constant dense<0.000000e+00> : vector<32x32xf32>
    %261 = tpu.matmul %259, %260, %cst_129 {dimension_numbers = #tpu.dot_dimension_numbers<[1], [0], [0], [1], [0, 0, 1, 1], [], []>} : vector<32x8xf32>, vector<8x32xf32>, vector<32x32xf32> -> vector<32x32xf32>
    %262 = vector.broadcast %257 : vector<1x32xf32> to vector<32x32xf32>
    %263 = arith.addf %262, %261 : vector<32x32xf32>
    %264 = vector.extract_strided_slice %253 {offsets = [2, 0, 0], sizes = [2, 16, 8], strides = [1, 1, 1]} : vector<8x16x8xf32> to vector<2x16x8xf32>
    %265 = vector.shape_cast %264 : vector<2x16x8xf32> to vector<32x8xf32>
    %266 = vector.extract_strided_slice %255 {offsets = [8, 0], sizes = [8, 32], strides = [1, 1]} : vector<32x32xf32> to vector<8x32xf32>
    %cst_130 = arith.constant dense<0.000000e+00> : vector<32x32xf32>
    %267 = tpu.matmul %265, %266, %cst_130 {dimension_numbers = #tpu.dot_dimension_numbers<[1], [0], [0], [1], [0, 0, 1, 1], [], []>} : vector<32x8xf32>, vector<8x32xf32>, vector<32x32xf32> -> vector<32x32xf32>
    %268 = arith.addf %263, %267 : vector<32x32xf32>
    %269 = vector.extract_strided_slice %253 {offsets = [4, 0, 0], sizes = [2, 16, 8], strides = [1, 1, 1]} : vector<8x16x8xf32> to vector<2x16x8xf32>
    %270 = vector.shape_cast %269 : vector<2x16x8xf32> to vector<32x8xf32>
    %271 = vector.extract_strided_slice %255 {offsets = [16, 0], sizes = [8, 32], strides = [1, 1]} : vector<32x32xf32> to vector<8x32xf32>
    %cst_131 = arith.constant dense<0.000000e+00> : vector<32x32xf32>
    %272 = tpu.matmul %270, %271, %cst_131 {dimension_numbers = #tpu.dot_dimension_numbers<[1], [0], [0], [1], [0, 0, 1, 1], [], []>} : vector<32x8xf32>, vector<8x32xf32>, vector<32x32xf32> -> vector<32x32xf32>
    %273 = arith.addf %268, %272 : vector<32x32xf32>
    %274 = vector.extract_strided_slice %253 {offsets = [6, 0, 0], sizes = [2, 16, 8], strides = [1, 1, 1]} : vector<8x16x8xf32> to vector<2x16x8xf32>
    %275 = vector.shape_cast %274 : vector<2x16x8xf32> to vector<32x8xf32>
    %276 = vector.extract_strided_slice %255 {offsets = [24, 0], sizes = [8, 32], strides = [1, 1]} : vector<32x32xf32> to vector<8x32xf32>
    %cst_132 = arith.constant dense<0.000000e+00> : vector<32x32xf32>
    %277 = tpu.matmul %275, %276, %cst_132 {dimension_numbers = #tpu.dot_dimension_numbers<[1], [0], [0], [1], [0, 0, 1, 1], [], []>} : vector<32x8xf32>, vector<8x32xf32>, vector<32x32xf32> -> vector<32x32xf32>
    %278 = arith.addf %273, %277 : vector<32x32xf32>
    %279 = arith.addf %185, %278 : vector<32x32xf32>
    %c1_133 = arith.constant 1 : index
    %c0_134 = arith.constant 0 : index
    %c0_135 = arith.constant 0 : index
    %280 = vector.load %arg8[%c1_133, %c0_134, %c0_135] : memref<2x1x32xf32, #tpu.memory_space<vmem>>, vector<1x1x32xf32>
    %281 = vector.shape_cast %280 : vector<1x1x32xf32> to vector<1x32xf32>
    %c1_136 = arith.constant 1 : index
    %c0_137 = arith.constant 0 : index
    %c0_138 = arith.constant 0 : index
    %282 = vector.load %arg9[%c1_136, %c0_137, %c0_138] : memref<2x1x32xf32, #tpu.memory_space<vmem>>, vector<1x1x32xf32>
    %283 = vector.shape_cast %282 : vector<1x1x32xf32> to vector<1x32xf32>
    %cst_139 = arith.constant dense<0.000000e+00> : vector<32xf32>
    %284 = vector.multi_reduction <add>, %279, %cst_139 [1] : vector<32x32xf32> to vector<32xf32>
    %285 = vector.shape_cast %284 : vector<32xf32> to vector<32x1xf32>
    %cst_140 = arith.constant 3.200000e+01 : f32
    %286 = vector.broadcast %cst_140 : f32 to vector<32x1xf32>
    %287 = arith.divf %285, %286 : vector<32x1xf32>
    %288 = vector.broadcast %287 : vector<32x1xf32> to vector<32x32xf32>
    %289 = arith.subf %279, %288 : vector<32x32xf32>
    %290 = arith.mulf %289, %289 : vector<32x32xf32>
    %cst_141 = arith.constant dense<0.000000e+00> : vector<32xf32>
    %291 = vector.multi_reduction <add>, %290, %cst_141 [1] : vector<32x32xf32> to vector<32xf32>
    %292 = vector.shape_cast %291 : vector<32xf32> to vector<32x1xf32>
    %cst_142 = arith.constant 3.200000e+01 : f32
    %293 = vector.broadcast %cst_142 : f32 to vector<32x1xf32>
    %294 = arith.divf %292, %293 : vector<32x1xf32>
    %cst_143 = arith.constant 9.99999974E-6 : f32
    %295 = vector.broadcast %cst_143 : f32 to vector<32x1xf32>
    %296 = arith.addf %294, %295 : vector<32x1xf32>
    %297 = math.rsqrt %296 : vector<32x1xf32>
    %298 = vector.broadcast %297 : vector<32x1xf32> to vector<32x32xf32>
    %299 = arith.mulf %289, %298 : vector<32x32xf32>
    %300 = vector.broadcast %281 : vector<1x32xf32> to vector<32x32xf32>
    %301 = arith.mulf %299, %300 : vector<32x32xf32>
    %302 = vector.broadcast %283 : vector<1x32xf32> to vector<32x32xf32>
    %303 = arith.addf %301, %302 : vector<32x32xf32>
    %c1_144 = arith.constant 1 : index
    %c0_145 = arith.constant 0 : index
    %c0_146 = arith.constant 0 : index
    %304 = vector.load %arg10[%c1_144, %c0_145, %c0_146] : memref<2x32x64xf32, #tpu.memory_space<vmem>>, vector<1x32x64xf32>
    %305 = vector.shape_cast %304 : vector<1x32x64xf32> to vector<32x64xf32>
    %cst_147 = arith.constant dense<0.000000e+00> : vector<32x64xf32>
    %306 = tpu.matmul %303, %305, %cst_147 {dimension_numbers = #tpu.dot_dimension_numbers<[1], [0], [0], [1], [0, 0, 1, 1], [], []>} : vector<32x32xf32>, vector<32x64xf32>, vector<32x64xf32> -> vector<32x64xf32>
    %c1_148 = arith.constant 1 : index
    %c0_149 = arith.constant 0 : index
    %c0_150 = arith.constant 0 : index
    %307 = vector.load %arg11[%c1_148, %c0_149, %c0_150] : memref<2x1x64xf32, #tpu.memory_space<vmem>>, vector<1x1x64xf32>
    %308 = vector.shape_cast %307 : vector<1x1x64xf32> to vector<1x64xf32>
    %309 = vector.broadcast %308 : vector<1x64xf32> to vector<32x64xf32>
    %310 = arith.addf %306, %309 : vector<32x64xf32>
    %311 = arith.mulf %310, %310 : vector<32x64xf32>
    %312 = arith.mulf %310, %311 : vector<32x64xf32>
    %cst_151 = arith.constant 4.471500e-02 : f32
    %313 = vector.broadcast %cst_151 : f32 to vector<32x64xf32>
    %314 = arith.mulf %313, %312 : vector<32x64xf32>
    %315 = arith.addf %310, %314 : vector<32x64xf32>
    %cst_152 = arith.constant 0.797884583 : f32
    %316 = vector.broadcast %cst_152 : f32 to vector<32x64xf32>
    %317 = arith.mulf %316, %315 : vector<32x64xf32>
    %318 = math.tanh %317 : vector<32x64xf32>
    %cst_153 = arith.constant 1.000000e+00 : f32
    %319 = vector.broadcast %cst_153 : f32 to vector<32x64xf32>
    %320 = arith.addf %319, %318 : vector<32x64xf32>
    %cst_154 = arith.constant 5.000000e-01 : f32
    %321 = vector.broadcast %cst_154 : f32 to vector<32x64xf32>
    %322 = arith.mulf %321, %320 : vector<32x64xf32>
    %323 = arith.mulf %310, %322 : vector<32x64xf32>
    %c1_155 = arith.constant 1 : index
    %c0_156 = arith.constant 0 : index
    %c0_157 = arith.constant 0 : index
    %324 = vector.load %arg12[%c1_155, %c0_156, %c0_157] : memref<2x64x32xf32, #tpu.memory_space<vmem>>, vector<1x64x32xf32>
    %325 = vector.shape_cast %324 : vector<1x64x32xf32> to vector<64x32xf32>
    %cst_158 = arith.constant dense<0.000000e+00> : vector<32x32xf32>
    %326 = tpu.matmul %323, %325, %cst_158 {dimension_numbers = #tpu.dot_dimension_numbers<[1], [0], [0], [1], [0, 0, 1, 1], [], []>} : vector<32x64xf32>, vector<64x32xf32>, vector<32x32xf32> -> vector<32x32xf32>
    %c1_159 = arith.constant 1 : index
    %c0_160 = arith.constant 0 : index
    %c0_161 = arith.constant 0 : index
    %327 = vector.load %arg13[%c1_159, %c0_160, %c0_161] : memref<2x1x32xf32, #tpu.memory_space<vmem>>, vector<1x1x32xf32>
    %328 = vector.shape_cast %327 : vector<1x1x32xf32> to vector<1x32xf32>
    %329 = vector.broadcast %328 : vector<1x32xf32> to vector<32x32xf32>
    %330 = arith.addf %326, %329 : vector<32x32xf32>
    %331 = arith.addf %303, %330 : vector<32x32xf32>
    %c0_162 = arith.constant 0 : index
    %c0_163 = arith.constant 0 : index
    %332 = vector.load %arg14[%c0_162, %c0_163] : memref<1x32xf32, #tpu.memory_space<vmem>>, vector<1x32xf32>
    %c0_164 = arith.constant 0 : index
    %c0_165 = arith.constant 0 : index
    %333 = vector.load %arg15[%c0_164, %c0_165] : memref<1x32xf32, #tpu.memory_space<vmem>>, vector<1x32xf32>
    %cst_166 = arith.constant dense<0.000000e+00> : vector<32xf32>
    %334 = vector.multi_reduction <add>, %331, %cst_166 [1] : vector<32x32xf32> to vector<32xf32>
    %335 = vector.shape_cast %334 : vector<32xf32> to vector<32x1xf32>
    %cst_167 = arith.constant 3.200000e+01 : f32
    %336 = vector.broadcast %cst_167 : f32 to vector<32x1xf32>
    %337 = arith.divf %335, %336 : vector<32x1xf32>
    %338 = vector.broadcast %337 : vector<32x1xf32> to vector<32x32xf32>
    %339 = arith.subf %331, %338 : vector<32x32xf32>
    %340 = arith.mulf %339, %339 : vector<32x32xf32>
    %cst_168 = arith.constant dense<0.000000e+00> : vector<32xf32>
    %341 = vector.multi_reduction <add>, %340, %cst_168 [1] : vector<32x32xf32> to vector<32xf32>
    %342 = vector.shape_cast %341 : vector<32xf32> to vector<32x1xf32>
    %cst_169 = arith.constant 3.200000e+01 : f32
    %343 = vector.broadcast %cst_169 : f32 to vector<32x1xf32>
    %344 = arith.divf %342, %343 : vector<32x1xf32>
    %cst_170 = arith.constant 9.99999974E-6 : f32
    %345 = vector.broadcast %cst_170 : f32 to vector<32x1xf32>
    %346 = arith.addf %344, %345 : vector<32x1xf32>
    %347 = math.rsqrt %346 : vector<32x1xf32>
    %348 = vector.broadcast %347 : vector<32x1xf32> to vector<32x32xf32>
    %349 = arith.mulf %339, %348 : vector<32x32xf32>
    %350 = vector.broadcast %332 : vector<1x32xf32> to vector<32x32xf32>
    %351 = arith.mulf %349, %350 : vector<32x32xf32>
    %352 = vector.broadcast %333 : vector<1x32xf32> to vector<32x32xf32>
    %353 = arith.addf %351, %352 : vector<32x32xf32>
    %c0_171 = arith.constant 0 : index
    %c0_172 = arith.constant 0 : index
    %354 = vector.load %arg16[%c0_171, %c0_172] : memref<32x1xf32, #tpu.memory_space<vmem>>, vector<32x1xf32>
    %cst_173 = arith.constant dense<0.000000e+00> : vector<32x1xf32>
    %355 = tpu.matmul %353, %354, %cst_173 {dimension_numbers = #tpu.dot_dimension_numbers<[1], [0], [0], [1], [0, 0, 1, 1], [], []>} : vector<32x32xf32>, vector<32x1xf32>, vector<32x1xf32> -> vector<32x1xf32>
    %c0_174 = arith.constant 0 : index
    %c0_175 = arith.constant 0 : index
    %356 = vector.load %arg17[%c0_174, %c0_175] : memref<1x1xf32, #tpu.memory_space<vmem>>, vector<1x1xf32>
    %357 = vector.broadcast %356 : vector<1x1xf32> to vector<32x1xf32>
    %358 = arith.addf %355, %357 : vector<32x1xf32>
    %359 = vector.shape_cast %358 : vector<32x1xf32> to vector<2x16x1xf32>
    %cst_176 = arith.constant dense<0xFF800000> : vector<2x1xf32>
    %360 = vector.multi_reduction <maximumf>, %359, %cst_176 [1] : vector<2x16x1xf32> to vector<2x1xf32>
    %361 = vector.shape_cast %360 : vector<2x1xf32> to vector<2x1x1xf32>
    %362 = vector.broadcast %361 : vector<2x1x1xf32> to vector<2x16x1xf32>
    %363 = arith.subf %359, %362 : vector<2x16x1xf32>
    %364 = math.exp %363 : vector<2x16x1xf32>
    %cst_177 = arith.constant dense<0.000000e+00> : vector<2x1xf32>
    %365 = vector.multi_reduction <add>, %364, %cst_177 [1] : vector<2x16x1xf32> to vector<2x1xf32>
    %366 = vector.shape_cast %365 : vector<2x1xf32> to vector<2x1x1xf32>
    %367 = tpu.reciprocal %366 {approx = true} : vector<2x1x1xf32> -> vector<2x1x1xf32>
    %368 = vector.broadcast %367 : vector<2x1x1xf32> to vector<2x16x1xf32>
    %369 = arith.mulf %364, %368 : vector<2x16x1xf32>
    %370 = vector.shape_cast %369 : vector<2x16x1xf32> to vector<32x1xf32>
    %371 = vector.broadcast %370 : vector<32x1xf32> to vector<32x32xf32>
    %372 = arith.mulf %371, %353 : vector<32x32xf32>
    %373 = tpu.iota {dimensions = array<i32: 0>} : vector<2x32xi32>
    %374 = tpu.iota {dimensions = array<i32: 1>} : vector<2x32xi32>
    %c16_i32 = arith.constant 16 : i32
    %375 = vector.broadcast %c16_i32 : i32 to vector<2x32xi32>
    %376 = arith.muli %373, %375 : vector<2x32xi32>
    %377 = arith.cmpi sge, %374, %376 : vector<2x32xi32>
    %c16_i32_178 = arith.constant 16 : i32
    %378 = vector.broadcast %c16_i32_178 : i32 to vector<2x32xi32>
    %379 = arith.muli %373, %378 : vector<2x32xi32>
    %c16_i32_179 = arith.constant 16 : i32
    %380 = vector.broadcast %c16_i32_179 : i32 to vector<2x32xi32>
    %381 = arith.addi %379, %380 : vector<2x32xi32>
    %382 = arith.cmpi slt, %374, %381 : vector<2x32xi32>
    %383 = arith.andi %377, %382 : vector<2x32xi1>
    %384 = arith.extui %383 : vector<2x32xi1> to vector<2x32xi32>
    %385 = arith.sitofp %384 : vector<2x32xi32> to vector<2x32xf32>
    %cst_180 = arith.constant dense<0.000000e+00> : vector<2x32xf32>
    %386 = tpu.matmul %385, %372, %cst_180 {dimension_numbers = #tpu.dot_dimension_numbers<[1], [0], [0], [1], [0, 0, 1, 1], [], []>} : vector<2x32xf32>, vector<32x32xf32>, vector<2x32xf32> -> vector<2x32xf32>
    %c0_181 = arith.constant 0 : index
    %c0_182 = arith.constant 0 : index
    %387 = vector.load %arg18[%c0_181, %c0_182] : memref<32x10xf32, #tpu.memory_space<vmem>>, vector<32x10xf32>
    %cst_183 = arith.constant dense<0.000000e+00> : vector<2x10xf32>
    %388 = tpu.matmul %386, %387, %cst_183 {dimension_numbers = #tpu.dot_dimension_numbers<[1], [0], [0], [1], [0, 0, 1, 1], [], []>} : vector<2x32xf32>, vector<32x10xf32>, vector<2x10xf32> -> vector<2x10xf32>
    %c0_184 = arith.constant 0 : index
    %c0_185 = arith.constant 0 : index
    %389 = vector.load %arg19[%c0_184, %c0_185] : memref<1x10xf32, #tpu.memory_space<vmem>>, vector<1x10xf32>
    %390 = vector.broadcast %389 : vector<1x10xf32> to vector<2x10xf32>
    %391 = arith.addf %388, %390 : vector<2x10xf32>
    %c0_186 = arith.constant 0 : index
    %c0_187 = arith.constant 0 : index
    %392 = vector.load %arg20[%c0_186, %c0_187] : memref<2x10xf32, #tpu.memory_space<vmem>>, vector<2x10xf32>
    tpu.vector_store %arg20[%c0_186, %c0_187], %391 {strides = array<i32>} : memref<2x10xf32, #tpu.memory_space<vmem>>, vector<2x10xf32>,
    return
  }
}

</mosaic_0001>

<bundles_post_ra>
// kernel: cct_forward.1
= control target key start
LH: loop header
LB: loop body
LE: loop exit
PB: predicated region body
PF: predicated region fallthrough
CT: control target
= control target key end

     0   :  { %s5965_s0 = inlined_call_operand.vmem [shape: f32[128,36], index: 0, kind: input, shape index: {}]   ;;  %s5966_s1 = inlined_call_operand.vmem [shape: f32[36,32], index: 1, kind: input, shape index: {}]   ;;  %s5967_s2 = inlined_call_operand.vmem [shape: f32[1,16,32], index: 2, kind: input, shape index: {}]   ;;  %s5968_s3 = inlined_call_operand.vmem [shape: f32[2,1,32], index: 3, kind: input, shape index: {}]   ;;  %s5969_s4 = inlined_call_operand.vmem [shape: f32[2,1,32], index: 4, kind: input, shape index: {}]   ;;  %s5970_s5 = inlined_call_operand.vmem [shape: f32[2,32,96], index: 5, kind: input, shape index: {}]   ;;  %s5971_s6 = inlined_call_operand.vmem [shape: f32[2,32,32], index: 6, kind: input, shape index: {}]   ;;  %s5972_s7 = inlined_call_operand.vmem [shape: f32[2,1,32], index: 7, kind: input, shape index: {}]   ;;  %s5973_s8 = inlined_call_operand.vmem [shape: f32[2,1,32], index: 8, kind: input, shape index: {}]   ;;  %s5974_s9 = inlined_call_operand.vmem [shape: f32[2,1,32], index: 9, kind: input, shape index: {}]   ;;  %s5975_s10 = inlined_call_operand.vmem [shape: f32[2,32,64], index: 10, kind: input, shape index: {}]   ;;  %s5976_s11 = inlined_call_operand.vmem [shape: f32[2,1,64], index: 11, kind: input, shape index: {}]   ;;  %s5977_s12 = inlined_call_operand.vmem [shape: f32[2,64,32], index: 12, kind: input, shape index: {}]   ;;  %s5978_s13 = inlined_call_operand.vmem [shape: f32[2,1,32], index: 13, kind: input, shape index: {}]   ;;  %s5979_s14 = inlined_call_operand.vmem [shape: f32[1,32], index: 14, kind: input, shape index: {}]   ;;  %s5980_s15 = inlined_call_operand.vmem [shape: f32[1,32], index: 15, kind: input, shape index: {}]   ;;  %s5981_s16 = inlined_call_operand.vmem [shape: f32[32,1], index: 16, kind: input, shape index: {}]   ;;  %s5982_s17 = inlined_call_operand.<no memory space> [shape: f32[1,1], index: 17, kind: input, shape index: {}]   ;;  %s5983_s18 = inlined_call_operand.vmem [shape: f32[32,10], index: 18, kind: input, shape index: {}]   ;;  %s5984_s19 = inlined_call_operand.vmem [shape: f32[1,10], index: 19, kind: input, shape index: {}]   ;;  %s5985_s20 = inlined_call_operand.hbm [shape: f32[2,10], index: 20, kind: output, shape index: {}]  }
   0x1   :  { %5993 = sst [smem:[#allocation8_spill]] %s5965_s0  ;;  %v25_v0 = vstv %s5982_s17 }
   0x2   :  { %5994 = sst [smem:[#allocation9_spill]] %s5966_s1  ;;  %26 = vst [vmem:[#allocation4] sm:$0x1] %v25_v0 }
   0x3   :  { %5995 = sst [smem:[#allocation10_spill]] %s5967_s2 }
   0x4   :  { %5996 = sst [smem:[#allocation11_spill]] %s5968_s3 }
   0x5   :  { %5997 = sst [smem:[#allocation12_spill]] %s5969_s4 }
   0x6   :  { %s5998_s2 = sld [smem:[#allocation9_spill]]  ;;  %vm138_vm0 = vcmask 1043456   ;;  %vm89_vm1 = vcmask 293888  }
   0x7   :  { %s5999_s21 = sld [smem:[#allocation8_spill]] }
   0xc   :  { %v88_v1 = vld [vmem:[%s5998_s2 + $0x20] sm:$0xf]  ;;  %v87_v2 = vld [vmem:[%s5998_s2 + $0x18] sm:$0xff]  ;;  %v86_v3 = vld [vmem:[%s5998_s2 + $0x10] sm:$0xff] }
   0xd   :  { %3932 = vmatpush.msk.msra.mxu0 %vm138_vm0, %v88_v1  ;;  %v85_v4 = vld [vmem:[%s5998_s2 + $0x8] sm:$0xff]  ;;  %v84_v5 = vld [vmem:[%s5998_s2] sm:$0xff] }
   0xe   :  { %v68_v6 = vld [vmem:[%s5999_s21] sm:$0xff] }
   0xf   :  { %154 = vmatpush.msra.mxu0 %v87_v2 }
  0x11   :  { %155 = vmatpush.msra.mxu0 %v86_v3 }
  0x13   :  { %156 = vmatpush.msra.mxu0 %v85_v4 }
  0x15   :  { %157 = vmatpush.msra.mxu0 %v84_v5 }
  0x16   :  { %27 = vsyncpa [#allocation6], 0  ;;  %3933 = vmatmul.msk.f32.vlgmr.msra.gmra.mxu0 %vm89_vm1, %v68_v6  ;;  %v69_v7 = vld [vmem:[%s5999_s21 + $0x8] sm:$0xff]  ;;  %v70_v8 = vld [vmem:[%s5999_s21 + $0x10] sm:$0xff]  ;;  %vm223_vm2 = vcmask 254976   ;;  %vm353_vm3 = vcmask 257025  }
  0x17   :  { %v71_v9 = vld [vmem:[%s5999_s21 + $0x18] sm:$0xff]  ;;  %v72_v10 = vld [vmem:[%s5999_s21 + $0x20] sm:$0xff]  ;;  %v73_v11 = vld [vmem:[%s5999_s21 + $0x28] sm:$0xff]  ;;  %vm482_vm4 = vcmask 259075   ;;  %vm611_vm5 = vcmask 261125   ;;  %vm336_vm6 = vcmask 253952  }
  0x18   :  { %v74_v12 = vld [vmem:[%s5999_s21 + $0x30] sm:$0xff]  ;;  %v75_v13 = vld [vmem:[%s5999_s21 + $0x38] sm:$0xff]  ;;  %v76_v14 = vld [vmem:[%s5999_s21 + $0x40] sm:$0xff]  ;;  %vm756_vm7 = vcmask 257024   ;;  %vm807_vm8 = vcmask 261120   ;;  %s6000_s22 = sld [smem:[#allocation10_spill]] }
  0x19   :  { %v77_v15 = vld [vmem:[%s5999_s21 + $0x48] sm:$0xff]  ;;  %v78_v16 = vld [vmem:[%s5999_s21 + $0x50] sm:$0xff]  ;;  %v79_v17 = vld [vmem:[%s5999_s21 + $0x58] sm:$0xff]  ;;  %s6001_s0 = sld [smem:[#allocation11_spill]]  ;;  %s4472_s23 = smov 120  }
  0x1a   :  { %v80_v18 = vld [vmem:[%s5999_s21 + $0x60] sm:$0xff]  ;;  %v81_v19 = vld [vmem:[%s5999_s21 + $0x68] sm:$0xff]  ;;  %v82_v20 = vld [vmem:[%s5999_s21 + $0x70] sm:$0xff]  ;;  %s4473_s24 = smov 112   ;;  %s4474_s2 = smov 104  }
  0x1b   :  { %v83_v21 = vld [vmem:[%s5999_s21 + $0x78] sm:$0xff]  ;;  %s4475_s25 = smov 96   ;;  %s5991_s3 = smov 64  }
  0x1c   :  { %s4479_s28 = smov [#allocation5]  }
  0x1d   :  { %s3921_s4 = sshll.u32 %s4479_s28, 4  ;;  %s3922_s4 = int_to_ptr.vmem [resolvable:$true] %s3921_s4 }
  0x1e   :  { %3934 = vmatmul.msk.f32.gmra.mxu0 %vm89_vm1, %v69_v7 }
  0x26   :  { %3935 = vmatmul.msk.f32.gmra.mxu0 %vm89_vm1, %v70_v8 }
  0x2e   :  { %3936 = vmatmul.msk.f32.gmra.mxu0 %vm89_vm1, %v71_v9 }
  0x36   :  { %3937 = vmatmul.msk.f32.gmra.mxu0 %vm89_vm1, %v72_v10 }
  0x3e   :  { %3938 = vmatmul.msk.f32.gmra.mxu0 %vm89_vm1, %v73_v11 }
  0x46   :  { %3939 = vmatmul.msk.f32.gmra.mxu0 %vm89_vm1, %v74_v12 }
  0x4e   :  { %3940 = vmatmul.msk.f32.gmra.mxu0 %vm89_vm1, %v75_v13 }
  0x56   :  { %3941 = vmatmul.msk.f32.gmra.mxu0 %vm89_vm1, %v76_v14 }
  0x5e   :  { %3942 = vmatmul.msk.f32.gmra.mxu0 %vm89_vm1, %v77_v15 }
  0x66   :  { %3943 = vmatmul.msk.f32.gmra.mxu0 %vm89_vm1, %v78_v16 }
  0x6e   :  { %3944 = vmatmul.msk.f32.gmra.mxu0 %vm89_vm1, %v79_v17 }
  0x76   :  { %3945 = vmatmul.msk.f32.gmra.mxu0 %vm89_vm1, %v80_v18 }
  0x7e   :  { %3946 = vmatmul.msk.f32.gmra.mxu0 %vm89_vm1, %v81_v19 }
  0x86   :  { %3947 = vmatmul.msk.f32.gmra.mxu0 %vm89_vm1, %v82_v20 }
  0x8e   :  { %3948 = vmatmul.msk.f32.gmra.mxu0 %vm89_vm1, %v83_v21 }
  0x93   :  { %v159_v22 = vpop.f32.mrf.mxu0 }
  0x94   :  { %v207_v23 = vmax.f32 %v159_v22, 0.0 }
  0x96   :  { %v224_v24 = vsel %vm223_vm2, %v207_v23, -inf  ;;  %v354_v25 = vsel %vm353_vm3, %v207_v23, -inf  ;;  %v483_v26 = vsel %vm482_vm4, %v207_v23, -inf  ;;  %v612_v27 = vsel %vm611_vm5, %v207_v23, -inf }
  0x97   :  { %v225_v28 = vrot.slane %v224_v24, 4  ;;  %v355_v29 = vrot.slane %v354_v25, 4  ;;  %v484_v30 = vrot.slane %v483_v26, 4  ;;  %v613_v31 = vrot.slane %v612_v27, 4 }
  0x99   :  { %v226_v32 = vmax.f32 %v224_v24, %v225_v28  ;;  %v356_v33 = vmax.f32 %v354_v25, %v355_v29  ;;  %v485_v34 = vmax.f32 %v483_v26, %v484_v30  ;;  %v614_v35 = vmax.f32 %v612_v27, %v613_v31 }
  0x9b   :  { %v227_v36 = vrot.slane %v226_v32, 2  ;;  %v357_v37 = vrot.slane %v356_v33, 2  ;;  %v486_v38 = vrot.slane %v485_v34, 2  ;;  %v615_v39 = vrot.slane %v614_v35, 2  ;;  %v162_v40 = vpop.f32.mrf.mxu0 }
  0x9c   :  { %v208_v41 = vmax.f32 %v162_v40, 0.0 }
  0x9d   :  { %v228_v42 = vmax.f32 %v226_v32, %v227_v36  ;;  %v358_v43 = vmax.f32 %v356_v33, %v357_v37  ;;  %v487_v44 = vmax.f32 %v485_v34, %v486_v38  ;;  %v616_v45 = vmax.f32 %v614_v35, %v615_v39 }
  0x9e   :  { %v231_v46 = vsel %vm223_vm2, %v208_v41, -inf  ;;  %v361_v47 = vsel %vm353_vm3, %v208_v41, -inf  ;;  %v490_v48 = vsel %vm482_vm4, %v208_v41, -inf  ;;  %v619_v49 = vsel %vm611_vm5, %v208_v41, -inf }
  0x9f   :  { %v229_v50 = vrot.slane %v228_v42, 1  ;;  %v359_v51 = vrot.slane %v358_v43, 1  ;;  %v488_v52 = vrot.slane %v487_v44, 1  ;;  %v617_v53 = vrot.slane %v616_v45, 1 }
  0xa0   :  { %v232_v54 = vrot.slane %v231_v46, 4  ;;  %v362_v55 = vrot.slane %v361_v47, 4  ;;  %v491_v56 = vrot.slane %v490_v48, 4  ;;  %v620_v57 = vrot.slane %v619_v49, 4 }
  0xa1   :  { %v230_v58 = vmax.f32 %v228_v42, %v229_v50  ;;  %v360_v59 = vmax.f32 %v358_v43, %v359_v51  ;;  %v489_v60 = vmax.f32 %v487_v44, %v488_v52  ;;  %v618_v61 = vmax.f32 %v616_v45, %v617_v53 }
  0xa2   :  { %v233_v62 = vmax.f32 %v231_v46, %v232_v54  ;;  %v363_v63 = vmax.f32 %v361_v47, %v362_v55  ;;  %v492_v0 = vmax.f32 %v490_v48, %v491_v56  ;;  %v621_v1 = vmax.f32 %v619_v49, %v620_v57 }
  0xa3   :  { %337 = vst.msk [vmem:[#allocation2] sm:$0x1] %vm336_vm6, %v230_v58  ;;  %v165_v2 = vpop.f32.mrf.mxu0 }
  0xa4   :  { %466 = vst.msk [vmem:[#allocation2 + $0x1] sm:$0x1] %vm336_vm6, %v360_v59  ;;  %v234_v3 = vrot.slane %v233_v62, 2  ;;  %v364_v4 = vrot.slane %v363_v63, 2  ;;  %v493_v5 = vrot.slane %v492_v0, 2  ;;  %v622_v6 = vrot.slane %v621_v1, 2 }
  0xa5   :  { %595 = vst.msk [vmem:[#allocation2 + $0x2] sm:$0x1] %vm336_vm6, %v489_v60  ;;  %v209_v7 = vmax.f32 %v165_v2, 0.0 }
  0xa6   :  { %724 = vst.msk [vmem:[#allocation2 + $0x3] sm:$0x1] %vm336_vm6, %v618_v61  ;;  %v235_v8 = vmax.f32 %v233_v62, %v234_v3  ;;  %v365_v9 = vmax.f32 %v363_v63, %v364_v4  ;;  %v494_v10 = vmax.f32 %v492_v0, %v493_v5  ;;  %v623_v11 = vmax.f32 %v621_v1, %v622_v6 }
  0xa7   :  { %v238_v12 = vsel %vm223_vm2, %v209_v7, -inf  ;;  %v368_v13 = vsel %vm353_vm3, %v209_v7, -inf  ;;  %v497_v14 = vsel %vm482_vm4, %v209_v7, -inf  ;;  %v626_v15 = vsel %vm611_vm5, %v209_v7, -inf }
  0xa8   :  { %v236_v16 = vrot.slane %v235_v8, 1  ;;  %v366_v17 = vrot.slane %v365_v9, 1  ;;  %v495_v18 = vrot.slane %v494_v10, 1  ;;  %v624_v19 = vrot.slane %v623_v11, 1 }
  0xa9   :  { %v239_v20 = vrot.slane %v238_v12, 4  ;;  %v369_v21 = vrot.slane %v368_v13, 4  ;;  %v498_v22 = vrot.slane %v497_v14, 4  ;;  %v627_v23 = vrot.slane %v626_v15, 4 }
  0xaa   :  { %v237_v24 = vmax.f32 %v235_v8, %v236_v16  ;;  %v367_v25 = vmax.f32 %v365_v9, %v366_v17  ;;  %v496_v26 = vmax.f32 %v494_v10, %v495_v18  ;;  %v625_v27 = vmax.f32 %v623_v11, %v624_v19 }
  0xab   :  { %v240_v28 = vmax.f32 %v238_v12, %v239_v20  ;;  %v370_v29 = vmax.f32 %v368_v13, %v369_v21  ;;  %v499_v30 = vmax.f32 %v497_v14, %v498_v22  ;;  %v628_v31 = vmax.f32 %v626_v15, %v627_v23  ;;  %v168_v32 = vpop.f32.mrf.mxu0 }
  0xac   :  { %338 = vst.msk [vmem:[#allocation2 + $0x4] sm:$0x1] %vm336_vm6, %v237_v24  ;;  %v210_v33 = vmax.f32 %v168_v32, 0.0 }
  0xad   :  { %467 = vst.msk [vmem:[#allocation2 + $0x5] sm:$0x1] %vm336_vm6, %v367_v25  ;;  %v241_v34 = vrot.slane %v240_v28, 2  ;;  %v371_v35 = vrot.slane %v370_v29, 2  ;;  %v500_v36 = vrot.slane %v499_v30, 2  ;;  %v629_v37 = vrot.slane %v628_v31, 2 }
  0xae   :  { %596 = vst.msk [vmem:[#allocation2 + $0x6] sm:$0x1] %vm336_vm6, %v496_v26  ;;  %v245_v38 = vsel %vm223_vm2, %v210_v33, -inf  ;;  %v375_v39 = vsel %vm353_vm3, %v210_v33, -inf  ;;  %v504_v40 = vsel %vm482_vm4, %v210_v33, -inf  ;;  %v633_v41 = vsel %vm611_vm5, %v210_v33, -inf }
  0xaf   :  { %725 = vst.msk [vmem:[#allocation2 + $0x7] sm:$0x1] %vm336_vm6, %v625_v27  ;;  %v242_v42 = vmax.f32 %v240_v28, %v241_v34  ;;  %v372_v43 = vmax.f32 %v370_v29, %v371_v35  ;;  %v501_v44 = vmax.f32 %v499_v30, %v500_v36  ;;  %v630_v45 = vmax.f32 %v628_v31, %v629_v37  ;;  %v740_v12 = vld [vmem:[#allocation2] sm:$0xf] }
  0xb0   :  { %v246_v46 = vrot.slane %v245_v38, 4  ;;  %v376_v47 = vrot.slane %v375_v39, 4  ;;  %v505_v48 = vrot.slane %v504_v40, 4  ;;  %v634_v49 = vrot.slane %v633_v41, 4 }
  0xb1   :  { %v243_v50 = vrot.slane %v242_v42, 1  ;;  %v373_v51 = vrot.slane %v372_v43, 1  ;;  %v502_v52 = vrot.slane %v501_v44, 1  ;;  %v631_v53 = vrot.slane %v630_v45, 1 }
  0xb2   :  { %v247_v54 = vmax.f32 %v245_v38, %v246_v46  ;;  %v377_v55 = vmax.f32 %v375_v39, %v376_v47  ;;  %v506_v56 = vmax.f32 %v504_v40, %v505_v48  ;;  %v635_v57 = vmax.f32 %v633_v41, %v634_v49 }
  0xb3   :  { %v244_v58 = vmax.f32 %v242_v42, %v243_v50  ;;  %v374_v59 = vmax.f32 %v372_v43, %v373_v51  ;;  %v503_v60 = vmax.f32 %v501_v44, %v502_v52  ;;  %v632_v61 = vmax.f32 %v630_v45, %v631_v53  ;;  %v171_v62 = vpop.f32.mrf.mxu0 }
  0xb4   :  { %v248_v63 = vrot.slane %v247_v54, 2  ;;  %v378_v0 = vrot.slane %v377_v55, 2  ;;  %v507_v1 = vrot.slane %v506_v56, 2  ;;  %v636_v2 = vrot.slane %v635_v57, 2 }
  0xb5   :  { %339 = vst.msk [vmem:[#allocation2 + $0x8] sm:$0x1] %vm336_vm6, %v244_v58  ;;  %v211_v3 = vmax.f32 %v171_v62, 0.0  ;;  %v757_v32 = vsel %vm756_vm7, %v740_v12, -inf }
  0xb6   :  { %468 = vst.msk [vmem:[#allocation2 + $0x9] sm:$0x1] %vm336_vm6, %v374_v59  ;;  %v249_v4 = vmax.f32 %v247_v54, %v248_v63  ;;  %v379_v5 = vmax.f32 %v377_v55, %v378_v0  ;;  %v508_v6 = vmax.f32 %v506_v56, %v507_v1  ;;  %v637_v7 = vmax.f32 %v635_v57, %v636_v2  ;;  %v741_v21 = vld [vmem:[#allocation2 + $0x4] sm:$0xf] }
  0xb7   :  { %597 = vst.msk [vmem:[#allocation2 + $0xa] sm:$0x1] %vm336_vm6, %v503_v60  ;;  %v252_v8 = vsel %vm223_vm2, %v211_v3, -inf  ;;  %v382_v9 = vsel %vm353_vm3, %v211_v3, -inf  ;;  %v511_v10 = vsel %vm482_vm4, %v211_v3, -inf  ;;  %v640_v11 = vsel %vm611_vm5, %v211_v3, -inf }
  0xb8   :  { %726 = vst.msk [vmem:[#allocation2 + $0xb] sm:$0x1] %vm336_vm6, %v632_v61  ;;  %v250_v13 = vrot.slane %v249_v4, 1  ;;  %v380_v14 = vrot.slane %v379_v5, 1  ;;  %v509_v15 = vrot.slane %v508_v6, 1  ;;  %v638_v16 = vrot.slane %v637_v7, 1 }
  0xb9   :  { %v253_v17 = vrot.slane %v252_v8, 4  ;;  %v383_v18 = vrot.slane %v382_v9, 4  ;;  %v512_v19 = vrot.slane %v511_v10, 4  ;;  %v641_v20 = vrot.slane %v640_v11, 4 }
  0xba   :  { %v251_v22 = vmax.f32 %v249_v4, %v250_v13  ;;  %v381_v23 = vmax.f32 %v379_v5, %v380_v14  ;;  %v510_v24 = vmax.f32 %v508_v6, %v509_v15  ;;  %v639_v25 = vmax.f32 %v637_v7, %v638_v16 }
  0xbb   :  { %v254_v26 = vmax.f32 %v252_v8, %v253_v17  ;;  %v384_v27 = vmax.f32 %v382_v9, %v383_v18  ;;  %v513_v28 = vmax.f32 %v511_v10, %v512_v19  ;;  %v642_v29 = vmax.f32 %v640_v11, %v641_v20  ;;  %v174_v30 = vpop.f32.mrf.mxu0 }
  0xbc   :  { %340 = vst.msk [vmem:[#allocation2 + $0xc] sm:$0x1] %vm336_vm6, %v251_v22  ;;  %v212_v31 = vmax.f32 %v174_v30, 0.0  ;;  %v4702_v33 = vsel %vm756_vm7, %v741_v21, -inf }
  0xbd   :  { %469 = vst.msk [vmem:[#allocation2 + $0xd] sm:$0x1] %vm336_vm6, %v381_v23  ;;  %v255_v34 = vrot.slane %v254_v26, 2  ;;  %v385_v35 = vrot.slane %v384_v27, 2  ;;  %v514_v36 = vrot.slane %v513_v28, 2  ;;  %v643_v37 = vrot.slane %v642_v29, 2 }
  0xbe   :  { %598 = vst.msk [vmem:[#allocation2 + $0xe] sm:$0x1] %vm336_vm6, %v510_v24  ;;  %v259_v38 = vsel %vm223_vm2, %v212_v31, -inf  ;;  %v389_v39 = vsel %vm353_vm3, %v212_v31, -inf  ;;  %v518_v40 = vsel %vm482_vm4, %v212_v31, -inf  ;;  %v647_v41 = vsel %vm611_vm5, %v212_v31, -inf }
  0xbf   :  { %727 = vst.msk [vmem:[#allocation2 + $0xf] sm:$0x1] %vm336_vm6, %v639_v25  ;;  %v256_v42 = vmax.f32 %v254_v26, %v255_v34  ;;  %v386_v43 = vmax.f32 %v384_v27, %v385_v35  ;;  %v515_v44 = vmax.f32 %v513_v28, %v514_v36  ;;  %v644_v45 = vmax.f32 %v642_v29, %v643_v37 }
  0xc0   :  { %v260_v46 = vrot.slane %v259_v38, 4  ;;  %v390_v47 = vrot.slane %v389_v39, 4  ;;  %v519_v48 = vrot.slane %v518_v40, 4  ;;  %v648_v49 = vrot.slane %v647_v41, 4 }
  0xc1   :  { %v257_v50 = vrot.slane %v256_v42, 1  ;;  %v387_v51 = vrot.slane %v386_v43, 1  ;;  %v516_v52 = vrot.slane %v515_v44, 1  ;;  %v645_v53 = vrot.slane %v644_v45, 1 }
  0xc2   :  { %v261_v54 = vmax.f32 %v259_v38, %v260_v46  ;;  %v391_v55 = vmax.f32 %v389_v39, %v390_v47  ;;  %v520_v56 = vmax.f32 %v518_v40, %v519_v48  ;;  %v649_v57 = vmax.f32 %v647_v41, %v648_v49 }
  0xc3   :  { %v258_v58 = vmax.f32 %v256_v42, %v257_v50  ;;  %v388_v59 = vmax.f32 %v386_v43, %v387_v51  ;;  %v517_v60 = vmax.f32 %v515_v44, %v516_v52  ;;  %v646_v61 = vmax.f32 %v644_v45, %v645_v53  ;;  %v177_v62 = vpop.f32.mrf.mxu0 }
  0xc4   :  { %v262_v63 = vrot.slane %v261_v54, 2  ;;  %v392_v0 = vrot.slane %v391_v55, 2  ;;  %v521_v1 = vrot.slane %v520_v56, 2  ;;  %v650_v2 = vrot.slane %v649_v57, 2 }
  0xc5   :  { %341 = vst.msk [vmem:[#allocation2 + $0x10] sm:$0x1] %vm336_vm6, %v258_v58  ;;  %v213_v3 = vmax.f32 %v177_v62, 0.0  ;;  %v759_v4 = vmax.f32 %v757_v32, %v4702_v33  ;;  %v742_v58 = vld [vmem:[#allocation2 + $0x8] sm:$0xf] }
  0xc6   :  { %470 = vst.msk [vmem:[#allocation2 + $0x11] sm:$0x1] %vm336_vm6, %v388_v59  ;;  %v263_v5 = vmax.f32 %v261_v54, %v262_v63  ;;  %v393_v6 = vmax.f32 %v391_v55, %v392_v0  ;;  %v522_v7 = vmax.f32 %v520_v56, %v521_v1  ;;  %v651_v8 = vmax.f32 %v649_v57, %v650_v2  ;;  %v743_v13 = vld [vmem:[#allocation2 + $0xc] sm:$0xf] }
  0xc7   :  { %599 = vst.msk [vmem:[#allocation2 + $0x12] sm:$0x1] %vm336_vm6, %v517_v60  ;;  %v266_v9 = vsel %vm223_vm2, %v213_v3, -inf  ;;  %v396_v10 = vsel %vm353_vm3, %v213_v3, -inf  ;;  %v525_v11 = vsel %vm482_vm4, %v213_v3, -inf  ;;  %v654_v12 = vsel %vm611_vm5, %v213_v3, -inf }
  0xc8   :  { %728 = vst.msk [vmem:[#allocation2 + $0x13] sm:$0x1] %vm336_vm6, %v646_v61  ;;  %v264_v14 = vrot.slane %v263_v5, 1  ;;  %v394_v15 = vrot.slane %v393_v6, 1  ;;  %v523_v16 = vrot.slane %v522_v7, 1  ;;  %v652_v17 = vrot.slane %v651_v8, 1 }
  0xc9   :  { %v267_v18 = vrot.slane %v266_v9, 4  ;;  %v397_v19 = vrot.slane %v396_v10, 4  ;;  %v526_v20 = vrot.slane %v525_v11, 4  ;;  %v655_v21 = vrot.slane %v654_v12, 4  ;;  %763 = vst.msk [vmem:[#allocation3] sm:$0xf] %vm756_vm7, %v759_v4 }
  0xca   :  { %v265_v22 = vmax.f32 %v263_v5, %v264_v14  ;;  %v395_v23 = vmax.f32 %v393_v6, %v394_v15  ;;  %v524_v24 = vmax.f32 %v522_v7, %v523_v16  ;;  %v653_v25 = vmax.f32 %v651_v8, %v652_v17 }
  0xcb   :  { %v268_v26 = vmax.f32 %v266_v9, %v267_v18  ;;  %v398_v27 = vmax.f32 %v396_v10, %v397_v19  ;;  %v527_v28 = vmax.f32 %v525_v11, %v526_v20  ;;  %v656_v29 = vmax.f32 %v654_v12, %v655_v21  ;;  %v180_v30 = vpop.f32.mrf.mxu0 }
  0xcc   :  { %342 = vst.msk [vmem:[#allocation2 + $0x14] sm:$0x1] %vm336_vm6, %v265_v22  ;;  %v214_v31 = vmax.f32 %v180_v30, 0.0  ;;  %v4723_v32 = vsel %vm756_vm7, %v743_v13, -inf  ;;  %v765_v4 = vsel %vm756_vm7, %v742_v58, -inf }
  0xcd   :  { %471 = vst.msk [vmem:[#allocation2 + $0x15] sm:$0x1] %vm336_vm6, %v395_v23  ;;  %v269_v34 = vrot.slane %v268_v26, 2  ;;  %v399_v35 = vrot.slane %v398_v27, 2  ;;  %v528_v36 = vrot.slane %v527_v28, 2  ;;  %v657_v37 = vrot.slane %v656_v29, 2 }
  0xce   :  { %600 = vst.msk [vmem:[#allocation2 + $0x16] sm:$0x1] %vm336_vm6, %v524_v24  ;;  %v273_v38 = vsel %vm223_vm2, %v214_v31, -inf  ;;  %v403_v39 = vsel %vm353_vm3, %v214_v31, -inf  ;;  %v532_v40 = vsel %vm482_vm4, %v214_v31, -inf  ;;  %v661_v41 = vsel %vm611_vm5, %v214_v31, -inf }
  0xcf   :  { %729 = vst.msk [vmem:[#allocation2 + $0x17] sm:$0x1] %vm336_vm6, %v653_v25  ;;  %v270_v42 = vmax.f32 %v268_v26, %v269_v34  ;;  %v400_v43 = vmax.f32 %v398_v27, %v399_v35  ;;  %v529_v44 = vmax.f32 %v527_v28, %v528_v36  ;;  %v658_v45 = vmax.f32 %v656_v29, %v657_v37  ;;  %v744_v15 = vld [vmem:[#allocation2 + $0x10] sm:$0xf] }
  0xd0   :  { %v274_v46 = vrot.slane %v273_v38, 4  ;;  %v404_v47 = vrot.slane %v403_v39, 4  ;;  %v533_v48 = vrot.slane %v532_v40, 4  ;;  %v662_v49 = vrot.slane %v661_v41, 4 }
  0xd1   :  { %v271_v50 = vrot.slane %v270_v42, 1  ;;  %v401_v51 = vrot.slane %v400_v43, 1  ;;  %v530_v52 = vrot.slane %v529_v44, 1  ;;  %v659_v53 = vrot.slane %v658_v45, 1 }
  0xd2   :  { %v275_v54 = vmax.f32 %v273_v38, %v274_v46  ;;  %v405_v55 = vmax.f32 %v403_v39, %v404_v47  ;;  %v534_v56 = vmax.f32 %v532_v40, %v533_v48  ;;  %v663_v57 = vmax.f32 %v661_v41, %v662_v49  ;;  %v4755_v38 = vld [vmem:[%s6000_s22] sm:$0xff] }
  0xd3   :  { %v272_v59 = vmax.f32 %v270_v42, %v271_v50  ;;  %v402_v60 = vmax.f32 %v400_v43, %v401_v51  ;;  %v531_v61 = vmax.f32 %v529_v44, %v530_v52  ;;  %v660_v62 = vmax.f32 %v658_v45, %v659_v53  ;;  %v183_v63 = vpop.f32.mrf.mxu0 }
  0xd4   :  { %v276_v0 = vrot.slane %v275_v54, 2  ;;  %v406_v1 = vrot.slane %v405_v55, 2  ;;  %v535_v2 = vrot.slane %v534_v56, 2  ;;  %v664_v3 = vrot.slane %v663_v57, 2 }
  0xd5   :  { %343 = vst.msk [vmem:[#allocation2 + $0x18] sm:$0x1] %vm336_vm6, %v272_v59  ;;  %v767_v5 = vmax.f32 %v4702_v33, %v4723_v32  ;;  %v215_v6 = vmax.f32 %v183_v63, 0.0  ;;  %v4746_v36 = vsel %vm756_vm7, %v744_v15, -inf }
  0xd6   :  { %472 = vst.msk [vmem:[#allocation2 + $0x19] sm:$0x1] %vm336_vm6, %v402_v60  ;;  %v277_v7 = vmax.f32 %v275_v54, %v276_v0  ;;  %v407_v8 = vmax.f32 %v405_v55, %v406_v1  ;;  %v536_v9 = vmax.f32 %v534_v56, %v535_v2  ;;  %v665_v10 = vmax.f32 %v663_v57, %v664_v3  ;;  %v745_v16 = vld [vmem:[#allocation2 + $0x14] sm:$0xf] }
  0xd7   :  { %601 = vst.msk [vmem:[#allocation2 + $0x1a] sm:$0x1] %vm336_vm6, %v531_v61  ;;  %v768_v11 = vmax.f32 %v767_v5, %v765_v4  ;;  %v280_v12 = vsel %vm223_vm2, %v215_v6, -inf  ;;  %v410_v13 = vsel %vm353_vm3, %v215_v6, -inf  ;;  %v539_v14 = vsel %vm482_vm4, %v215_v6, -inf }
  0xd8   :  { %730 = vst.msk [vmem:[#allocation2 + $0x1b] sm:$0x1] %vm336_vm6, %v660_v62  ;;  %v278_v33 = vrot.slane %v277_v7, 1  ;;  %v408_v17 = vrot.slane %v407_v8, 1  ;;  %v537_v18 = vrot.slane %v536_v9, 1  ;;  %v666_v19 = vrot.slane %v665_v10, 1 }
  0xd9   :  { %773 = vst.msk [vmem:[#allocation3 + $0x4] sm:$0xf] %vm756_vm7, %v768_v11  ;;  %v281_v20 = vrot.slane %v280_v12, 4  ;;  %v411_v21 = vrot.slane %v410_v13, 4  ;;  %v540_v22 = vrot.slane %v539_v14, 4  ;;  %v668_v23 = vsel %vm611_vm5, %v215_v6, -inf }
  0xda   :  { %v279_v24 = vmax.f32 %v277_v7, %v278_v33  ;;  %v409_v25 = vmax.f32 %v407_v8, %v408_v17  ;;  %v538_v26 = vmax.f32 %v536_v9, %v537_v18  ;;  %v667_v27 = vmax.f32 %v665_v10, %v666_v19 }
  0xdb   :  { %v282_v28 = vmax.f32 %v280_v12, %v281_v20  ;;  %v412_v29 = vmax.f32 %v410_v13, %v411_v21  ;;  %v541_v30 = vmax.f32 %v539_v14, %v540_v22  ;;  %v669_v31 = vrot.slane %v668_v23, 4  ;;  %v186_v34 = vpop.f32.mrf.mxu0 }
  0xdc   :  { %344 = vst.msk [vmem:[#allocation2 + $0x1c] sm:$0x1] %vm336_vm6, %v279_v24  ;;  %v216_v35 = vmax.f32 %v186_v34, 0.0  ;;  %v4749_v37 = vsel %vm756_vm7, %v745_v16, -inf }
  0xdd   :  { %473 = vst.msk [vmem:[#allocation2 + $0x1d] sm:$0x1] %vm336_vm6, %v409_v25  ;;  %v283_v39 = vrot.slane %v282_v28, 2  ;;  %v413_v40 = vrot.slane %v412_v29, 2  ;;  %v542_v41 = vrot.slane %v541_v30, 2  ;;  %v670_v42 = vmax.f32 %v668_v23, %v669_v31 }
  0xde   :  { %602 = vst.msk [vmem:[#allocation2 + $0x1e] sm:$0x1] %vm336_vm6, %v538_v26  ;;  %v287_v43 = vsel %vm223_vm2, %v216_v35, -inf  ;;  %v417_v44 = vsel %vm353_vm3, %v216_v35, -inf  ;;  %v546_v45 = vsel %vm482_vm4, %v216_v35, -inf  ;;  %v675_v46 = vsel %vm611_vm5, %v216_v35, -inf }
  0xdf   :  { %731 = vst.msk [vmem:[#allocation2 + $0x1f] sm:$0x1] %vm336_vm6, %v667_v27  ;;  %v284_v47 = vmax.f32 %v282_v28, %v283_v39  ;;  %v414_v48 = vmax.f32 %v412_v29, %v413_v40  ;;  %v543_v49 = vmax.f32 %v541_v30, %v542_v41  ;;  %v671_v50 = vrot.slane %v670_v42, 2  ;;  %v746_v0 = vld [vmem:[#allocation2 + $0x18] sm:$0xf] }
  0xe0   :  { %v795_v51 = vld [vmem:[#allocation3] sm:$0xff]  ;;  %v288_v52 = vrot.slane %v287_v43, 4  ;;  %v418_v53 = vrot.slane %v417_v44, 4  ;;  %v547_v54 = vrot.slane %v546_v45, 4  ;;  %v676_v55 = vrot.slane %v675_v46, 4 }
  0xe1   :  { %v4764_v56 = vadd.f32 %v4755_v38, %v795_v51  ;;  %v285_v57 = vrot.slane %v284_v47, 1  ;;  %v415_v58 = vrot.slane %v414_v48, 1  ;;  %v544_v59 = vrot.slane %v543_v49, 1 }
  0xe2   :  { %v672_v60 = vmax.f32 %v670_v42, %v671_v50  ;;  %v289_v61 = vmax.f32 %v287_v43, %v288_v52  ;;  %v419_v62 = vmax.f32 %v417_v44, %v418_v53  ;;  %v548_v63 = vmax.f32 %v546_v45, %v547_v54 }
  0xe3   :  { %v808_v1 = vsel %vm807_vm8, %v4764_v56, 0.0  ;;  %v286_v2 = vmax.f32 %v284_v47, %v285_v57  ;;  %v416_v3 = vmax.f32 %v414_v48, %v415_v58  ;;  %v545_v4 = vmax.f32 %v543_v49, %v544_v59  ;;  %v189_v5 = vpop.f32.mrf.mxu0 }
  0xe4   :  { %809 = vadd.xlane.f32.xlu0 %v808_v1  ;;  %v673_v6 = vrot.slane %v672_v60, 1  ;;  %v290_v7 = vrot.slane %v289_v61, 2  ;;  %v420_v8 = vrot.slane %v419_v62, 2  ;;  %v549_v9 = vrot.slane %v548_v63, 2 }
  0xe5   :  { %345 = vst.msk [vmem:[#allocation2 + $0x20] sm:$0x1] %vm336_vm6, %v286_v2  ;;  %v677_v10 = vmax.f32 %v675_v46, %v676_v55  ;;  %v217_v11 = vmax.f32 %v189_v5, 0.0  ;;  %v777_v12 = vmax.f32 %v4723_v32, %v4749_v37  ;;  %v4772_v13 = vsel %vm756_vm7, %v746_v0, -inf }
  0xe6   :  { %474 = vst.msk [vmem:[#allocation2 + $0x21] sm:$0x1] %vm336_vm6, %v416_v3  ;;  %v674_v14 = vmax.f32 %v672_v60, %v673_v6  ;;  %v291_v15 = vmax.f32 %v289_v61, %v290_v7  ;;  %v421_v16 = vmax.f32 %v419_v62, %v420_v8  ;;  %v550_v33 = vmax.f32 %v548_v63, %v549_v9  ;;  %v747_v28 = vld [vmem:[#allocation2 + $0x1c] sm:$0xf] }
  0xe7   :  { %603 = vst.msk [vmem:[#allocation2 + $0x22] sm:$0x1] %vm336_vm6, %v545_v4  ;;  %v678_v17 = vrot.slane %v677_v10, 2  ;;  %v294_v18 = vsel %vm223_vm2, %v217_v11, -inf  ;;  %v424_v19 = vsel %vm353_vm3, %v217_v11, -inf  ;;  %v553_v20 = vsel %vm482_vm4, %v217_v11, -inf }
  0xe8   :  { %732 = vst.msk [vmem:[#allocation2 + $0x23] sm:$0x1] %vm336_vm6, %v674_v14  ;;  %v292_v32 = vrot.slane %v291_v15, 1  ;;  %v422_v21 = vrot.slane %v421_v16, 1  ;;  %v551_v22 = vrot.slane %v550_v33, 1  ;;  %v295_v23 = vrot.slane %v294_v18, 4 }
  0xe9   :  { %v679_v24 = vmax.f32 %v677_v10, %v678_v17  ;;  %v425_v25 = vrot.slane %v424_v19, 4  ;;  %v554_v26 = vrot.slane %v553_v20, 4  ;;  %v682_v27 = vsel %vm611_vm5, %v217_v11, -inf }
  0xea   :  { %v293_v29 = vmax.f32 %v291_v15, %v292_v32  ;;  %v423_v30 = vmax.f32 %v421_v16, %v422_v21  ;;  %v552_v31 = vmax.f32 %v550_v33, %v551_v22  ;;  %v296_v34 = vmax.f32 %v294_v18, %v295_v23 }
  0xeb   :  { %v680_v35 = vrot.slane %v679_v24, 1  ;;  %v426_v39 = vmax.f32 %v424_v19, %v425_v25  ;;  %v555_v40 = vmax.f32 %v553_v20, %v554_v26  ;;  %v683_v41 = vrot.slane %v682_v27, 4  ;;  %v192_v42 = vpop.f32.mrf.mxu0 }
  0xec   :  { %346 = vst.msk [vmem:[#allocation2 + $0x24] sm:$0x1] %vm336_vm6, %v293_v29  ;;  %v297_v43 = vrot.slane %v296_v34, 2  ;;  %v218_v44 = vmax.f32 %v192_v42, 0.0  ;;  %v778_v45 = vmax.f32 %v777_v12, %v4746_v36  ;;  %v786_v46 = vsel %vm756_vm7, %v747_v28, -inf }
  0xed   :  { %475 = vst.msk [vmem:[#allocation2 + $0x25] sm:$0x1] %vm336_vm6, %v423_v30  ;;  %v681_v47 = vmax.f32 %v679_v24, %v680_v35  ;;  %v427_v48 = vrot.slane %v426_v39, 2  ;;  %v556_v49 = vrot.slane %v555_v40, 2  ;;  %v684_v50 = vmax.f32 %v682_v27, %v683_v41 }
  0xee   :  { %604 = vst.msk [vmem:[#allocation2 + $0x26] sm:$0x1] %vm336_vm6, %v552_v31  ;;  %v298_v51 = vmax.f32 %v296_v34, %v297_v43  ;;  %v301_v52 = vsel %vm223_vm2, %v218_v44, -inf  ;;  %v431_v53 = vsel %vm353_vm3, %v218_v44, -inf  ;;  %v560_v54 = vsel %vm482_vm4, %v218_v44, -inf }
  0xef   :  { %733 = vst.msk [vmem:[#allocation2 + $0x27] sm:$0x1] %vm336_vm6, %v681_v47  ;;  %v428_v36 = vmax.f32 %v426_v39, %v427_v48  ;;  %v557_v55 = vmax.f32 %v555_v40, %v556_v49  ;;  %v685_v57 = vrot.slane %v684_v50, 2  ;;  %v302_v58 = vrot.slane %v301_v52, 4  ;;  %v748_v7 = vld [vmem:[#allocation2 + $0x20] sm:$0xf] }
  0xf0   :  { %v299_v59 = vrot.slane %v298_v51, 1  ;;  %v432_v60 = vrot.slane %v431_v53, 4  ;;  %v561_v61 = vrot.slane %v560_v54, 4  ;;  %v689_v62 = vsel %vm611_vm5, %v218_v44, -inf  ;;  %783 = vst.msk [vmem:[#allocation3 + $0x8] sm:$0xf] %vm756_vm7, %v778_v45 }
  0xf1   :  { %v429_v63 = vrot.slane %v428_v36, 1  ;;  %v558_v0 = vrot.slane %v557_v55, 1  ;;  %v686_v1 = vmax.f32 %v684_v50, %v685_v57  ;;  %v303_v2 = vmax.f32 %v301_v52, %v302_v58 }
  0xf2   :  { %v300_v3 = vmax.f32 %v298_v51, %v299_v59  ;;  %v433_v4 = vmax.f32 %v431_v53, %v432_v60  ;;  %v562_v5 = vmax.f32 %v560_v54, %v561_v61  ;;  %v690_v6 = vrot.slane %v689_v62, 4  ;;  %v4814_v53 = vld [vmem:[%s6000_s22 + $0x8] sm:$0xff]  ;;  %s6002_s22 = sld [smem:[#allocation12_spill]] }
  0xf3   :  { %v430_v8 = vmax.f32 %v428_v36, %v429_v63  ;;  %v559_v9 = vmax.f32 %v557_v55, %v558_v0  ;;  %v687_v10 = vrot.slane %v686_v1, 1  ;;  %v304_v11 = vrot.slane %v303_v2, 2  ;;  %v195_v12 = vpop.f32.mrf.mxu0 }
  0xf4   :  { %347 = vst.msk [vmem:[#allocation2 + $0x28] sm:$0x1] %vm336_vm6, %v300_v3  ;;  %v434_v14 = vrot.slane %v433_v4, 2  ;;  %v563_v15 = vrot.slane %v562_v5, 2  ;;  %v691_v16 = vmax.f32 %v689_v62, %v690_v6  ;;  %v787_v33 = vmax.f32 %v4749_v37, %v786_v46 }
  0xf5   :  { %476 = vst.msk [vmem:[#allocation2 + $0x29] sm:$0x1] %vm336_vm6, %v430_v8  ;;  %v688_v17 = vmax.f32 %v686_v1, %v687_v10  ;;  %v305_v18 = vmax.f32 %v303_v2, %v304_v11  ;;  %v219_v19 = vmax.f32 %v195_v12, 0.0  ;;  %v760_v20 = vsel %vm756_vm7, %v748_v7, -inf }
  0xf6   :  { %605 = vst.msk [vmem:[#allocation2 + $0x2a] sm:$0x1] %vm336_vm6, %v559_v9  ;;  %v435_v32 = vmax.f32 %v433_v4, %v434_v14  ;;  %v564_v21 = vmax.f32 %v562_v5, %v563_v15  ;;  %v692_v22 = vrot.slane %v691_v16, 2  ;;  %v788_v23 = vmax.f32 %v787_v33, %v4772_v13  ;;  %v749_v24 = vld [vmem:[#allocation2 + $0x24] sm:$0xf] }
  0xf7   :  { %734 = vst.msk [vmem:[#allocation2 + $0x2b] sm:$0x1] %vm336_vm6, %v688_v17  ;;  %v306_v25 = vrot.slane %v305_v18, 1  ;;  %v308_v37 = vsel %vm223_vm2, %v219_v19, -inf  ;;  %v438_v26 = vsel %vm353_vm3, %v219_v19, -inf  ;;  %v567_v27 = vsel %vm482_vm4, %v219_v19, -inf }
  0xf8   :  { %v436_v28 = vrot.slane %v435_v32, 1  ;;  %v565_v29 = vrot.slane %v564_v21, 1  ;;  %v693_v30 = vmax.f32 %v691_v16, %v692_v22  ;;  %793 = vst.msk [vmem:[#allocation3 + $0xc] sm:$0xf] %vm756_vm7, %v788_v23  ;;  %v309_v31 = vrot.slane %v308_v37, 4 }
  0xf9   :  { %v307_v34 = vmax.f32 %v305_v18, %v306_v25  ;;  %v439_v35 = vrot.slane %v438_v26, 4  ;;  %v568_v39 = vrot.slane %v567_v27, 4  ;;  %v696_v13 = vsel %vm611_vm5, %v219_v19, -inf }
  0xfa   :  { %v437_v40 = vmax.f32 %v435_v32, %v436_v28  ;;  %v566_v41 = vmax.f32 %v564_v21, %v565_v29  ;;  %v694_v42 = vrot.slane %v693_v30, 1  ;;  %v310_v43 = vmax.f32 %v308_v37, %v309_v31 }
  0xfb   :  { %348 = vst.msk [vmem:[#allocation2 + $0x2c] sm:$0x1] %vm336_vm6, %v307_v34  ;;  %v440_v44 = vmax.f32 %v438_v26, %v439_v35  ;;  %v569_v45 = vmax.f32 %v567_v27, %v568_v39  ;;  %v697_v46 = vrot.slane %v696_v13, 4  ;;  %v198_v47 = vpop.f32.mrf.mxu0  ;;  %v4806_v48 = vsel %vm756_vm7, %v749_v24, -inf }
  0xfc   :  { %477 = vst.msk [vmem:[#allocation2 + $0x2d] sm:$0x1] %vm336_vm6, %v437_v40  ;;  %v695_v49 = vmax.f32 %v693_v30, %v694_v42  ;;  %v311_v50 = vrot.slane %v310_v43, 2  ;;  %v220_v51 = vmax.f32 %v198_v47, 0.0  ;;  %v762_v52 = vmax.f32 %v760_v20, %v4806_v48 }
  0xfd   :  { %606 = vst.msk [vmem:[#allocation2 + $0x2e] sm:$0x1] %vm336_vm6, %v566_v41  ;;  %v441_v54 = vrot.slane %v440_v44, 2  ;;  %v570_v36 = vrot.slane %v569_v45, 2  ;;  %v698_v55 = vmax.f32 %v696_v13, %v697_v46 }
  0xfe   :  { %735 = vst.msk [vmem:[#allocation2 + $0x2f] sm:$0x1] %vm336_vm6, %v695_v49  ;;  %v312_v57 = vmax.f32 %v310_v43, %v311_v50  ;;  %v315_v58 = vsel %vm223_vm2, %v220_v51, -inf  ;;  %v445_v59 = vsel %vm353_vm3, %v220_v51, -inf  ;;  %v574_v60 = vsel %vm482_vm4, %v220_v51, -inf }
  0xff   :  { %v796_v61 = vld [vmem:[#allocation3 + $0x8] sm:$0xff]  ;;  %v442_v62 = vmax.f32 %v440_v44, %v441_v54  ;;  %v571_v63 = vmax.f32 %v569_v45, %v570_v36  ;;  %v699_v0 = vrot.slane %v698_v55, 2  ;;  %v316_v1 = vrot.slane %v315_v58, 4  ;;  %764 = vst.msk [vmem:[#allocation3 + $0x10] sm:$0xf] %vm756_vm7, %v762_v52 }
 0x100   :  { %v4821_v2 = vadd.f32 %v4814_v53, %v796_v61  ;;  %v313_v3 = vrot.slane %v312_v57, 1  ;;  %v446_v4 = vrot.slane %v445_v59, 4  ;;  %v575_v5 = vrot.slane %v574_v60, 4  ;;  %v750_v45 = vld [vmem:[#allocation2 + $0x28] sm:$0xf] }
 0x101   :  { %v443_v6 = vrot.slane %v442_v62, 1  ;;  %v572_v7 = vrot.slane %v571_v63, 1  ;;  %v700_v8 = vmax.f32 %v698_v55, %v699_v0  ;;  %v317_v9 = vmax.f32 %v315_v58, %v316_v1 }
 0x102   :  { %v811_v10 = vsel %vm807_vm8, %v4821_v2, 0.0  ;;  %v314_v11 = vmax.f32 %v312_v57, %v313_v3  ;;  %v447_v12 = vmax.f32 %v445_v59, %v446_v4  ;;  %v576_v14 = vmax.f32 %v574_v60, %v575_v5 }
 0x103   :  { %812 = vadd.xlane.f32.xlu0 %v811_v10  ;;  %v444_v15 = vmax.f32 %v442_v62, %v443_v6  ;;  %v573_v16 = vmax.f32 %v571_v63, %v572_v7  ;;  %v701_v33 = vrot.slane %v700_v8, 1  ;;  %v318_v17 = vrot.slane %v317_v9, 2  ;;  %v201_v18 = vpop.f32.mrf.mxu0 }
 0x104   :  { %349 = vst.msk [vmem:[#allocation2 + $0x30] sm:$0x1] %vm336_vm6, %v314_v11  ;;  %v448_v19 = vrot.slane %v447_v12, 2  ;;  %v577_v20 = vrot.slane %v576_v14, 2  ;;  %v703_v32 = vsel %vm611_vm5, %v220_v51, -inf  ;;  %v221_v21 = vmax.f32 %v201_v18, 0.0 }
 0x105   :  { %478 = vst.msk [vmem:[#allocation2 + $0x31] sm:$0x1] %vm336_vm6, %v444_v15  ;;  %v702_v22 = vmax.f32 %v700_v8, %v701_v33  ;;  %v319_v23 = vmax.f32 %v317_v9, %v318_v17  ;;  %v704_v24 = vrot.slane %v703_v32, 4  ;;  %v751_v40 = vld [vmem:[#allocation2 + $0x2c] sm:$0xf]  ;;  %v769_v60 = vsel %vm756_vm7, %v750_v45, -inf }
 0x106   :  { %607 = vst.msk [vmem:[#allocation2 + $0x32] sm:$0x1] %vm336_vm6, %v573_v16  ;;  %v449_v25 = vmax.f32 %v447_v12, %v448_v19  ;;  %v578_v37 = vmax.f32 %v576_v14, %v577_v20  ;;  %v322_v26 = vsel %vm223_vm2, %v221_v21, -inf  ;;  %v452_v27 = vsel %vm353_vm3, %v221_v21, -inf }
 0x107   :  { %736 = vst.msk [vmem:[#allocation2 + $0x33] sm:$0x1] %vm336_vm6, %v702_v22  ;;  %v320_v28 = vrot.slane %v319_v23, 1  ;;  %v705_v29 = vmax.f32 %v703_v32, %v704_v24  ;;  %v323_v30 = vrot.slane %v322_v26, 4  ;;  %v453_v31 = vrot.slane %v452_v27, 4 }
 0x108   :  { %v450_v34 = vrot.slane %v449_v25, 1  ;;  %v579_v35 = vrot.slane %v578_v37, 1  ;;  %v581_v39 = vsel %vm482_vm4, %v221_v21, -inf  ;;  %v710_v13 = vsel %vm611_vm5, %v221_v21, -inf }
 0x109   :  { %v321_v41 = vmax.f32 %v319_v23, %v320_v28  ;;  %v706_v42 = vrot.slane %v705_v29, 2  ;;  %v324_v43 = vmax.f32 %v322_v26, %v323_v30  ;;  %v454_v44 = vmax.f32 %v452_v27, %v453_v31 }
 0x10a   :  { %v451_v46 = vmax.f32 %v449_v25, %v450_v34  ;;  %v580_v47 = vmax.f32 %v578_v37, %v579_v35  ;;  %v582_v49 = vrot.slane %v581_v39, 4  ;;  %v711_v50 = vrot.slane %v710_v13, 4 }
 0x10b   :  { %350 = vst.msk [vmem:[#allocation2 + $0x34] sm:$0x1] %vm336_vm6, %v321_v41  ;;  %v707_v51 = vmax.f32 %v705_v29, %v706_v42  ;;  %v325_v52 = vrot.slane %v324_v43, 2  ;;  %v455_v54 = vrot.slane %v454_v44, 2  ;;  %v204_v36 = vpop.f32.mrf.mxu0  ;;  %v4837_v55 = vsel %vm756_vm7, %v751_v40, -inf }
 0x10c   :  { %479 = vst.msk [vmem:[#allocation2 + $0x35] sm:$0x1] %vm336_vm6, %v451_v46  ;;  %v583_v57 = vmax.f32 %v581_v39, %v582_v49  ;;  %v712_v58 = vmax.f32 %v710_v13, %v711_v50  ;;  %v222_v59 = vmax.f32 %v204_v36, 0.0  ;;  %v771_v0 = vmax.f32 %v4806_v48, %v4837_v55 }
 0x10d   :  { %608 = vst.msk [vmem:[#allocation2 + $0x36] sm:$0x1] %vm336_vm6, %v580_v47  ;;  %v708_v61 = vrot.slane %v707_v51, 1  ;;  %v326_v62 = vmax.f32 %v324_v43, %v325_v52  ;;  %v456_v63 = vmax.f32 %v454_v44, %v455_v54 }
 0x10e   :  { %v584_v1 = vrot.slane %v583_v57, 2  ;;  %v713_v3 = vrot.slane %v712_v58, 2  ;;  %v329_v4 = vsel %vm223_vm2, %v222_v59, -inf  ;;  %v459_v5 = vsel %vm353_vm3, %v222_v59, -inf  ;;  %v752_v39 = vld [vmem:[#allocation2 + $0x30] sm:$0xf] }
 0x10f   :  { %v709_v6 = vmax.f32 %v707_v51, %v708_v61  ;;  %v327_v7 = vrot.slane %v326_v62, 1  ;;  %v457_v8 = vrot.slane %v456_v63, 1  ;;  %v330_v9 = vrot.slane %v329_v4, 4 }
 0x110   :  { %v585_v10 = vmax.f32 %v583_v57, %v584_v1  ;;  %v714_v11 = vmax.f32 %v712_v58, %v713_v3  ;;  %v460_v12 = vrot.slane %v459_v5, 4  ;;  %v588_v14 = vsel %vm482_vm4, %v222_v59, -inf }
 0x111   :  { %737 = vst.msk [vmem:[#allocation2 + $0x37] sm:$0x1] %vm336_vm6, %v709_v6  ;;  %v328_v15 = vmax.f32 %v326_v62, %v327_v7  ;;  %v458_v16 = vmax.f32 %v456_v63, %v457_v8  ;;  %v331_v48 = vmax.f32 %v329_v4, %v330_v9  ;;  %v589_v33 = vrot.slane %v588_v14, 4 }
 0x112   :  { %v586_v17 = vrot.slane %v585_v10, 1  ;;  %v715_v18 = vrot.slane %v714_v11, 1  ;;  %v461_v19 = vmax.f32 %v459_v5, %v460_v12  ;;  %v717_v20 = vsel %vm611_vm5, %v222_v59, -inf }
 0x113   :  { %351 = vst.msk [vmem:[#allocation2 + $0x38] sm:$0x1] %vm336_vm6, %v328_v15  ;;  %v332_v32 = vrot.slane %v331_v48, 2  ;;  %v590_v21 = vmax.f32 %v588_v14, %v589_v33  ;;  %v718_v22 = vrot.slane %v717_v20, 4  ;;  %v772_v23 = vmax.f32 %v771_v0, %v769_v60 }
 0x114   :  { %480 = vst.msk [vmem:[#allocation2 + $0x39] sm:$0x1] %vm336_vm6, %v458_v16  ;;  %v587_v24 = vmax.f32 %v585_v10, %v586_v17  ;;  %v716_v25 = vmax.f32 %v714_v11, %v715_v18  ;;  %v462_v37 = vrot.slane %v461_v19, 2  ;;  %v779_v49 = vsel %vm756_vm7, %v752_v39, -inf }
 0x115   :  { %v333_v26 = vmax.f32 %v331_v48, %v332_v32  ;;  %v591_v27 = vrot.slane %v590_v21, 2  ;;  %v719_v28 = vmax.f32 %v717_v20, %v718_v22  ;;  %774 = vst.msk [vmem:[#allocation3 + $0x14] sm:$0xf] %vm756_vm7, %v772_v23  ;;  %v4471_v0 = vmov 32.0  }
 0x116   :  { %609 = vst.msk [vmem:[#allocation2 + $0x3a] sm:$0x1] %vm336_vm6, %v587_v24  ;;  %v463_v29 = vmax.f32 %v461_v19, %v462_v37  ;;  %4247 = vrcp.f32 %v4471_v0  ;;  %v919_v37 = vld [vmem:[%s5970_s5 + $0x10] sm:$0xff] }
 0x117   :  { %738 = vst.msk [vmem:[#allocation2 + $0x3b] sm:$0x1] %vm336_vm6, %v716_v25  ;;  %v334_v30 = vrot.slane %v333_v26, 1  ;;  %v592_v31 = vmax.f32 %v590_v21, %v591_v27  ;;  %v720_v34 = vrot.slane %v719_v28, 2  ;;  %v920_v25 = vld [vmem:[%s5970_s5 + $0x18] sm:$0xff]  ;;  %v917_v27 = vld [vmem:[%s5970_s5] sm:$0xff] }
 0x118   :  { %v464_v35 = vrot.slane %v463_v29, 1  ;;  %v753_v13 = vld [vmem:[#allocation2 + $0x34] sm:$0xf]  ;;  %945 = vmatpush.msra.mxu1 %v920_v25 }
 0x119   :  { %v335_v40 = vmax.f32 %v333_v26, %v334_v30  ;;  %v593_v41 = vrot.slane %v592_v31, 1  ;;  %v721_v42 = vmax.f32 %v719_v28, %v720_v34  ;;  %v780_v43 = vsel %vm756_vm7, %v753_v13, -inf  ;;  %v918_v26 = vld [vmem:[%s5970_s5 + $0x8] sm:$0xff] }
 0x11a   :  { %v465_v44 = vmax.f32 %v463_v29, %v464_v35  ;;  %v781_v45 = vmax.f32 %v4837_v55, %v780_v43  ;;  %946 = vmatpush.msra.mxu1 %v919_v37 }
 0x11b   :  { %352 = vst.msk [vmem:[#allocation2 + $0x3c] sm:$0x1] %vm336_vm6, %v335_v40  ;;  %v594_v46 = vmax.f32 %v592_v31, %v593_v41  ;;  %v722_v47 = vrot.slane %v721_v42, 1  ;;  %v4229_v41 = vld [vmem:[%s6001_s0] ss:$0 sm:$0xff] }
 0x11c   :  { %481 = vst.msk [vmem:[#allocation2 + $0x3d] sm:$0x1] %vm336_vm6, %v465_v44  ;;  %v797_v50 = vld [vmem:[#allocation3 + $0x10] sm:$0xff]  ;;  %v782_v51 = vmax.f32 %v781_v45, %v779_v49  ;;  %v4248_v1 = vpop.eup %4247  ;;  %947 = vmatpush.msra.mxu1 %v918_v26  ;;  %v4230_v44 = vld [vmem:[%s6002_s22] ss:$0 sm:$0xff] }
 0x11d   :  { %610 = vst.msk [vmem:[#allocation2 + $0x3e] sm:$0x1] %vm336_vm6, %v594_v46  ;;  %v723_v52 = vmax.f32 %v721_v42, %v722_v47  ;;  %v4861_v54 = vadd.f32 %v4755_v38, %v797_v50  ;;  %v821_v3 = vmul.f32 32.0, %v4248_v1  ;;  %vm825_vm9 = vweird.f32 %v4248_v1 }
 0x11e   :  { %784 = vst.msk [vmem:[#allocation3 + $0x18] sm:$0xf] %vm756_vm7, %v782_v51  ;;  %v754_v55 = vld [vmem:[#allocation2 + $0x38] sm:$0xf]  ;;  %948 = vmatpush.msra.mxu1 %v917_v27 }
 0x11f   :  { %739 = vst.msk [vmem:[#allocation2 + $0x3f] sm:$0x1] %vm336_vm6, %v723_v52  ;;  %v814_v36 = vsel %vm807_vm8, %v4861_v54, 0.0  ;;  %v789_v60 = vsel %vm756_vm7, %v754_v55, -inf  ;;  %v822_v4 = vsub.f32 1.0, %v821_v3  ;;  %vm1022_vm6 = vcmask 64512  }
 0x120   :  { %815 = vadd.xlane.f32.xlu1 %v814_v36 }
 0x121   :  { %v823_v5 = vmul.f32 %v4248_v1, %v822_v4 }
 0x123   :  { %v824_v6 = vadd.f32 %v4248_v1, %v823_v5 }
 0x125   :  { %v4875_v7 = vsel %vm825_vm9, %v4248_v1, %v824_v6 }
 0x126   :  { %v755_v57 = vld [vmem:[#allocation2 + $0x3c] sm:$0xf] }
 0x127   :  { %v790_v58 = vsel %vm756_vm7, %v755_v57, -inf }
 0x128   :  { %v791_v59 = vmax.f32 %v780_v43, %v790_v58 }
 0x12a   :  { %v792_v61 = vmax.f32 %v791_v59, %v789_v60 }
 0x12c   :  { %794 = vst.msk [vmem:[#allocation3 + $0x1c] sm:$0xf] %vm756_vm7, %v792_v61  ;;  %vm1315_vm7 = vcmask 130048  }
 0x133   :  { %v798_v38 = vld [vmem:[#allocation3 + $0x18] sm:$0xff] }
 0x134   :  { %v4871_v62 = vadd.f32 %v4814_v53, %v798_v38 }
 0x136   :  { %v817_v63 = vsel %vm807_vm8, %v4871_v62, 0.0 }
 0x137   :  { %818 = vadd.xlane.f32.xlu1 %v817_v63 }
 0x157   :  { %v810_v8 = vpop.xlane.xlu0 %809 }
 0x158   :  { %v827_v9 = vmul.f32 %v4875_v7, %v810_v8 }
 0x15a   :  { %v831_v53 = vsub.f32 %v4764_v56, %v827_v9 }
 0x15c   :  { %v835_v10 = vmul.f32 %v831_v53, %v831_v53 }
 0x15e   :  { %v839_v11 = vsel %vm807_vm8, %v835_v10, 0.0 }
 0x15f   :  { %840 = vadd.xlane.f32.xlu2 %v839_v11 }
 0x176   :  { %v813_v12 = vpop.xlane.xlu0 %812 }
 0x177   :  { %v828_v14 = vmul.f32 %v4875_v7, %v813_v12 }
 0x179   :  { %v832_v15 = vsub.f32 %v4821_v2, %v828_v14 }
 0x17b   :  { %v836_v16 = vmul.f32 %v832_v15, %v832_v15 }
 0x17d   :  { %v842_v48 = vsel %vm807_vm8, %v836_v16, 0.0 }
 0x17e   :  { %843 = vadd.xlane.f32.xlu2 %v842_v48 }
 0x193   :  { %v816_v33 = vpop.xlane.xlu1 %815 }
 0x194   :  { %v829_v17 = vmul.f32 %v4875_v7, %v816_v33 }
 0x196   :  { %v4885_v18 = vsub.f32 %v4861_v54, %v829_v17 }
 0x198   :  { %v837_v19 = vmul.f32 %v4885_v18, %v4885_v18 }
 0x19a   :  { %v845_v20 = vsel %vm807_vm8, %v837_v19, 0.0 }
 0x19b   :  { %846 = vadd.xlane.f32.xlu0 %v845_v20 }
 0x1aa   :  { %v819_v32 = vpop.xlane.xlu1 %818 }
 0x1ab   :  { %v830_v21 = vmul.f32 %v4875_v7, %v819_v32 }
 0x1ad   :  { %v4892_v22 = vsub.f32 %v4871_v62, %v830_v21 }
 0x1af   :  { %v838_v23 = vmul.f32 %v4892_v22, %v4892_v22 }
 0x1b1   :  { %v848_v24 = vsel %vm807_vm8, %v838_v23, 0.0 }
 0x1b2   :  { %849 = vadd.xlane.f32.xlu1 %v848_v24 }
 0x1d2   :  { %v841_v28 = vpop.xlane.xlu2 %840 }
 0x1d3   :  { %v851_v29 = vmul.f32 %v841_v28, %v4875_v7 }
 0x1d5   :  { %v855_v30 = vadd.f32 1e-05, %v851_v29 }
 0x1d7   :  { %4249 = vrsqrt.f32 %v855_v30  ;;  %vm865_vm11 = vweird.f32 %v855_v30 }
 0x1dd   :  { %v4250_v31 = vpop.eup %4249 }
 0x1de   :  { %v860_v34 = vmul.f32 %v4250_v31, %v855_v30  ;;  %vm866_vm10 = vweird.f32 %v4250_v31 }
 0x1df   :  { %vm867_vm12 = vmor %vm865_vm11, %vm866_vm10 }
 0x1e0   :  { %v861_v35 = vmul.f32 %v4250_v31, %v860_v34 }
 0x1e2   :  { %v862_v39 = vmul.f32 0.5, %v861_v35 }
 0x1e4   :  { %v863_v13 = vsub.f32 1.5, %v862_v39 }
 0x1e6   :  { %v864_v40 = vmul.f32 %v4250_v31, %v863_v13 }
 0x1e8   :  { %v868_v42 = vsel %vm867_vm12, %v4250_v31, %v864_v40 }
 0x1e9   :  { %v899_v43 = vmul.f32 %v868_v42, %v831_v53 }
 0x1eb   :  { %v906_v45 = vmul.f32 %v4229_v41, %v899_v43 }
 0x1ed   :  { %v913_v46 = vadd.f32 %v4230_v44, %v906_v45 }
 0x1ef   :  { %3949 = vmatmul.msk.f32.vlgmr.msra.gmra.mxu1 %vm807_vm8, %v913_v46 }
 0x1f1   :  { %v844_v47 = vpop.xlane.xlu2 %843 }
 0x1f2   :  { %v852_v49 = vmul.f32 %v844_v47, %v4875_v7 }
 0x1f4   :  { %v856_v50 = vadd.f32 1e-05, %v852_v49 }
 0x1f6   :  { %4251 = vrsqrt.f32 %v856_v50  ;;  %vm875_vm14 = vweird.f32 %v856_v50 }
 0x1fc   :  { %v4252_v51 = vpop.eup %4251 }
 0x1fd   :  { %v870_v52 = vmul.f32 %v4252_v51, %v856_v50  ;;  %vm876_vm13 = vweird.f32 %v4252_v51 }
 0x1fe   :  { %vm877_vm15 = vmor %vm875_vm14, %vm876_vm13 }
 0x1ff   :  { %v871_v36 = vmul.f32 %v4252_v51, %v870_v52 }
 0x201   :  { %v872_v55 = vmul.f32 0.5, %v871_v36 }
 0x203   :  { %v873_v57 = vsub.f32 1.5, %v872_v55 }
 0x205   :  { %v874_v58 = vmul.f32 %v4252_v51, %v873_v57 }
 0x207   :  { %v878_v59 = vsel %vm877_vm15, %v4252_v51, %v874_v58 }
 0x208   :  { %v900_v60 = vmul.f32 %v878_v59, %v832_v15 }
 0x20a   :  { %v907_v61 = vmul.f32 %v4229_v41, %v900_v60 }
 0x20c   :  { %v914_v38 = vadd.f32 %v4230_v44, %v907_v61 }
 0x20e   :  { %3950 = vmatmul.msk.f32.gmra.mxu1 %vm807_vm8, %v914_v38  ;;  %v847_v63 = vpop.xlane.xlu0 %846 }
 0x20f   :  { %v853_v0 = vmul.f32 %v847_v63, %v4875_v7 }
 0x211   :  { %v857_v1 = vadd.f32 1e-05, %v853_v0 }
 0x213   :  { %4253 = vrsqrt.f32 %v857_v1  ;;  %vm885_vm1 = vweird.f32 %v857_v1 }
 0x219   :  { %v4254_v3 = vpop.eup %4253 }
 0x21a   :  { %v880_v4 = vmul.f32 %v4254_v3, %v857_v1  ;;  %vm886_vm0 = vweird.f32 %v4254_v3 }
 0x21b   :  { %vm887_vm2 = vmor %vm885_vm1, %vm886_vm0 }
 0x21c   :  { %v881_v5 = vmul.f32 %v4254_v3, %v880_v4 }
 0x21e   :  { %v882_v6 = vmul.f32 0.5, %v881_v5 }
 0x220   :  { %v883_v8 = vsub.f32 1.5, %v882_v6 }
 0x222   :  { %v884_v9 = vmul.f32 %v4254_v3, %v883_v8 }
 0x224   :  { %v888_v53 = vsel %vm887_vm2, %v4254_v3, %v884_v9 }
 0x225   :  { %v901_v10 = vmul.f32 %v888_v53, %v4885_v18  ;;  %v850_v11 = vpop.xlane.xlu1 %849 }
 0x226   :  { %v854_v12 = vmul.f32 %v850_v11, %v4875_v7 }
 0x227   :  { %v908_v14 = vmul.f32 %v4229_v41, %v901_v10 }
 0x228   :  { %v858_v15 = vadd.f32 1e-05, %v854_v12 }
 0x229   :  { %v915_v16 = vadd.f32 %v4230_v44, %v908_v14 }
 0x22a   :  { %4255 = vrsqrt.f32 %v858_v15  ;;  %vm895_vm4 = vweird.f32 %v858_v15 }
 0x22b   :  { %3951 = vmatmul.msk.f32.gmra.mxu1 %vm807_vm8, %v915_v16 }
 0x230   :  { %v4256_v48 = vpop.eup %4255 }
 0x231   :  { %v890_v33 = vmul.f32 %v4256_v48, %v858_v15  ;;  %vm896_vm3 = vweird.f32 %v4256_v48 }
 0x232   :  { %vm897_vm5 = vmor %vm895_vm4, %vm896_vm3 }
 0x233   :  { %v891_v17 = vmul.f32 %v4256_v48, %v890_v33 }
 0x235   :  { %v892_v19 = vmul.f32 0.5, %v891_v17 }
 0x237   :  { %v893_v20 = vsub.f32 1.5, %v892_v19 }
 0x239   :  { %v894_v32 = vmul.f32 %v4256_v48, %v893_v20 }
 0x23b   :  { %v898_v21 = vsel %vm897_vm5, %v4256_v48, %v894_v32  ;;  %vm2165_vm5 = vcmask 523264  }
 0x23c   :  { %v902_v18 = vmul.f32 %v898_v21, %v4892_v22 }
 0x23e   :  { %v909_v23 = vmul.f32 %v4229_v41, %v902_v18 }
 0x240   :  { %v916_v24 = vadd.f32 %v4230_v44, %v909_v23 }
 0x242   :  { %3952 = vmatmul.msk.f32.gmra.mxu1 %vm807_vm8, %v916_v24 }
 0x26c   :  { %v4925_v25 = vpop.f32.mrf.mxu1 }
 0x26d   :  { %v1002_v42 = vmul.f32 0.35355338, %v4925_v25 }
 0x28b   :  { %v4927_v37 = vpop.f32.mrf.mxu1 }
 0x28c   :  { %968 = vrot.lane.b32.xlu1 %v4927_v37, %s4472_s23  ;;  %v1003_v46 = vmul.f32 0.35355338, %v4927_v37  ;;  %v4146_v50 = vpack.i.bf16 %v4925_v25, %v4927_v37 }
 0x294   :  { %978 = vrot.lane.b32.xlu1 %v4925_v25, %s4473_s24 }
 0x2a8   :  { %v4933_v26 = vpop.f32.mrf.mxu1 }
 0x2a9   :  { %970 = vrot.lane.b32.xlu0 %v4933_v26, %s4472_s23  ;;  %v1004_v45 = vmul.f32 0.35355338, %v4933_v26 }
 0x2b1   :  { %966 = vrot.lane.b32.xlu0 %v4925_v25, %s4472_s23 }
 0x2b9   :  { %990 = vrot.lane.b32.xlu0 %v4925_v25, %s4474_s2 }
 0x2bf   :  { %v4941_v22 = vpop.f32.mrf.mxu1 }
 0x2c0   :  { %1058 = vrot.lane.b32.xlu1 %v4941_v22, %s4475_s25  ;;  %972 = vrot.lane.b32.xlu2 %v4941_v22, %s4472_s23  ;;  %v1005_v49 = vmul.f32 0.35355338, %v4941_v22  ;;  %v4151_v63 = vpack.i.bf16 %v4933_v26, %v4941_v22 }
 0x2c1   :  { %1018 = vrot.lane.b32.xlu0 %v4925_v25, %s4475_s25 }
 0x2c8   :  { %984 = vrot.lane.b32.xlu1 %v4941_v22, %s4473_s24  ;;  %980 = vrot.lane.b32.xlu2 %v4927_v37, %s4473_s24 }
 0x2d0   :  { %992 = vrot.lane.b32.xlu2 %v4927_v37, %s4474_s2 }
 0x2d8   :  { %1020 = vrot.lane.b32.xlu2 %v4927_v37, %s4475_s25 }
 0x2e0   :  { %1056 = vrot.lane.b32.xlu2 %v4933_v26, %s4475_s25 }
 0x2e8   :  { %982 = vrot.lane.b32.xlu2 %v4933_v26, %s4473_s24 }
 0x2f0   :  { %994 = vrot.lane.b32.xlu2 %v4933_v26, %s4474_s2 }
 0x2fe   :  { %v4965_v29 = vpop.permute.xlu1 %968 }
 0x2ff   :  { %v1007_v4 = vmul.f32 0.35355338, %v4965_v29 }
 0x306   :  { %v4977_v34 = vpop.permute.xlu1 %978 }
 0x307   :  { %v1010_v8 = vmul.f32 0.35355338, %v4977_v34 }
 0x31a   :  { %v973_v27 = vpop.permute.xlu2 %972 }
 0x31b   :  { %v971_v28 = vpop.permute.xlu0 %970  ;;  %1132 = vrot.lane.b32.xlu0 %v973_v27, %s4475_s25  ;;  %v1009_v61 = vmul.f32 0.35355338, %v973_v27 }
 0x31c   :  { %1130 = vrot.lane.b32.xlu1 %v971_v28, %s4475_s25  ;;  %v4156_v52 = vpack.i.bf16 %v971_v28, %v973_v27  ;;  %v1008_v57 = vmul.f32 0.35355338, %v971_v28 }
 0x322   :  { %v4967_v30 = vpop.permute.xlu2 %980 }
 0x323   :  { %v4969_v31 = vpop.permute.xlu0 %966  ;;  %996 = vrot.lane.b32.xlu0 %v4941_v22, %s4474_s2  ;;  %v1011_v9 = vmul.f32 0.35355338, %v4967_v30 }
 0x324   :  { %1093 = vrot.lane.b32.xlu2 %v4969_v31, %s4475_s25  ;;  %1095 = vrot.lane.b32.xlu1 %v4965_v29, %s4475_s25  ;;  %v1006_v38 = vmul.f32 0.35355338, %v4969_v31 }
 0x32a   :  { %v4979_v35 = vpop.permute.xlu2 %992 }
 0x32b   :  { %v4981_v39 = vpop.permute.xlu0 %990  ;;  %1169 = vrot.lane.b32.xlu0 %v4967_v30, %s4475_s25  ;;  %v1015_v53 = vmul.f32 0.35355338, %v4979_v35 }
 0x32c   :  { %1241 = vrot.lane.b32.xlu2 %v4981_v39, %s4475_s25  ;;  %1243 = vrot.lane.b32.xlu1 %v4979_v35, %s4475_s25  ;;  %v1014_v5 = vmul.f32 0.35355338, %v4981_v39 }
 0x332   :  { %v1021_v13 = vpop.permute.xlu2 %1020  ;;  %v1059_v40 = vpop.permute.xlu1 %1058 }
 0x333   :  { %3953 = vmatpush.xpose.msk.msra.mxu2 %vm1022_vm6, %v1021_v13  ;;  %1167 = vrot.lane.b32.xlu0 %v4977_v34, %s4475_s25  ;;  %v1019_v41 = vpop.permute.xlu0 %1018 }
 0x334   :  { %3957 = vmatpush.xpose.msk.msra.mxu3 %vm1022_vm6, %v1059_v40 }
 0x337   :  { %3954 = vmatpush.xpose.msk.msra.mxu2 %vm1022_vm6, %v1019_v41 }
 0x33a   :  { %3955 = vmatmul.msk.f32.vlgmr.msra.gmra.mxu2 %vm1022_vm6, %v1002_v42  ;;  %v1057_v43 = vpop.permute.xlu2 %1056  ;;  %v4996_v44 = vpop.permute.xlu1 %984 }
 0x33b   :  { %3958 = vmatpush.xpose.msk.msra.mxu3 %vm1022_vm6, %v1057_v43  ;;  %1206 = vrot.lane.b32.xlu1 %v4996_v44, %s4475_s25  ;;  %v1013_v17 = vmul.f32 0.35355338, %v4996_v44 }
 0x33e   :  { %3959 = vmatmul.msk.f32.vlgmr.msra.gmra.mxu3 %vm1022_vm6, %v1004_v45 }
 0x342   :  { %3956 = vmatmul.msk.f32.gmra.mxu2 %vm1022_vm6, %v1003_v46  ;;  %v5005_v47 = vpop.permute.xlu2 %982 }
 0x343   :  { %1204 = vrot.lane.b32.xlu0 %v5005_v47, %s4475_s25  ;;  %v1012_v12 = vmul.f32 0.35355338, %v5005_v47 }
 0x346   :  { %3960 = vmatmul.msk.f32.gmra.mxu3 %vm1022_vm6, %v1005_v49 }
 0x34a   :  { %v5013_v51 = vpop.permute.xlu2 %994 }
 0x34b   :  { %4147 = vrot.lane.b32.xlu0 %v4146_v50, %s5991_s3  ;;  %1278 = vrot.lane.b32.xlu1 %v5013_v51, %s4475_s25  ;;  %v1016_v27 = vmul.f32 0.35355338, %v5013_v51 }
 0x353   :  { %4157 = vrot.lane.b32.xlu1 %v4156_v52, %s5991_s3 }
 0x37e   :  { %v1094_v60 = vpop.permute.xlu2 %1093 }
 0x386   :  { %v1242_v3 = vpop.permute.xlu2 %1241 }
 0x38d   :  { %v1133_v36 = vpop.permute.xlu0 %1132 }
 0x38e   :  { %v1131_v55 = vpop.permute.xlu1 %1130  ;;  %3965 = vmatpush.xpose.msk.msrb.mxu3 %vm1022_vm6, %v1133_v36 }
 0x392   :  { %3966 = vmatpush.xpose.msk.msrb.mxu3 %vm1022_vm6, %v1131_v55 }
 0x395   :  { %v5021_v58 = vpop.permute.xlu0 %996  ;;  %3967 = vmatmul.msk.f32.vlgmr.msrb.gmra.mxu3 %vm1022_vm6, %v1008_v57 }
 0x396   :  { %v1096_v59 = vpop.permute.xlu1 %1095  ;;  %1280 = vrot.lane.b32.xlu2 %v5021_v58, %s4475_s25  ;;  %v1017_v41 = vmul.f32 0.35355338, %v5021_v58 }
 0x397   :  { %3961 = vmatpush.xpose.msk.msrb.mxu2 %vm1022_vm6, %v1096_v59 }
 0x39b   :  { %3962 = vmatpush.xpose.msk.msrb.mxu2 %vm1022_vm6, %v1094_v60 }
 0x39d   :  { %v1170_v0 = vpop.permute.xlu0 %1169  ;;  %3968 = vmatmul.msk.f32.gmra.mxu3 %vm1022_vm6, %v1009_v61 }
 0x39e   :  { %3963 = vmatmul.msk.f32.vlgmr.msrb.gmra.mxu2 %vm1022_vm6, %v1006_v38  ;;  %v1244_v1 = vpop.permute.xlu1 %1243  ;;  %4152 = vrot.lane.b32.xlu2 %v4151_v63, %s5991_s3 }
 0x39f   :  { %3969 = vmatpush.xpose.msk.msrb.mxu0 %vm1022_vm6, %v1170_v0  ;;  %4135 = vmatpush.xpose.msk.msrb.mxu1 %vm1022_vm6, %v1170_v0 }
 0x3a0   :  { %3977 = vmatpush.xpose.msk.msra.mxu3 %vm1022_vm6, %v1244_v1 }
 0x3a4   :  { %3978 = vmatpush.xpose.msk.msra.mxu3 %vm1022_vm6, %v1242_v3 }
 0x3a5   :  { %v1168_v6 = vpop.permute.xlu0 %1167 }
 0x3a6   :  { %3964 = vmatmul.msk.f32.gmra.mxu2 %vm1022_vm6, %v1007_v4  ;;  %3970 = vmatpush.xpose.msk.msrb.mxu0 %vm1022_vm6, %v1168_v6 }
 0x3a7   :  { %3979 = vmatmul.msk.f32.vlgmr.msra.gmra.mxu3 %vm1022_vm6, %v1014_v5  ;;  %4136 = vmatpush.xpose.msk.msrb.mxu1 %vm1022_vm6, %v1168_v6 }
 0x3a9   :  { %3971 = vmatmul.msk.f32.vlgmr.msrb.gmra.mxu0 %vm1022_vm6, %v1010_v8 }
 0x3aa   :  { %3972 = vmatmul.msk.f32.vlgmr.msrb.gmra.mxu1 %vm1022_vm6, %v1011_v9 }
 0x3ad   :  { %v1207_v10 = vpop.permute.xlu1 %1206 }
 0x3ae   :  { %3973 = vmatpush.xpose.msk.msra.mxu2 %vm1022_vm6, %v1207_v10 }
 0x3af   :  { %3980 = vmatmul.msk.f32.gmra.mxu3 %vm1022_vm6, %v1015_v53 }
 0x3b5   :  { %v1205_v11 = vpop.permute.xlu0 %1204 }
 0x3b6   :  { %3974 = vmatpush.xpose.msk.msra.mxu2 %vm1022_vm6, %v1205_v11  ;;  %v4161_v11 = vpack.i.bf16 %v4977_v34, %v4967_v30 }
 0x3b9   :  { %3975 = vmatmul.msk.f32.vlgmr.msra.gmra.mxu2 %vm1022_vm6, %v1012_v12 }
 0x3bd   :  { %v1050_v14 = vpop.f32.mrf.mxu2  ;;  %v4148_v15 = vpop.permute.xlu0 %4147 }
 0x3be   :  { %v4149_v16 = vunpack.i.l.bf16 %v4148_v15  ;;  %v1279_v48 = vpop.permute.xlu1 %1278  ;;  %v1316_v33 = vsel %vm1315_vm7, %v1050_v14, -inf  ;;  %v4150_v19 = vunpack.i.h.bf16 %v4148_v15 }
 0x3bf   :  { %1317 = vmax.xlane.f32.xlu0 %v1316_v33 }
 0x3c0   :  { %1518 = vmatpush.msrb.mxu2 %v4149_v16 }
 0x3c1   :  { %v5056_v20 = vpop.f32.mrf.mxu3  ;;  %3976 = vmatmul.msk.f32.gmra.mxu2 %vm1022_vm6, %v1013_v17 }
 0x3c2   :  { %1519 = vmatpush.msrb.mxu2 %v4150_v19  ;;  %v1322_v32 = vsel %vm1315_vm7, %v5056_v20, -inf }
 0x3c3   :  { %1323 = vmax.xlane.f32.xlu1 %v1322_v32 }
 0x3c5   :  { %v1053_v21 = vpop.f32.mrf.mxu2 }
 0x3c6   :  { %v4158_v18 = vpop.permute.xlu1 %4157  ;;  %v1319_v23 = vsel %vm1315_vm7, %v1053_v21, -inf }
 0x3c7   :  { %v4159_v24 = vunpack.i.l.bf16 %v4158_v18  ;;  %1320 = vmax.xlane.f32.xlu2 %v1319_v23  ;;  %v4160_v25 = vunpack.i.h.bf16 %v4158_v18 }
 0x3c9   :  { %1623 = vmatpush.msra.mxu2 %v4159_v24  ;;  %v1090_v37 = vpop.f32.mrf.mxu3 }
 0x3ca   :  { %v1325_v26 = vsel %vm1315_vm7, %v1090_v37, -inf }
 0x3cb   :  { %1624 = vmatpush.msra.mxu2 %v4160_v25  ;;  %1326 = vmax.xlane.f32.xlu0 %v1325_v26 }
 0x3f0   :  { %v1281_v22 = vpop.permute.xlu2 %1280 }
 0x3f1   :  { %3981 = vmatpush.xpose.msk.msra.mxu1 %vm1022_vm6, %v1281_v22 }
 0x3f5   :  { %3982 = vmatpush.xpose.msk.msra.mxu1 %vm1022_vm6, %v1279_v48 }
 0x3f8   :  { %v4153_v28 = vpop.permute.xlu2 %4152  ;;  %3983 = vmatmul.msk.f32.vlgmr.msra.gmra.mxu1 %vm1022_vm6, %v1016_v27 }
 0x3f9   :  { %v4154_v13 = vunpack.i.l.bf16 %v4153_v28  ;;  %v4155_v40 = vunpack.i.h.bf16 %v4153_v28 }
 0x3fb   :  { %1553 = vmatpush.msrb.mxu3 %v4154_v13 }
 0x3fd   :  { %1554 = vmatpush.msrb.mxu3 %v4155_v40 }
 0x400   :  { %3984 = vmatmul.msk.f32.gmra.mxu1 %vm1022_vm6, %v1017_v41 }
 0x418   :  { %v5085_v55 = vpop.f32.mrf.mxu3 }
 0x419   :  { %v1334_v9 = vsel %vm1315_vm7, %v5085_v55, -inf }
 0x420   :  { %v5087_v61 = vpop.f32.mrf.mxu3 }
 0x421   :  { %v5069_v42 = vpop.f32.mrf.mxu2  ;;  %v1337_v24 = vsel %vm1315_vm7, %v5087_v61, -inf }
 0x422   :  { %v1328_v43 = vsel %vm1315_vm7, %v5069_v42, -inf }
 0x423   :  { %1329 = vmax.xlane.f32.xlu2 %v1328_v43 }
 0x426   :  { %v5073_v45 = vpop.f32.mrf.mxu0 }
 0x427   :  { %v5075_v46 = vpop.f32.mrf.mxu1  ;;  %v1340_v49 = vsel %vm1315_vm7, %v5073_v45, -inf }
 0x428   :  { %1341 = vmax.xlane.f32.xlu0 %v1340_v49  ;;  %v1343_v50 = vsel %vm1315_vm7, %v5075_v46, -inf }
 0x429   :  { %v5081_v52 = vpop.f32.mrf.mxu2  ;;  %1344 = vmax.xlane.f32.xlu1 %v1343_v50 }
 0x42a   :  { %v1331_v36 = vsel %vm1315_vm7, %v5081_v52, -inf  ;;  %v5093_v4 = vpop.f32.mrf.mxu3 }
 0x42b   :  { %1332 = vmax.xlane.f32.xlu2 %v1331_v36  ;;  %v1352_v8 = vsel %vm1315_vm7, %v5093_v4, -inf }
 0x432   :  { %v1318_v57 = vpop.xlane.xlu0 %1317 }
 0x433   :  { %v1364_v59 = vsub.f32 %v1050_v14, %v1318_v57 }
 0x435   :  { %v1380_v60 = vmul.f32 1.442695, %v1364_v59 }
 0x436   :  { %v1324_v19 = vpop.xlane.xlu1 %1323 }
 0x437   :  { %4257 = vpow2.f32 %v1380_v60  ;;  %v1366_v30 = vsub.f32 %v5056_v20, %v1324_v19 }
 0x439   :  { %v1384_v18 = vmul.f32 1.442695, %v1366_v30 }
 0x43a   :  { %v1321_v38 = vpop.xlane.xlu2 %1320 }
 0x43b   :  { %v1365_v63 = vsub.f32 %v1053_v21, %v1321_v38 }
 0x43c   :  { %v5103_v53 = vpop.f32.mrf.mxu2 }
 0x43d   :  { %v5089_v0 = vpop.eup %4257  ;;  %v1382_v1 = vmul.f32 1.442695, %v1365_v63  ;;  %v1346_v10 = vsel %vm1315_vm7, %v5103_v53, -inf }
 0x43e   :  { %v1412_v3 = vsel %vm1315_vm7, %v5089_v0, 0.0  ;;  %v1327_v15 = vpop.xlane.xlu0 %1326 }
 0x43f   :  { %4259 = vpow2.f32 %v1382_v1  ;;  %1413 = vadd.xlane.f32.xlu0 %v1412_v3  ;;  %v1367_v16 = vsub.f32 %v1090_v37, %v1327_v15  ;;  %v5133_v37 = vpop.f32.mrf.mxu3 }
 0x440   :  { %v1355_v22 = vsel %vm1315_vm7, %v5133_v37, -inf }
 0x441   :  { %v1386_v17 = vmul.f32 1.442695, %v1367_v16 }
 0x443   :  { %4261 = vpow2.f32 %v1386_v17 }
 0x444   :  { %v5109_v12 = vpop.f32.mrf.mxu2  ;;  %4263 = vpow2.f32 %v1384_v18 }
 0x445   :  { %v5095_v5 = vpop.eup %4259  ;;  %v1349_v14 = vsel %vm1315_vm7, %v5109_v12, -inf }
 0x446   :  { %v1415_v6 = vsel %vm1315_vm7, %v5095_v5, 0.0 }
 0x447   :  { %1416 = vadd.xlane.f32.xlu2 %v1415_v6  ;;  %1353 = vmax.xlane.f32.xlu0 %v1352_v8 }
 0x449   :  { %v5123_v21 = vpop.eup %4261 }
 0x44a   :  { %v1421_v23 = vsel %vm1315_vm7, %v5123_v21, 0.0  ;;  %v5129_v25 = vpop.eup %4263 }
 0x44b   :  { %v1418_v20 = vsel %vm1315_vm7, %v5129_v25, 0.0 }
 0x44f   :  { %1335 = vmax.xlane.f32.xlu2 %v1334_v9 }
 0x457   :  { %1347 = vmax.xlane.f32.xlu2 %v1346_v10 }
 0x45b   :  { %4162 = vrot.lane.b32.xlu0 %v4161_v11, %s5991_s3 }
 0x45f   :  { %1350 = vmax.xlane.f32.xlu2 %v1349_v14 }
 0x475   :  { %v5114_v48 = vpop.f32.mrf.mxu1 }
 0x476   :  { %v1358_v33 = vsel %vm1315_vm7, %v5114_v48, -inf }
 0x477   :  { %1359 = vmax.xlane.f32.xlu1 %v1358_v33 }
 0x47d   :  { %v5119_v34 = vpop.f32.mrf.mxu1 }
 0x47e   :  { %v1361_v32 = vsel %vm1315_vm7, %v5119_v34, -inf }
 0x47f   :  { %1362 = vmax.xlane.f32.xlu1 %v1361_v32 }
 0x485   :  { %1422 = vadd.xlane.f32.xlu0 %v1421_v23 }
 0x487   :  { %1338 = vmax.xlane.f32.xlu1 %v1337_v24 }
 0x48f   :  { %1419 = vadd.xlane.f32.xlu1 %v1418_v20 }
 0x496   :  { %v1330_v26 = vpop.xlane.xlu2 %1329 }
 0x497   :  { %v1368_v27 = vsub.f32 %v5069_v42, %v1330_v26  ;;  %1356 = vmax.xlane.f32.xlu1 %v1355_v22  ;;  %v4171_v26 = vpack.i.bf16 %v4981_v39, %v4979_v35 }
 0x499   :  { %v1388_v28 = vmul.f32 1.442695, %v1368_v27 }
 0x49b   :  { %4265 = vpow2.f32 %v1388_v28  ;;  %v1342_v13 = vpop.xlane.xlu0 %1341 }
 0x49c   :  { %v1372_v40 = vsub.f32 %v5073_v45, %v1342_v13  ;;  %v1345_v41 = vpop.xlane.xlu1 %1344 }
 0x49d   :  { %v1373_v43 = vsub.f32 %v5075_v46, %v1345_v41 }
 0x49e   :  { %v1396_v49 = vmul.f32 1.442695, %v1372_v40  ;;  %v1333_v60 = vpop.xlane.xlu2 %1332 }
 0x49f   :  { %v1398_v50 = vmul.f32 1.442695, %v1373_v43 }
 0x4a0   :  { %4267 = vpow2.f32 %v1396_v49 }
 0x4a1   :  { %v5140_v36 = vpop.eup %4265  ;;  %4269 = vpow2.f32 %v1398_v50 }
 0x4a2   :  { %v1424_v57 = vsel %vm1315_vm7, %v5140_v36, 0.0 }
 0x4a3   :  { %1425 = vadd.xlane.f32.xlu0 %v1424_v57 }
 0x4a6   :  { %v5144_v42 = vpop.eup %4267 }
 0x4a7   :  { %v5146_v59 = vpop.eup %4269  ;;  %v1436_v45 = vsel %vm1315_vm7, %v5144_v42, 0.0 }
 0x4a8   :  { %1437 = vadd.xlane.f32.xlu1 %v1436_v45  ;;  %v1439_v46 = vsel %vm1315_vm7, %v5146_v59, 0.0  ;;  %v4176_v45 = vpack.i.bf16 %v5005_v47, %v4996_v44 }
 0x4a9   :  { %1440 = vadd.xlane.f32.xlu2 %v1439_v46 }
 0x4b2   :  { %v1414_v38 = vpop.xlane.xlu0 %1413 }
 0x4b3   :  { %4271 = vrcp.f32 %v1414_v38  ;;  %v4181_v38 = vpack.i.bf16 %v5013_v51, %v5021_v58 }
 0x4b9   :  { %v4272_v63 = vpop.eup %4271 }
 0x4ba   :  { %v1476_v1 = vmul.f32 %v4272_v63, %v5089_v0  ;;  %v1417_v3 = vpop.xlane.xlu2 %1416  ;;  %v1354_v6 = vpop.xlane.xlu0 %1353  ;;  %v1369_v0 = vsub.f32 %v5081_v52, %v1333_v60 }
 0x4bb   :  { %4273 = vrcp.f32 %v1417_v3  ;;  %v1376_v8 = vsub.f32 %v5093_v4, %v1354_v6  ;;  %v4166_v3 = vpack.i.bf16 %v4969_v31, %v4965_v29 }
 0x4bc   :  { %3985 = vmatmul.msk.f32.vlgmr.msrb.gmra.mxu2 %vm1315_vm7, %v1476_v1  ;;  %v1390_v17 = vmul.f32 1.442695, %v1369_v0 }
 0x4bd   :  { %v1404_v9 = vmul.f32 1.442695, %v1376_v8 }
 0x4bf   :  { %4275 = vpow2.f32 %v1404_v9 }
 0x4c1   :  { %v4274_v10 = vpop.eup %4273 }
 0x4c2   :  { %v1336_v11 = vpop.xlane.xlu2 %1335  ;;  %v1477_v14 = vmul.f32 %v4274_v10, %v5095_v5 }
 0x4c3   :  { %v1370_v15 = vsub.f32 %v5085_v55, %v1336_v11 }
 0x4c4   :  { %3986 = vmatmul.msk.f32.gmra.mxu2 %vm1315_vm7, %v1477_v14 }
 0x4c5   :  { %v5158_v16 = vpop.eup %4275  ;;  %v1392_v33 = vmul.f32 1.442695, %v1370_v15 }
 0x4c6   :  { %v1448_v4 = vsel %vm1315_vm7, %v5158_v16, 0.0 }
 0x4c7   :  { %4277 = vpow2.f32 %v1392_v33  ;;  %1449 = vadd.xlane.f32.xlu0 %v1448_v4 }
 0x4c8   :  { %4279 = vpow2.f32 %v1390_v17 }
 0x4ca   :  { %v1348_v35 = vpop.xlane.xlu2 %1347 }
 0x4cb   :  { %v1374_v50 = vsub.f32 %v5103_v53, %v1348_v35 }
 0x4cd   :  { %v5163_v19 = vpop.eup %4277  ;;  %v4163_v30 = vpop.permute.xlu0 %4162  ;;  %v1400_v46 = vmul.f32 1.442695, %v1374_v50 }
 0x4ce   :  { %v4164_v5 = vunpack.i.l.bf16 %v4163_v30  ;;  %v1430_v55 = vsel %vm1315_vm7, %v5163_v19, 0.0  ;;  %v4165_v32 = vunpack.i.h.bf16 %v4163_v30  ;;  %v5167_v52 = vpop.eup %4279 }
 0x4cf   :  { %1431 = vadd.xlane.f32.xlu1 %v1430_v55  ;;  %v1427_v18 = vsel %vm1315_vm7, %v5167_v52, 0.0 }
 0x4d0   :  { %1658 = vmatpush.msra.mxu3 %v4164_v5 }
 0x4d2   :  { %1659 = vmatpush.msra.mxu3 %v4165_v32  ;;  %v1351_v47 = vpop.xlane.xlu2 %1350 }
 0x4d3   :  { %v1375_v11 = vsub.f32 %v5109_v12, %v1351_v47 }
 0x4d5   :  { %v1402_v29 = vmul.f32 1.442695, %v1375_v11 }
 0x4d7   :  { %1428 = vadd.xlane.f32.xlu1 %v1427_v18 }
 0x4ea   :  { %v1360_v23 = vpop.xlane.xlu1 %1359 }
 0x4eb   :  { %v1378_v24 = vsub.f32 %v5114_v48, %v1360_v23 }
 0x4ed   :  { %v1408_v20 = vmul.f32 1.442695, %v1378_v24 }
 0x4ef   :  { %4281 = vpow2.f32 %v1408_v20 }
 0x4f0   :  { %4172 = vrot.lane.b32.xlu1 %v4171_v26, %s5991_s3 }
 0x4f2   :  { %v1363_v22 = vpop.xlane.xlu1 %1362 }
 0x4f5   :  { %v5175_v27 = vpop.eup %4281 }
 0x4f6   :  { %v1454_v28 = vsel %vm1315_vm7, %v5175_v27, 0.0 }
 0x4f7   :  { %1455 = vadd.xlane.f32.xlu0 %v1454_v28 }
 0x4f8   :  { %v1423_v39 = vpop.xlane.xlu0 %1422 }
 0x4fa   :  { %v1339_v13 = vpop.xlane.xlu1 %1338 }
 0x4fb   :  { %v1371_v40 = vsub.f32 %v5087_v61, %v1339_v13 }
 0x4fd   :  { %v1394_v41 = vmul.f32 1.442695, %v1371_v40 }
 0x4ff   :  { %4283 = vpow2.f32 %v1394_v41 }
 0x502   :  { %v1420_v48 = vpop.xlane.xlu1 %1419 }
 0x503   :  { %4285 = vrcp.f32 %v1420_v48 }
 0x504   :  { %4287 = vrcp.f32 %v1423_v39 }
 0x505   :  { %v5180_v43 = vpop.eup %4283  ;;  %4289 = vpow2.f32 %v1400_v46 }
 0x506   :  { %v1433_v49 = vsel %vm1315_vm7, %v5180_v43, 0.0 }
 0x507   :  { %1434 = vadd.xlane.f32.xlu2 %v1433_v49 }
 0x509   :  { %v4286_v57 = vpop.eup %4285 }
 0x50a   :  { %v1478_v61 = vmul.f32 %v4286_v57, %v5129_v25  ;;  %v4288_v60 = vpop.eup %4287  ;;  %v1357_v53 = vpop.xlane.xlu1 %1356 }
 0x50b   :  { %4177 = vrot.lane.b32.xlu0 %v4176_v45, %s5991_s3  ;;  %v1479_v63 = vmul.f32 %v4288_v60, %v5123_v21  ;;  %v5195_v44 = vpop.eup %4289  ;;  %v1377_v9 = vsub.f32 %v5133_v37, %v1357_v53 }
 0x50c   :  { %3987 = vmatmul.msk.f32.vlgmr.msrb.gmra.mxu3 %vm1315_vm7, %v1478_v61  ;;  %v1442_v25 = vsel %vm1315_vm7, %v5195_v44, 0.0 }
 0x50d   :  { %v1406_v10 = vmul.f32 1.442695, %v1377_v9 }
 0x513   :  { %4182 = vrot.lane.b32.xlu0 %v4181_v38, %s5991_s3 }
 0x514   :  { %3988 = vmatmul.msk.f32.gmra.mxu3 %vm1315_vm7, %v1479_v63  ;;  %v1774_v63 = vld [vmem:[%s5971_s6 + $0x10] sm:$0xff] }
 0x516   :  { %v1426_v55 = vpop.xlane.xlu0 %1425 }
 0x51a   :  { %1443 = vadd.xlane.f32.xlu1 %v1442_v25 }
 0x51b   :  { %v1438_v1 = vpop.xlane.xlu1 %1437 }
 0x51c   :  { %4291 = vrcp.f32 %v1438_v1  ;;  %v1441_v51 = vpop.xlane.xlu2 %1440 }
 0x51d   :  { %4293 = vrcp.f32 %v1441_v51 }
 0x51e   :  { %4295 = vpow2.f32 %v1406_v10 }
 0x51f   :  { %4167 = vrot.lane.b32.xlu2 %v4166_v3, %s5991_s3 }
 0x522   :  { %v4292_v58 = vpop.eup %4291 }
 0x523   :  { %v1484_v21 = vmul.f32 %v4292_v58, %v5144_v42  ;;  %v4294_v6 = vpop.eup %4293  ;;  %v1379_v42 = vsub.f32 %v5119_v34, %v1363_v22 }
 0x524   :  { %v1485_v8 = vmul.f32 %v4294_v6, %v5146_v59  ;;  %v5208_v14 = vpop.eup %4295 }
 0x525   :  { %3993 = vmatmul.msk.f32.vlgmr.msra.gmra.mxu3 %vm1315_vm7, %v1484_v21  ;;  %v1451_v15 = vsel %vm1315_vm7, %v5208_v14, 0.0  ;;  %v1410_v0 = vmul.f32 1.442695, %v1379_v42 }
 0x52d   :  { %3994 = vmatmul.msk.f32.gmra.mxu3 %vm1315_vm7, %v1485_v8 }
 0x53a   :  { %v1450_v32 = vpop.xlane.xlu0 %1449 }
 0x53f   :  { %v1521_v21 = vpop.f32.mrf.mxu2 }
 0x542   :  { %v1432_v31 = vpop.xlane.xlu1 %1431 }
 0x543   :  { %4297 = vrcp.f32 %v1432_v31  ;;  %v1775_v31 = vld [vmem:[%s5971_s6 + $0x18] sm:$0xff] }
 0x544   :  { %4299 = vpow2.f32 %v1402_v29  ;;  %v1773_v29 = vld [vmem:[%s5971_s6 + $0x8] sm:$0xff] }
 0x545   :  { %4301 = vpow2.f32 %v1410_v0 }
 0x547   :  { %v1524_v10 = vpop.f32.mrf.mxu2 }
 0x548   :  { %1452 = vadd.xlane.f32.xlu2 %v1451_v15 }
 0x549   :  { %v4298_v59 = vpop.eup %4297 }
 0x54a   :  { %v1482_v37 = vmul.f32 %v4298_v59, %v5163_v19  ;;  %v5214_v33 = vpop.eup %4299  ;;  %v1429_v17 = vpop.xlane.xlu1 %1428 }
 0x54b   :  { %v1445_v12 = vsel %vm1315_vm7, %v5214_v33, 0.0  ;;  %v5219_v4 = vpop.eup %4301 }
 0x54c   :  { %3991 = vmatmul.msk.f32.vlgmr.msra.gmra.mxu2 %vm1315_vm7, %v1482_v37  ;;  %v1457_v34 = vsel %vm1315_vm7, %v5219_v4, 0.0 }
 0x550   :  { %1446 = vadd.xlane.f32.xlu2 %v1445_v12 }
 0x558   :  { %1458 = vadd.xlane.f32.xlu2 %v1457_v34 }
 0x562   :  { %v4173_v30 = vpop.permute.xlu1 %4172 }
 0x563   :  { %v4174_v5 = vunpack.i.l.bf16 %v4173_v30  ;;  %v4175_v19 = vunpack.i.h.bf16 %v4173_v30 }
 0x565   :  { %1728 = vmatpush.msrb.mxu2 %v4174_v5  ;;  %v4231_v5 = vld [vmem:[%s5972_s7] ss:$0 sm:$0xff] }
 0x567   :  { %1729 = vmatpush.msrb.mxu2 %v4175_v19 }
 0x569   :  { %1852 = vmatpush.msra.mxu2 %v1773_v29 }
 0x56a   :  { %v1456_v18 = vpop.xlane.xlu0 %1455 }
 0x57a   :  { %v1435_v23 = vpop.xlane.xlu2 %1434 }
 0x57b   :  { %4303 = vrcp.f32 %v1435_v23 }
 0x57c   :  { %4305 = vrcp.f32 %v1426_v55 }
 0x57d   :  { %v4178_v24 = vpop.permute.xlu0 %4177  ;;  %4307 = vrcp.f32 %v1456_v18 }
 0x57e   :  { %4309 = vrcp.f32 %v1450_v32  ;;  %v4179_v50 = vunpack.i.l.bf16 %v4178_v24  ;;  %v4180_v45 = vunpack.i.h.bf16 %v4178_v24 }
 0x57f   :  { %4311 = vrcp.f32 %v1429_v17 }
 0x581   :  { %v4304_v20 = vpop.eup %4303 }
 0x582   :  { %v4168_v26 = vpop.permute.xlu2 %4167  ;;  %v1483_v22 = vmul.f32 %v4304_v20, %v5180_v43  ;;  %v4306_v28 = vpop.eup %4305 }
 0x583   :  { %v4169_v13 = vunpack.i.l.bf16 %v4168_v26  ;;  %v4170_v40 = vunpack.i.h.bf16 %v4168_v26  ;;  %v4308_v48 = vpop.eup %4307  ;;  %v1480_v35 = vmul.f32 %v4306_v28, %v5140_v36 }
 0x584   :  { %3992 = vmatmul.msk.f32.gmra.mxu2 %vm1315_vm7, %v1483_v22  ;;  %v4310_v49 = vpop.eup %4309  ;;  %v1490_v43 = vmul.f32 %v4308_v48, %v5175_v27 }
 0x585   :  { %v4183_v41 = vpop.permute.xlu0 %4182  ;;  %1588 = vmatpush.msrb.mxu1 %v4169_v13  ;;  %v1488_v61 = vmul.f32 %v4310_v49, %v5158_v16  ;;  %v4312_v46 = vpop.eup %4311  ;;  %v1772_v16 = vld [vmem:[%s5971_s6] sm:$0xff] }
 0x586   :  { %v4184_v39 = vunpack.i.l.bf16 %v4183_v41  ;;  %v4185_v57 = vunpack.i.h.bf16 %v4183_v41  ;;  %v1481_v60 = vmul.f32 %v4312_v46, %v5167_v52 }
 0x587   :  { %1589 = vmatpush.msrb.mxu1 %v4170_v40 }
 0x588   :  { %3989 = vmatmul.msk.f32.vlgmr.msrb.gmra.mxu1 %vm1315_vm7, %v1480_v35  ;;  %1763 = vmatpush.msrb.mxu3 %v4184_v39 }
 0x589   :  { %1693 = vmatpush.msra.mxu1 %v4179_v50 }
 0x58a   :  { %1764 = vmatpush.msrb.mxu3 %v4185_v57 }
 0x58b   :  { %1694 = vmatpush.msra.mxu1 %v4180_v45  ;;  %3999 = vmatmul.msk.f32.vlgmr.msrb.gmra.mxu3 %vm1315_vm7, %v1490_v43 }
 0x58c   :  { %3997 = vmatmul.msk.f32.vlgmr.msrb.gmra.mxu2 %vm1315_vm7, %v1488_v61  ;;  %1897 = vmatpush.msra.mxu3 %v1774_v63 }
 0x58d   :  { %v1444_v36 = vpop.xlane.xlu1 %1443  ;;  %1804 = vmatpush.msrb.mxu1 %v1772_v16 }
 0x58e   :  { %4313 = vrcp.f32 %v1444_v36 }
 0x590   :  { %3990 = vmatmul.msk.f32.gmra.mxu1 %vm1315_vm7, %v1481_v60 }
 0x594   :  { %v4314_v38 = vpop.eup %4313 }
 0x595   :  { %v1486_v27 = vmul.f32 %v4314_v38, %v5195_v44  ;;  %v1556_v44 = vpop.f32.mrf.mxu3 }
 0x598   :  { %3995 = vmatmul.msk.f32.vlgmr.msra.gmra.mxu1 %vm1315_vm7, %v1486_v27 }
 0x599   :  { %1942 = vmatpush.msra.mxu1 %v1775_v31 }
 0x59d   :  { %v1559_v6 = vpop.f32.mrf.mxu3 }
 0x5a8   :  { %v1661_v9 = vpop.f32.mrf.mxu3 }
 0x5b0   :  { %v1664_v11 = vpop.f32.mrf.mxu3 }
 0x5bb   :  { %v1453_v53 = vpop.xlane.xlu2 %1452 }
 0x5bc   :  { %4315 = vrcp.f32 %v1453_v53 }
 0x5c2   :  { %v4316_v52 = vpop.eup %4315 }
 0x5c3   :  { %v1447_v47 = vpop.xlane.xlu2 %1446  ;;  %v1489_v25 = vmul.f32 %v4316_v52, %v5208_v14 }
 0x5c4   :  { %4317 = vrcp.f32 %v1447_v47 }
 0x5c5   :  { %3998 = vmatmul.msk.f32.gmra.mxu2 %vm1315_vm7, %v1489_v25 }
 0x5ca   :  { %v4318_v1 = vpop.eup %4317 }
 0x5cb   :  { %v1459_v3 = vpop.xlane.xlu2 %1458  ;;  %v1487_v51 = vmul.f32 %v4318_v1, %v5214_v33 }
 0x5cc   :  { %4319 = vrcp.f32 %v1459_v3 }
 0x5cd   :  { %3996 = vmatmul.msk.f32.gmra.mxu1 %vm1315_vm7, %v1487_v51 }
 0x5cf   :  { %v1626_v14 = vpop.f32.mrf.mxu2 }
 0x5d2   :  { %v4320_v58 = vpop.eup %4319 }
 0x5d3   :  { %v1491_v8 = vmul.f32 %v4320_v58, %v5219_v4 }
 0x5d5   :  { %4000 = vmatmul.msk.f32.gmra.mxu3 %vm1315_vm7, %v1491_v8  ;;  %4001 = vmatmul.msk.f32.vlgmr.msrb.gmra.mxu1 %vm1022_vm6, %v1521_v21 }
 0x5dd   :  { %4002 = vmatmul.msk.f32.gmra.mxu1 %vm1022_vm6, %v1524_v10  ;;  %4009 = vmatmul.msk.f32.vlgmr.msra.gmra.mxu3 %vm1022_vm6, %v1661_v9 }
 0x5e5   :  { %4003 = vmatmul.msk.f32.gmra.mxu1 %vm1022_vm6, %v1556_v44  ;;  %4010 = vmatmul.msk.f32.gmra.mxu3 %vm1022_vm6, %v1664_v11 }
 0x5ed   :  { %4004 = vmatmul.msk.f32.gmra.mxu1 %vm1022_vm6, %v1559_v6 }
 0x605   :  { %v1591_v42 = vpop.f32.mrf.mxu1 }
 0x606   :  { %4005 = vmatmul.msk.f32.vlgmr.msra.gmra.mxu2 %vm1022_vm6, %v1591_v42 }
 0x607   :  { %v1629_v15 = vpop.f32.mrf.mxu2 }
 0x60d   :  { %v1594_v59 = vpop.f32.mrf.mxu1 }
 0x60e   :  { %4006 = vmatmul.msk.f32.gmra.mxu2 %vm1022_vm6, %v1594_v59  ;;  %v1766_v4 = vpop.f32.mrf.mxu3 }
 0x60f   :  { %v1731_v0 = vpop.f32.mrf.mxu2 }
 0x610   :  { %4013 = vmatmul.msk.f32.vlgmr.msra.gmra.mxu1 %vm1022_vm6, %v1731_v0 }
 0x615   :  { %v1696_v37 = vpop.f32.mrf.mxu1 }
 0x616   :  { %4007 = vmatmul.msk.f32.gmra.mxu2 %vm1022_vm6, %v1626_v14  ;;  %4011 = vmatmul.msk.f32.gmra.mxu3 %vm1022_vm6, %v1696_v37 }
 0x61e   :  { %4008 = vmatmul.msk.f32.gmra.mxu2 %vm1022_vm6, %v1629_v15 }
 0x648   :  { %v1734_v33 = vpop.f32.mrf.mxu2 }
 0x649   :  { %4014 = vmatmul.msk.f32.gmra.mxu1 %vm1022_vm6, %v1734_v33 }
 0x64a   :  { %v1699_v12 = vpop.f32.mrf.mxu1 }
 0x64b   :  { %4012 = vmatmul.msk.f32.gmra.mxu3 %vm1022_vm6, %v1699_v12 }
 0x651   :  { %4015 = vmatmul.msk.f32.gmra.mxu1 %vm1022_vm6, %v1766_v4  ;;  %v2071_v4 = vld [vmem:[%s5975_s10 + $0x18] sm:$0xff] }
 0x652   :  { %v1806_v34 = vpop.f32.mrf.mxu1  ;;  %2100 = vmatpush.msrb.mxu2 %v2071_v4  ;;  %v2156_v4 = vld [vmem:[%s5977_s12 + $0x18] sm:$0xff] }
 0x653   :  { %v1821_v23 = vadd.f32 %v4231_v5, %v1806_v34  ;;  %v2070_v34 = vld [vmem:[%s5975_s10 + $0x10] sm:$0xff] }
 0x654   :  { %2101 = vmatpush.msrb.mxu2 %v2070_v34 }
 0x658   :  { %v1769_v17 = vpop.f32.mrf.mxu3 }
 0x659   :  { %4016 = vmatmul.msk.f32.gmra.mxu1 %vm1022_vm6, %v1769_v17  ;;  %v2069_v17 = vld [vmem:[%s5975_s10 + $0x8] sm:$0xff] }
 0x65a   :  { %v1809_v30 = vpop.f32.mrf.mxu1  ;;  %2102 = vmatpush.msrb.mxu2 %v2069_v17  ;;  %v2155_v17 = vld [vmem:[%s5977_s12 + $0x10] sm:$0xff] }
 0x65b   :  { %v1822_v35 = vadd.f32 %v4231_v5, %v1809_v30  ;;  %v2068_v30 = vld [vmem:[%s5975_s10] sm:$0xff] }
 0x65c   :  { %2103 = vmatpush.msrb.mxu2 %v2068_v30 }
 0x660   :  { %v1899_v26 = vpop.f32.mrf.mxu3 }
 0x662   :  { %v1812_v55 = vpop.f32.mrf.mxu1 }
 0x663   :  { %v1823_v19 = vadd.f32 %v4231_v5, %v1812_v55 }
 0x668   :  { %v1902_v49 = vpop.f32.mrf.mxu3 }
 0x66a   :  { %v1815_v32 = vpop.f32.mrf.mxu1 }
 0x66b   :  { %v1824_v18 = vadd.f32 %v4231_v5, %v1815_v32 }
 0x689   :  { %v1854_v24 = vpop.f32.mrf.mxu2 }
 0x68a   :  { %v1866_v20 = vadd.f32 %v1854_v24, %v1821_v23 }
 0x68c   :  { %v1911_v22 = vadd.f32 %v1899_v26, %v1866_v20 }
 0x68d   :  { %v1944_v28 = vpop.f32.mrf.mxu1 }
 0x68e   :  { %v1956_v13 = vadd.f32 %v1944_v28, %v1911_v22  ;;  %v4232_v22 = vld [vmem:[%s5973_s8] ss:$0 sm:$0xff] }
 0x690   :  { %v1960_v40 = vadd.f32 %v1956_v13, %v4764_v56 }
 0x691   :  { %v1857_v48 = vpop.f32.mrf.mxu2 }
 0x692   :  { %v1966_v41 = vsel %vm807_vm8, %v1960_v40, 0.0  ;;  %v1867_v39 = vadd.f32 %v1857_v48, %v1822_v35 }
 0x693   :  { %1967 = vadd.xlane.f32.xlu0 %v1966_v41 }
 0x694   :  { %v1912_v50 = vadd.f32 %v1902_v49, %v1867_v39 }
 0x699   :  { %v1860_v57 = vpop.f32.mrf.mxu2  ;;  %v1905_v36 = vpop.f32.mrf.mxu3 }
 0x69a   :  { %v1868_v61 = vadd.f32 %v1860_v57, %v1823_v19 }
 0x69c   :  { %v1913_v38 = vadd.f32 %v1905_v36, %v1868_v61 }
 0x6a1   :  { %v1863_v16 = vpop.f32.mrf.mxu2 }
 0x6a2   :  { %v1869_v52 = vadd.f32 %v1863_v16, %v1824_v18 }
 0x6c6   :  { %v1947_v43 = vpop.f32.mrf.mxu1 }
 0x6c7   :  { %v1957_v45 = vadd.f32 %v1947_v43, %v1912_v50 }
 0x6c9   :  { %v1961_v46 = vadd.f32 %v1957_v45, %v4821_v2 }
 0x6cb   :  { %v1969_v60 = vsel %vm807_vm8, %v1961_v46, 0.0 }
 0x6cc   :  { %1970 = vadd.xlane.f32.xlu1 %v1969_v60 }
 0x6ce   :  { %v1950_v56 = vpop.f32.mrf.mxu1  ;;  %v1908_v53 = vpop.f32.mrf.mxu3 }
 0x6cf   :  { %v1958_v27 = vadd.f32 %v1950_v56, %v1913_v38  ;;  %v1914_v25 = vadd.f32 %v1908_v53, %v1869_v52 }
 0x6d1   :  { %v1962_v63 = vadd.f32 %v1958_v27, %v4861_v54 }
 0x6d3   :  { %v1972_v47 = vsel %vm807_vm8, %v1962_v63, 0.0 }
 0x6d4   :  { %1973 = vadd.xlane.f32.xlu2 %v1972_v47 }
 0x6d6   :  { %v1953_v44 = vpop.f32.mrf.mxu1 }
 0x6d7   :  { %v1959_v1 = vadd.f32 %v1953_v44, %v1914_v25 }
 0x6d9   :  { %v1963_v2 = vadd.f32 %v1959_v1, %v4871_v62 }
 0x6db   :  { %v1975_v3 = vsel %vm807_vm8, %v1963_v2, 0.0 }
 0x6dc   :  { %1976 = vadd.xlane.f32.xlu1 %v1975_v3 }
 0x706   :  { %v1968_v51 = vpop.xlane.xlu0 %1967 }
 0x707   :  { %v1978_v58 = vmul.f32 %v1968_v51, %v4875_v7 }
 0x709   :  { %v1982_v21 = vsub.f32 %v1960_v40, %v1978_v58  ;;  %v4233_v40 = vld [vmem:[%s5974_s9] ss:$0 sm:$0xff] }
 0x70b   :  { %v1986_v6 = vmul.f32 %v1982_v21, %v1982_v21 }
 0x70d   :  { %v1990_v54 = vsel %vm807_vm8, %v1986_v6, 0.0 }
 0x70e   :  { %1991 = vadd.xlane.f32.xlu2 %v1990_v54 }
 0x73f   :  { %v1971_v8 = vpop.xlane.xlu1 %1970 }
 0x740   :  { %v1979_v9 = vmul.f32 %v1971_v8, %v4875_v7 }
 0x742   :  { %v5283_v10 = vsub.f32 %v1961_v46, %v1979_v9 }
 0x744   :  { %v1987_v11 = vmul.f32 %v5283_v10, %v5283_v10 }
 0x746   :  { %v1993_v62 = vsel %vm807_vm8, %v1987_v11, 0.0 }
 0x747   :  { %v1974_v29 = vpop.xlane.xlu2 %1973  ;;  %1994 = vadd.xlane.f32.xlu1 %v1993_v62 }
 0x748   :  { %v1980_v31 = vmul.f32 %v1974_v29, %v4875_v7 }
 0x74a   :  { %v5289_v14 = vsub.f32 %v1962_v63, %v1980_v31 }
 0x74c   :  { %v1988_v42 = vmul.f32 %v5289_v14, %v5289_v14 }
 0x74e   :  { %v1996_v15 = vsel %vm807_vm8, %v1988_v42, 0.0 }
 0x74f   :  { %1997 = vadd.xlane.f32.xlu2 %v1996_v15  ;;  %v1977_v59 = vpop.xlane.xlu1 %1976 }
 0x750   :  { %v1981_v0 = vmul.f32 %v1977_v59, %v4875_v7 }
 0x752   :  { %v5295_v37 = vsub.f32 %v1963_v2, %v1981_v0  ;;  %v2159_v0 = vld [vmem:[%s5977_s12 + $0x30] sm:$0xff] }
 0x754   :  { %v1989_v33 = vmul.f32 %v5295_v37, %v5295_v37 }
 0x756   :  { %v1999_v12 = vsel %vm807_vm8, %v1989_v33, 0.0  ;;  %v2158_v33 = vld [vmem:[%s5977_s12 + $0x28] sm:$0xff] }
 0x757   :  { %2000 = vadd.xlane.f32.xlu1 %v1999_v12  ;;  %v4234_v12 = vld [vmem:[%s5976_s11] ss:$0 sm:$0xff] }
 0x781   :  { %v1992_v5 = vpop.xlane.xlu2 %1991 }
 0x782   :  { %v2002_v55 = vmul.f32 %v1992_v5, %v4875_v7  ;;  %v2154_v5 = vld [vmem:[%s5977_s12 + $0x8] sm:$0xff] }
 0x784   :  { %v2006_v19 = vadd.f32 1e-05, %v2002_v55 }
 0x786   :  { %4321 = vrsqrt.f32 %v2006_v19  ;;  %vm2016_vm10 = vweird.f32 %v2006_v19 }
 0x78c   :  { %v4322_v32 = vpop.eup %4321 }
 0x78d   :  { %v2011_v18 = vmul.f32 %v4322_v32, %v2006_v19  ;;  %vm2017_vm9 = vweird.f32 %v4322_v32  ;;  %v2153_v19 = vld [vmem:[%s5977_s12] sm:$0xff] }
 0x78e   :  { %vm2018_vm11 = vmor %vm2016_vm10, %vm2017_vm9 }
 0x78f   :  { %v2012_v23 = vmul.f32 %v4322_v32, %v2011_v18 }
 0x791   :  { %v2013_v24 = vmul.f32 0.5, %v2012_v23 }
 0x793   :  { %v2014_v20 = vsub.f32 1.5, %v2013_v24 }
 0x795   :  { %v2015_v26 = vmul.f32 %v4322_v32, %v2014_v20 }
 0x797   :  { %v2019_v28 = vsel %vm2018_vm11, %v4322_v32, %v2015_v26 }
 0x798   :  { %v2050_v13 = vmul.f32 %v2019_v28, %v1982_v21 }
 0x79a   :  { %v2057_v41 = vmul.f32 %v4232_v22, %v2050_v13 }
 0x79c   :  { %v5319_v48 = vadd.f32 %v4233_v40, %v2057_v41 }
 0x79e   :  { %4017 = vmatmul.msk.f32.vlgmr.msrb.gmra.mxu2 %vm807_vm8, %v5319_v48 }
 0x7ba   :  { %v1995_v35 = vpop.xlane.xlu1 %1994 }
 0x7bb   :  { %v2003_v39 = vmul.f32 %v1995_v35, %v4875_v7 }
 0x7bd   :  { %v2007_v49 = vadd.f32 1e-05, %v2003_v39 }
 0x7bf   :  { %4323 = vrsqrt.f32 %v2007_v49  ;;  %vm2026_vm13 = vweird.f32 %v2007_v49 }
 0x7c2   :  { %v1998_v50 = vpop.xlane.xlu2 %1997 }
 0x7c3   :  { %v2004_v57 = vmul.f32 %v1998_v50, %v4875_v7 }
 0x7c5   :  { %v4324_v43 = vpop.eup %4323  ;;  %v2008_v45 = vadd.f32 1e-05, %v2004_v57 }
 0x7c6   :  { %v2021_v61 = vmul.f32 %v4324_v43, %v2007_v49  ;;  %vm2027_vm12 = vweird.f32 %v4324_v43 }
 0x7c7   :  { %4325 = vrsqrt.f32 %v2008_v45  ;;  %vm2028_vm14 = vmor %vm2026_vm13, %vm2027_vm12  ;;  %vm2036_vm0 = vweird.f32 %v2008_v45 }
 0x7c8   :  { %v2022_v46 = vmul.f32 %v4324_v43, %v2021_v61 }
 0x7ca   :  { %v2023_v36 = vmul.f32 0.5, %v2022_v46  ;;  %v2001_v60 = vpop.xlane.xlu1 %2000 }
 0x7cb   :  { %v2005_v38 = vmul.f32 %v2001_v60, %v4875_v7 }
 0x7cc   :  { %v2024_v56 = vsub.f32 1.5, %v2023_v36 }
 0x7cd   :  { %v4326_v27 = vpop.eup %4325  ;;  %v2009_v16 = vadd.f32 1e-05, %v2005_v38 }
 0x7ce   :  { %v2025_v63 = vmul.f32 %v4324_v43, %v2024_v56  ;;  %v2031_v53 = vmul.f32 %v4326_v27, %v2008_v45  ;;  %vm2037_vm15 = vweird.f32 %v4326_v27 }
 0x7cf   :  { %4327 = vrsqrt.f32 %v2009_v16  ;;  %vm2038_vm1 = vmor %vm2036_vm0, %vm2037_vm15  ;;  %vm2046_vm3 = vweird.f32 %v2009_v16 }
 0x7d0   :  { %v2029_v52 = vsel %vm2028_vm14, %v4324_v43, %v2025_v63  ;;  %v2032_v47 = vmul.f32 %v4326_v27, %v2031_v53 }
 0x7d1   :  { %v2051_v25 = vmul.f32 %v2029_v52, %v5283_v10 }
 0x7d2   :  { %v2033_v44 = vmul.f32 0.5, %v2032_v47 }
 0x7d3   :  { %v2058_v1 = vmul.f32 %v4232_v22, %v2051_v25 }
 0x7d4   :  { %v2034_v2 = vsub.f32 1.5, %v2033_v44 }
 0x7d5   :  { %v4328_v3 = vpop.eup %4327  ;;  %v5327_v51 = vadd.f32 %v4233_v40, %v2058_v1 }
 0x7d6   :  { %v2035_v58 = vmul.f32 %v4326_v27, %v2034_v2  ;;  %v2041_v21 = vmul.f32 %v4328_v3, %v2009_v16  ;;  %vm2047_vm2 = vweird.f32 %v4328_v3 }
 0x7d7   :  { %4018 = vmatmul.msk.f32.gmra.mxu2 %vm807_vm8, %v5327_v51  ;;  %vm2048_vm4 = vmor %vm2046_vm3, %vm2047_vm2 }
 0x7d8   :  { %v2039_v6 = vsel %vm2038_vm1, %v4326_v27, %v2035_v58  ;;  %v2042_v54 = vmul.f32 %v4328_v3, %v2041_v21 }
 0x7d9   :  { %v2052_v8 = vmul.f32 %v2039_v6, %v5289_v14  ;;  %v2160_v14 = vld [vmem:[%s5977_s12 + $0x38] sm:$0xff] }
 0x7da   :  { %v2043_v9 = vmul.f32 0.5, %v2042_v54  ;;  %2186 = vmatpush.msrb.mxu3 %v2160_v14 }
 0x7db   :  { %v2059_v10 = vmul.f32 %v4232_v22, %v2052_v8 }
 0x7dc   :  { %v2044_v11 = vsub.f32 1.5, %v2043_v9  ;;  %2187 = vmatpush.msrb.mxu3 %v2159_v0 }
 0x7dd   :  { %v5332_v62 = vadd.f32 %v4233_v40, %v2059_v10  ;;  %v4235_v10 = vld [vmem:[%s5978_s13] ss:$0 sm:$0xff] }
 0x7de   :  { %v2045_v29 = vmul.f32 %v4328_v3, %v2044_v11  ;;  %2188 = vmatpush.msrb.mxu3 %v2158_v33 }
 0x7df   :  { %4019 = vmatmul.msk.f32.gmra.mxu2 %vm807_vm8, %v5332_v62 }
 0x7e0   :  { %v2049_v31 = vsel %vm2048_vm4, %v4328_v3, %v2045_v29 }
 0x7e1   :  { %v2053_v42 = vmul.f32 %v2049_v31, %v5295_v37  ;;  %v2157_v37 = vld [vmem:[%s5977_s12 + $0x20] sm:$0xff] }
 0x7e2   :  { %2189 = vmatpush.msrb.mxu3 %v2157_v37 }
 0x7e3   :  { %v2060_v15 = vmul.f32 %v4232_v22, %v2053_v42 }
 0x7e4   :  { %2190 = vmatpush.msrb.mxu3 %v2156_v4 }
 0x7e5   :  { %v5337_v59 = vadd.f32 %v4233_v40, %v2060_v15 }
 0x7e6   :  { %2191 = vmatpush.msrb.mxu3 %v2155_v17 }
 0x7e7   :  { %4020 = vmatmul.msk.f32.gmra.mxu2 %vm807_vm8, %v5337_v59 }
 0x7e8   :  { %2192 = vmatpush.msrb.mxu3 %v2154_v5 }
 0x7ea   :  { %2193 = vmatpush.msrb.mxu3 %v2153_v19 }
 0x821   :  { %v2105_v34 = vpop.f32.mrf.mxu2 }
 0x822   :  { %v2106_v30 = vadd.f32 %v4234_v12, %v2105_v34 }
 0x824   :  { %v2117_v55 = vmul.f32 %v2106_v30, %v2106_v30 }
 0x826   :  { %v2121_v32 = vmul.f32 %v2117_v55, %v2106_v30 }
 0x828   :  { %v2125_v18 = vmul.f32 0.044715, %v2121_v32 }
 0x82a   :  { %v2129_v23 = vadd.f32 %v2125_v18, %v2106_v30 }
 0x82c   :  { %v2133_v24 = vmul.f32 0.7978846, %v2129_v23 }
 0x82e   :  { %4329 = vtanh.f32 %v2133_v24 }
 0x834   :  { %v4330_v20 = vpop.eup %4329 }
 0x835   :  { %v2141_v26 = vadd.f32 1.0, %v4330_v20 }
 0x837   :  { %v2145_v22 = vmul.f32 0.5, %v2141_v26 }
 0x839   :  { %v2149_v28 = vmul.f32 %v2145_v22, %v2106_v30 }
 0x83b   :  { %4021 = vmatmul.msk.f32.vlgmr.msrb.gmra.mxu3 %vm2165_vm5, %v2149_v28 }
 0x85a   :  { %v2108_v13 = vpop.f32.mrf.mxu2 }
 0x85b   :  { %v2109_v40 = vadd.f32 %v4234_v12, %v2108_v13 }
 0x85d   :  { %v2118_v41 = vmul.f32 %v2109_v40, %v2109_v40 }
 0x85f   :  { %v2122_v35 = vmul.f32 %v2118_v41, %v2109_v40 }
 0x861   :  { %v2126_v39 = vmul.f32 0.044715, %v2122_v35 }
 0x862   :  { %v2111_v49 = vpop.f32.mrf.mxu2 }
 0x863   :  { %v2130_v50 = vadd.f32 %v2126_v39, %v2109_v40  ;;  %v2112_v57 = vadd.f32 %v4234_v12, %v2111_v49 }
 0x865   :  { %v2119_v43 = vmul.f32 %v2112_v57, %v2112_v57  ;;  %v2134_v45 = vmul.f32 0.7978846, %v2130_v50 }
 0x867   :  { %v2123_v61 = vmul.f32 %v2119_v43, %v2112_v57  ;;  %4331 = vtanh.f32 %v2134_v45  ;;  %v4029_v43 = vld [vmem:[%s5970_s5 + $0x30] sm:$0xff]  ;;  %v4028_v45 = vld [vmem:[%s5970_s5 + $0x28] sm:$0xff] }
 0x869   :  { %v2127_v46 = vmul.f32 0.044715, %v2123_v61  ;;  %v4027_v61 = vld [vmem:[%s5970_s5 + $0x20] sm:$0xff] }
 0x86a   :  { %v2114_v36 = vpop.f32.mrf.mxu2 }
 0x86b   :  { %v2131_v60 = vadd.f32 %v2127_v46, %v2112_v57  ;;  %v2115_v38 = vadd.f32 %v4234_v12, %v2114_v36 }
 0x86d   :  { %v4332_v56 = vpop.eup %4331  ;;  %v2120_v27 = vmul.f32 %v2115_v38, %v2115_v38  ;;  %v2135_v16 = vmul.f32 0.7978846, %v2131_v60 }
 0x86e   :  { %v2142_v63 = vadd.f32 1.0, %v4332_v56 }
 0x86f   :  { %v2124_v53 = vmul.f32 %v2120_v27, %v2115_v38  ;;  %4333 = vtanh.f32 %v2135_v16 }
 0x870   :  { %v2146_v52 = vmul.f32 0.5, %v2142_v63 }
 0x871   :  { %v2128_v47 = vmul.f32 0.044715, %v2124_v53 }
 0x872   :  { %v2150_v25 = vmul.f32 %v2146_v52, %v2109_v40  ;;  %v4236_v52 = vld [vmem:[%s6001_s0 + $0x1] ss:$0 sm:$0xff]  ;;  %s6003_s0 = smov 64  }
 0x873   :  { %v2132_v44 = vadd.f32 %v2128_v47, %v2115_v38 }
 0x874   :  { %4022 = vmatmul.msk.f32.gmra.mxu3 %vm2165_vm5, %v2150_v25 }
 0x875   :  { %v4334_v1 = vpop.eup %4333  ;;  %v2136_v2 = vmul.f32 0.7978846, %v2132_v44  ;;  %v4237_v44 = vld [vmem:[%s6002_s22 + $0x1] ss:$0 sm:$0xff] }
 0x876   :  { %v2143_v3 = vadd.f32 1.0, %v4334_v1 }
 0x877   :  { %4335 = vtanh.f32 %v2136_v2 }
 0x878   :  { %v2147_v58 = vmul.f32 0.5, %v2143_v3 }
 0x87a   :  { %v2151_v21 = vmul.f32 %v2147_v58, %v2112_v57  ;;  %v4030_v57 = vld [vmem:[%s5970_s5 + $0x38] sm:$0xff] }
 0x87b   :  { %2346 = vmatpush.msra.mxu0 %v4030_v57 }
 0x87c   :  { %4023 = vmatmul.msk.f32.gmra.mxu3 %vm2165_vm5, %v2151_v21 }
 0x87d   :  { %v4336_v6 = vpop.eup %4335  ;;  %2347 = vmatpush.msra.mxu0 %v4029_v43 }
 0x87e   :  { %v2144_v54 = vadd.f32 1.0, %v4336_v6 }
 0x87f   :  { %2348 = vmatpush.msra.mxu0 %v4028_v45 }
 0x880   :  { %v2148_v8 = vmul.f32 0.5, %v2144_v54 }
 0x881   :  { %2349 = vmatpush.msra.mxu0 %v4027_v61 }
 0x882   :  { %v2152_v9 = vmul.f32 %v2148_v8, %v2115_v38 }
 0x884   :  { %4024 = vmatmul.msk.f32.gmra.mxu3 %vm2165_vm5, %v2152_v9 }
 0x8be   :  { %v2195_v11 = vpop.f32.mrf.mxu3 }
 0x8bf   :  { %v2196_v29 = vadd.f32 %v4235_v10, %v2195_v11 }
 0x8c1   :  { %v5376_v31 = vadd.f32 %v2196_v29, %v5319_v48 }
 0x8c3   :  { %v2215_v42 = vsel %vm807_vm8, %v5376_v31, 0.0 }
 0x8c4   :  { %2216 = vadd.xlane.f32.xlu2 %v2215_v42 }
 0x8f7   :  { %v2198_v15 = vpop.f32.mrf.mxu3 }
 0x8f8   :  { %v2199_v14 = vadd.f32 %v4235_v10, %v2198_v15 }
 0x8fa   :  { %v5381_v0 = vadd.f32 %v2199_v14, %v5327_v51 }
 0x8fc   :  { %v2218_v33 = vsel %vm807_vm8, %v5381_v0, 0.0 }
 0x8fd   :  { %2219 = vadd.xlane.f32.xlu1 %v2218_v33 }
 0x8ff   :  { %v2201_v37 = vpop.f32.mrf.mxu3 }
 0x900   :  { %v2202_v12 = vadd.f32 %v4235_v10, %v2201_v37 }
 0x902   :  { %v5386_v4 = vadd.f32 %v2202_v12, %v5332_v62 }
 0x904   :  { %v2221_v48 = vsel %vm807_vm8, %v5386_v4, 0.0 }
 0x905   :  { %2222 = vadd.xlane.f32.xlu2 %v2221_v48 }
 0x907   :  { %v2204_v34 = vpop.f32.mrf.mxu3 }
 0x908   :  { %v2205_v17 = vadd.f32 %v4235_v10, %v2204_v34 }
 0x90a   :  { %v5391_v30 = vadd.f32 %v2205_v17, %v5337_v59 }
 0x90c   :  { %v2224_v51 = vsel %vm807_vm8, %v5391_v30, 0.0 }
 0x90d   :  { %2225 = vadd.xlane.f32.xlu0 %v2224_v51 }
 0x937   :  { %v2217_v5 = vpop.xlane.xlu2 %2216 }
 0x938   :  { %v2227_v55 = vmul.f32 %v2217_v5, %v4875_v7 }
 0x93a   :  { %v2231_v19 = vsub.f32 %v5376_v31, %v2227_v55 }
 0x93c   :  { %v2235_v62 = vmul.f32 %v2231_v19, %v2231_v19 }
 0x93e   :  { %v2239_v32 = vsel %vm807_vm8, %v2235_v62, 0.0 }
 0x93f   :  { %2240 = vadd.xlane.f32.xlu1 %v2239_v32 }
 0x970   :  { %v2220_v18 = vpop.xlane.xlu1 %2219 }
 0x971   :  { %v2228_v23 = vmul.f32 %v2220_v18, %v4875_v7 }
 0x973   :  { %v5400_v24 = vsub.f32 %v5381_v0, %v2228_v23 }
 0x975   :  { %v2236_v59 = vmul.f32 %v5400_v24, %v5400_v24 }
 0x977   :  { %v2242_v20 = vsel %vm807_vm8, %v2236_v59, 0.0 }
 0x978   :  { %v2223_v26 = vpop.xlane.xlu2 %2222  ;;  %2243 = vadd.xlane.f32.xlu2 %v2242_v20 }
 0x979   :  { %v2229_v22 = vmul.f32 %v2223_v26, %v4875_v7 }
 0x97b   :  { %v5407_v28 = vsub.f32 %v5386_v4, %v2229_v22 }
 0x97d   :  { %v2237_v13 = vmul.f32 %v5407_v28, %v5407_v28 }
 0x97f   :  { %v2245_v40 = vsel %vm807_vm8, %v2237_v13, 0.0 }
 0x980   :  { %2246 = vadd.xlane.f32.xlu0 %v2245_v40  ;;  %v2226_v41 = vpop.xlane.xlu0 %2225 }
 0x981   :  { %v2230_v35 = vmul.f32 %v2226_v41, %v4875_v7 }
 0x983   :  { %v5414_v39 = vsub.f32 %v5391_v30, %v2230_v35 }
 0x985   :  { %v2238_v49 = vmul.f32 %v5414_v39, %v5414_v39 }
 0x987   :  { %v2248_v50 = vsel %vm807_vm8, %v2238_v49, 0.0 }
 0x988   :  { %2249 = vadd.xlane.f32.xlu1 %v2248_v50 }
 0x9b2   :  { %v2241_v46 = vpop.xlane.xlu1 %2240 }
 0x9b3   :  { %v2251_v36 = vmul.f32 %v2241_v46, %v4875_v7 }
 0x9b5   :  { %v2255_v60 = vadd.f32 1e-05, %v2251_v36 }
 0x9b7   :  { %4337 = vrsqrt.f32 %v2255_v60  ;;  %vm2265_vm10 = vweird.f32 %v2255_v60 }
 0x9bd   :  { %v4338_v38 = vpop.eup %4337 }
 0x9be   :  { %v2260_v56 = vmul.f32 %v4338_v38, %v2255_v60  ;;  %vm2266_vm9 = vweird.f32 %v4338_v38 }
 0x9bf   :  { %vm2267_vm11 = vmor %vm2265_vm10, %vm2266_vm9 }
 0x9c0   :  { %v2261_v27 = vmul.f32 %v4338_v38, %v2260_v56 }
 0x9c2   :  { %v2262_v16 = vmul.f32 0.5, %v2261_v27 }
 0x9c4   :  { %v2263_v63 = vsub.f32 1.5, %v2262_v16 }
 0x9c6   :  { %v2264_v53 = vmul.f32 %v4338_v38, %v2263_v63 }
 0x9c8   :  { %v2268_v47 = vsel %vm2267_vm11, %v4338_v38, %v2264_v53 }
 0x9c9   :  { %v2299_v25 = vmul.f32 %v2268_v47, %v2231_v19 }
 0x9cb   :  { %v2306_v1 = vmul.f32 %v4236_v52, %v2299_v25 }
 0x9cd   :  { %v2313_v2 = vadd.f32 %v4237_v44, %v2306_v1 }
 0x9cf   :  { %4031 = vmatmul.msk.f32.vlgmr.msra.gmra.mxu0 %vm807_vm8, %v2313_v2 }
 0x9eb   :  { %v2244_v3 = vpop.xlane.xlu2 %2243 }
 0x9ec   :  { %v2252_v58 = vmul.f32 %v2244_v3, %v4875_v7 }
 0x9ee   :  { %v2256_v21 = vadd.f32 1e-05, %v2252_v58 }
 0x9f0   :  { %4339 = vrsqrt.f32 %v2256_v21  ;;  %vm2275_vm13 = vweird.f32 %v2256_v21 }
 0x9f3   :  { %v2247_v6 = vpop.xlane.xlu0 %2246 }
 0x9f4   :  { %v2253_v54 = vmul.f32 %v2247_v6, %v4875_v7 }
 0x9f6   :  { %v4340_v8 = vpop.eup %4339  ;;  %v2257_v9 = vadd.f32 1e-05, %v2253_v54 }
 0x9f7   :  { %v2270_v10 = vmul.f32 %v4340_v8, %v2256_v21  ;;  %vm2276_vm12 = vweird.f32 %v4340_v8 }
 0x9f8   :  { %4341 = vrsqrt.f32 %v2257_v9  ;;  %vm2277_vm14 = vmor %vm2275_vm13, %vm2276_vm12  ;;  %vm2285_vm0 = vweird.f32 %v2257_v9 }
 0x9f9   :  { %v2271_v11 = vmul.f32 %v4340_v8, %v2270_v10 }
 0x9fb   :  { %v2272_v29 = vmul.f32 0.5, %v2271_v11  ;;  %v2250_v42 = vpop.xlane.xlu1 %2249 }
 0x9fc   :  { %v2254_v15 = vmul.f32 %v2250_v42, %v4875_v7 }
 0x9fd   :  { %v2273_v14 = vsub.f32 1.5, %v2272_v29 }
 0x9fe   :  { %v4342_v33 = vpop.eup %4341  ;;  %v2258_v37 = vadd.f32 1e-05, %v2254_v15 }
 0x9ff   :  { %v2274_v12 = vmul.f32 %v4340_v8, %v2273_v14  ;;  %v2280_v48 = vmul.f32 %v4342_v33, %v2257_v9  ;;  %vm2286_vm15 = vweird.f32 %v4342_v33 }
 0xa00   :  { %4343 = vrsqrt.f32 %v2258_v37  ;;  %vm2287_vm1 = vmor %vm2285_vm0, %vm2286_vm15  ;;  %vm2295_vm3 = vweird.f32 %v2258_v37 }
 0xa01   :  { %v2278_v34 = vsel %vm2277_vm14, %v4340_v8, %v2274_v12  ;;  %v2281_v17 = vmul.f32 %v4342_v33, %v2280_v48 }
 0xa02   :  { %v2300_v51 = vmul.f32 %v2278_v34, %v5400_v24 }
 0xa03   :  { %v2282_v5 = vmul.f32 0.5, %v2281_v17 }
 0xa04   :  { %v2307_v55 = vmul.f32 %v4236_v52, %v2300_v51 }
 0xa05   :  { %v2283_v19 = vsub.f32 1.5, %v2282_v5 }
 0xa06   :  { %v4344_v62 = vpop.eup %4343  ;;  %v2314_v32 = vadd.f32 %v4237_v44, %v2307_v55 }
 0xa07   :  { %v2284_v18 = vmul.f32 %v4342_v33, %v2283_v19  ;;  %v2290_v23 = vmul.f32 %v4344_v62, %v2258_v37  ;;  %vm2296_vm2 = vweird.f32 %v4344_v62 }
 0xa08   :  { %4032 = vmatmul.msk.f32.gmra.mxu0 %vm807_vm8, %v2314_v32  ;;  %vm2297_vm4 = vmor %vm2295_vm3, %vm2296_vm2 }
 0xa09   :  { %v2288_v59 = vsel %vm2287_vm1, %v4342_v33, %v2284_v18  ;;  %v2291_v20 = vmul.f32 %v4344_v62, %v2290_v23 }
 0xa0a   :  { %v2301_v26 = vmul.f32 %v2288_v59, %v5407_v28 }
 0xa0b   :  { %v2292_v22 = vmul.f32 0.5, %v2291_v20 }
 0xa0c   :  { %v2308_v13 = vmul.f32 %v4236_v52, %v2301_v26 }
 0xa0d   :  { %v2293_v40 = vsub.f32 1.5, %v2292_v22 }
 0xa0e   :  { %v2315_v24 = vadd.f32 %v4237_v44, %v2308_v13 }
 0xa0f   :  { %v2294_v41 = vmul.f32 %v4344_v62, %v2293_v40 }
 0xa10   :  { %4033 = vmatmul.msk.f32.gmra.mxu0 %vm807_vm8, %v2315_v24 }
 0xa11   :  { %v2298_v35 = vsel %vm2297_vm4, %v4344_v62, %v2294_v41 }
 0xa12   :  { %v2302_v49 = vmul.f32 %v2298_v35, %v5414_v39 }
 0xa14   :  { %v2309_v50 = vmul.f32 %v4236_v52, %v2302_v49 }
 0xa16   :  { %v2316_v57 = vadd.f32 %v4237_v44, %v2309_v50 }
 0xa18   :  { %4034 = vmatmul.msk.f32.gmra.mxu0 %vm807_vm8, %v2316_v57 }
 0xa4c   :  { %v2351_v43 = vpop.f32.mrf.mxu0 }
 0xa4d   :  { %2367 = vrot.lane.b32.xlu0 %v2351_v43, %s4472_s23  ;;  %v2403_v8 = vmul.f32 0.35355338, %v2351_v43 }
 0xa55   :  { %2391 = vrot.lane.b32.xlu0 %v2351_v43, %s4474_s2 }
 0xa85   :  { %v2354_v28 = vpop.f32.mrf.mxu0 }
 0xa86   :  { %2393 = vrot.lane.b32.xlu1 %v2354_v28, %s4474_s2  ;;  %2369 = vrot.lane.b32.xlu2 %v2354_v28, %s4472_s23  ;;  %v4186_v52 = vpack.i.bf16 %v2351_v43, %v2354_v28  ;;  %v2404_v11 = vmul.f32 0.35355338, %v2354_v28 }
 0xa8d   :  { %v2357_v45 = vpop.f32.mrf.mxu0 }
 0xa8e   :  { %2379 = vrot.lane.b32.xlu1 %v2351_v43, %s4473_s24  ;;  %2381 = vrot.lane.b32.xlu2 %v2354_v28, %s4473_s24  ;;  %v2405_v10 = vmul.f32 0.35355338, %v2357_v45 }
 0xa95   :  { %v2360_v39 = vpop.f32.mrf.mxu0 }
 0xa96   :  { %2383 = vrot.lane.b32.xlu1 %v2357_v45, %s4473_s24  ;;  %2373 = vrot.lane.b32.xlu0 %v2360_v39, %s4472_s23  ;;  %v4196_v6 = vpack.i.bf16 %v2357_v45, %v2360_v39  ;;  %v2406_v29 = vmul.f32 0.35355338, %v2360_v39 }
 0xa97   :  { %2385 = vrot.lane.b32.xlu2 %v2360_v39, %s4473_s24 }
 0xa9e   :  { %2421 = vrot.lane.b32.xlu1 %v2354_v28, %s4475_s25  ;;  %2397 = vrot.lane.b32.xlu0 %v2360_v39, %s4474_s2 }
 0xa9f   :  { %2371 = vrot.lane.b32.xlu2 %v2357_v45, %s4472_s23 }
 0xaa6   :  { %2419 = vrot.lane.b32.xlu1 %v2351_v43, %s4475_s25 }
 0xaa7   :  { %2458 = vrot.lane.b32.xlu2 %v2360_v39, %s4475_s25 }
 0xaae   :  { %2456 = vrot.lane.b32.xlu1 %v2357_v45, %s4475_s25 }
 0xabf   :  { %v5463_v61 = vpop.permute.xlu0 %2367 }
 0xac0   :  { %2493 = vrot.lane.b32.xlu2 %v5463_v61, %s4475_s25  ;;  %v2407_v33 = vmul.f32 0.35355338, %v5463_v61 }
 0xac7   :  { %v5467_v46 = vpop.permute.xlu0 %2391 }
 0xac8   :  { %2641 = vrot.lane.b32.xlu1 %v5467_v46, %s4475_s25  ;;  %v2415_v51 = vmul.f32 0.35355338, %v5467_v46 }
 0xae0   :  { %v2370_v36 = vpop.permute.xlu2 %2369 }
 0xae1   :  { %v4191_v60 = vpack.i.bf16 %v5463_v61, %v2370_v36  ;;  %2495 = vrot.lane.b32.xlu0 %v2370_v36, %s4475_s25  ;;  %v2408_v48 = vmul.f32 0.35355338, %v2370_v36 }
 0xae8   :  { %v5473_v38 = vpop.permute.xlu2 %2381 }
 0xae9   :  { %2395 = vrot.lane.b32.xlu0 %v2357_v45, %s4474_s2  ;;  %v2412_v62 = vmul.f32 0.35355338, %v5473_v38 }
 0xaf1   :  { %v5476_v56 = vpop.permute.xlu2 %2385  ;;  %2569 = vrot.lane.b32.xlu0 %v5473_v38, %s4475_s25 }
 0xaf2   :  { %v2414_v59 = vmul.f32 0.35355338, %v5476_v56 }
 0xaf8   :  { %v5480_v27 = vpop.permute.xlu1 %2393 }
 0xaf9   :  { %v5482_v16 = vpop.permute.xlu2 %2371  ;;  %2606 = vrot.lane.b32.xlu0 %v5476_v56, %s4475_s25  ;;  %2643 = vrot.lane.b32.xlu2 %v5480_v27, %s4475_s25  ;;  %v4206_v21 = vpack.i.bf16 %v5467_v46, %v5480_v27  ;;  %v2416_v18 = vmul.f32 0.35355338, %v5480_v27 }
 0xafa   :  { %v2409_v40 = vmul.f32 0.35355338, %v5482_v16 }
 0xb00   :  { %v2380_v63 = vpop.permute.xlu1 %2379 }
 0xb01   :  { %v2459_v53 = vpop.permute.xlu2 %2458  ;;  %2530 = vrot.lane.b32.xlu0 %v5482_v16, %s4475_s25  ;;  %2567 = vrot.lane.b32.xlu2 %v2380_v63, %s4475_s25  ;;  %v4201_v2 = vpack.i.bf16 %v2380_v63, %v5473_v38  ;;  %v2411_v5 = vmul.f32 0.35355338, %v2380_v63 }
 0xb02   :  { %4039 = vmatpush.xpose.msk.msra.mxu2 %vm1022_vm6, %v2459_v53 }
 0xb08   :  { %v5492_v47 = vpop.permute.xlu0 %2373  ;;  %v5494_v25 = vpop.permute.xlu1 %2383 }
 0xb09   :  { %v4211_v44 = vpack.i.bf16 %v5482_v16, %v5492_v47  ;;  %v4216_v1 = vpack.i.bf16 %v5494_v25, %v5476_v56  ;;  %2532 = vrot.lane.b32.xlu1 %v5492_v47, %s4475_s25  ;;  %4187 = vrot.lane.b32.xlu0 %v4186_v52, %s6003_s0  ;;  %v2413_v32 = vmul.f32 0.35355338, %v5494_v25  ;;  %v2410_v50 = vmul.f32 0.35355338, %v5492_v47 }
 0xb0a   :  { %2604 = vrot.lane.b32.xlu2 %v5494_v25, %s4475_s25 }
 0xb10   :  { %v5506_v3 = vpop.permute.xlu0 %2397  ;;  %v2422_v58 = vpop.permute.xlu1 %2421 }
 0xb11   :  { %2680 = vrot.lane.b32.xlu1 %v5506_v3, %s4475_s25  ;;  %4202 = vrot.lane.b32.xlu0 %v4201_v2, %s6003_s0 }
 0xb12   :  { %4035 = vmatpush.xpose.msk.msrb.mxu1 %vm1022_vm6, %v2422_v58 }
 0xb18   :  { %v2420_v54 = vpop.permute.xlu1 %2419 }
 0xb19   :  { %4197 = vrot.lane.b32.xlu1 %v4196_v6, %s6003_s0  ;;  %4207 = vrot.lane.b32.xlu0 %v4206_v21, %s6003_s0  ;;  %v2418_v21 = vmul.f32 0.35355338, %v5506_v3 }
 0xb1a   :  { %4036 = vmatpush.xpose.msk.msrb.mxu1 %vm1022_vm6, %v2420_v54  ;;  %v2494_v42 = vpop.permute.xlu2 %2493 }
 0xb1d   :  { %4037 = vmatmul.msk.f32.vlgmr.msrb.gmra.mxu1 %vm1022_vm6, %v2403_v8 }
 0xb20   :  { %v2457_v9 = vpop.permute.xlu1 %2456 }
 0xb21   :  { %4040 = vmatpush.xpose.msk.msra.mxu2 %vm1022_vm6, %v2457_v9 }
 0xb24   :  { %4041 = vmatmul.msk.f32.vlgmr.msra.gmra.mxu2 %vm1022_vm6, %v2405_v10 }
 0xb25   :  { %4038 = vmatmul.msk.f32.gmra.mxu1 %vm1022_vm6, %v2404_v11 }
 0xb2c   :  { %4042 = vmatmul.msk.f32.gmra.mxu2 %vm1022_vm6, %v2406_v29 }
 0xb3a   :  { %v2642_v12 = vpop.permute.xlu1 %2641 }
 0xb53   :  { %v2496_v15 = vpop.permute.xlu0 %2495  ;;  %v2644_v14 = vpop.permute.xlu2 %2643 }
 0xb54   :  { %4043 = vmatpush.xpose.msk.msra.mxu3 %vm1022_vm6, %v2496_v15 }
 0xb58   :  { %4044 = vmatpush.xpose.msk.msra.mxu3 %vm1022_vm6, %v2494_v42 }
 0xb5b   :  { %v5526_v37 = vpop.permute.xlu0 %2395  ;;  %4045 = vmatmul.msk.f32.vlgmr.msra.gmra.mxu3 %vm1022_vm6, %v2407_v33  ;;  %v2568_v17 = vpop.permute.xlu2 %2567 }
 0xb5c   :  { %4059 = vmatpush.xpose.msk.msrb.mxu3 %vm1022_vm6, %v2644_v14  ;;  %2678 = vrot.lane.b32.xlu2 %v5526_v37, %s4475_s25  ;;  %v2417_v53 = vmul.f32 0.35355338, %v5526_v37 }
 0xb60   :  { %4060 = vmatpush.xpose.msk.msrb.mxu3 %vm1022_vm6, %v2642_v12 }
 0xb63   :  { %v2570_v34 = vpop.permute.xlu0 %2569  ;;  %4046 = vmatmul.msk.f32.gmra.mxu3 %vm1022_vm6, %v2408_v48 }
 0xb64   :  { %4192 = vrot.lane.b32.xlu2 %v4191_v60, %s6003_s0  ;;  %4051 = vmatpush.xpose.msk.msra.mxu1 %vm1022_vm6, %v2570_v34  ;;  %v2605_v19 = vpop.permute.xlu2 %2604 }
 0xb68   :  { %4052 = vmatpush.xpose.msk.msra.mxu1 %vm1022_vm6, %v2568_v17 }
 0xb6b   :  { %v2607_v55 = vpop.permute.xlu0 %2606  ;;  %4053 = vmatmul.msk.f32.vlgmr.msra.gmra.mxu1 %vm1022_vm6, %v2411_v5  ;;  %4061 = vmatmul.msk.f32.vlgmr.msrb.gmra.mxu3 %vm1022_vm6, %v2415_v51 }
 0xb6c   :  { %4055 = vmatpush.xpose.msk.msrb.mxu2 %vm1022_vm6, %v2607_v55 }
 0xb70   :  { %4056 = vmatpush.xpose.msk.msrb.mxu2 %vm1022_vm6, %v2605_v19 }
 0xb73   :  { %v2531_v23 = vpop.permute.xlu0 %2530  ;;  %4054 = vmatmul.msk.f32.gmra.mxu1 %vm1022_vm6, %v2412_v62  ;;  %4057 = vmatmul.msk.f32.vlgmr.msrb.gmra.mxu2 %vm1022_vm6, %v2413_v32 }
 0xb74   :  { %4062 = vmatmul.msk.f32.gmra.mxu3 %vm1022_vm6, %v2416_v18 }
 0xb7b   :  { %v4188_v20 = vpop.permute.xlu0 %4187  ;;  %4058 = vmatmul.msk.f32.gmra.mxu2 %vm1022_vm6, %v2414_v59  ;;  %v2533_v26 = vpop.permute.xlu1 %2532 }
 0xb7c   :  { %v4189_v22 = vunpack.i.l.bf16 %v4188_v20  ;;  %4047 = vmatpush.xpose.msk.msrb.mxu0 %vm1022_vm6, %v2533_v26  ;;  %v4190_v13 = vunpack.i.h.bf16 %v4188_v20 }
 0xb7e   :  { %2917 = vmatpush.msrb.mxu1 %v4189_v22 }
 0xb80   :  { %4048 = vmatpush.xpose.msk.msrb.mxu0 %vm1022_vm6, %v2531_v23  ;;  %2918 = vmatpush.msrb.mxu1 %v4190_v13 }
 0xb83   :  { %v4203_v24 = vpop.permute.xlu0 %4202  ;;  %4049 = vmatmul.msk.f32.vlgmr.msrb.gmra.mxu0 %vm1022_vm6, %v2409_v40  ;;  %v2681_v41 = vpop.permute.xlu1 %2680 }
 0xb84   :  { %v4204_v35 = vunpack.i.l.bf16 %v4203_v24  ;;  %4063 = vmatpush.xpose.msk.msra.mxu0 %vm1022_vm6, %v2681_v41  ;;  %v4205_v49 = vunpack.i.h.bf16 %v4203_v24 }
 0xb86   :  { %3057 = vmatpush.msra.mxu1 %v4204_v35 }
 0xb88   :  { %3058 = vmatpush.msra.mxu1 %v4205_v49 }
 0xb8b   :  { %4050 = vmatmul.msk.f32.gmra.mxu0 %vm1022_vm6, %v2410_v50  ;;  %v4198_v57 = vpop.permute.xlu1 %4197  ;;  %v4208_v2 = vpop.permute.xlu0 %4207 }
 0xb8c   :  { %v4199_v43 = vunpack.i.l.bf16 %v4198_v57  ;;  %v4200_v28 = vunpack.i.h.bf16 %v4198_v57  ;;  %v4209_v54 = vunpack.i.l.bf16 %v4208_v2  ;;  %v4210_v8 = vunpack.i.h.bf16 %v4208_v2 }
 0xb8e   :  { %2952 = vmatpush.msra.mxu2 %v4199_v43 }
 0xb90   :  { %2953 = vmatpush.msra.mxu2 %v4200_v28 }
 0xb9a   :  { %v2450_v45 = vpop.f32.mrf.mxu1 }
 0xb9b   :  { %v2715_v39 = vsel %vm1315_vm7, %v2450_v45, -inf }
 0xb9c   :  { %2716 = vmax.xlane.f32.xlu0 %v2715_v39 }
 0xba2   :  { %v2453_v61 = vpop.f32.mrf.mxu1 }
 0xba3   :  { %v2718_v46 = vsel %vm1315_vm7, %v2453_v61, -inf }
 0xba4   :  { %2719 = vmax.xlane.f32.xlu2 %v2718_v46 }
 0xba7   :  { %v5558_v36 = vpop.f32.mrf.mxu2 }
 0xba8   :  { %v2721_v60 = vsel %vm1315_vm7, %v5558_v36, -inf }
 0xba9   :  { %2722 = vmax.xlane.f32.xlu0 %v2721_v60 }
 0xbaf   :  { %v5562_v38 = vpop.f32.mrf.mxu2 }
 0xbb0   :  { %v2724_v27 = vsel %vm1315_vm7, %v5562_v38, -inf }
 0xbb1   :  { %2725 = vmax.xlane.f32.xlu0 %v2724_v27 }
 0xbb6   :  { %v2679_v63 = vpop.permute.xlu2 %2678 }
 0xbb7   :  { %4064 = vmatpush.xpose.msk.msra.mxu0 %vm1022_vm6, %v2679_v63 }
 0xbba   :  { %4065 = vmatmul.msk.f32.vlgmr.msra.gmra.mxu0 %vm1022_vm6, %v2417_v53 }
 0xbbe   :  { %v4193_v52 = vpop.permute.xlu2 %4192 }
 0xbbf   :  { %v4194_v58 = vunpack.i.l.bf16 %v4193_v52  ;;  %v4195_v6 = vunpack.i.h.bf16 %v4193_v52 }
 0xbc1   :  { %2987 = vmatpush.msra.mxu3 %v4194_v58 }
 0xbc2   :  { %4066 = vmatmul.msk.f32.gmra.mxu0 %vm1022_vm6, %v2418_v21 }
 0xbc3   :  { %2988 = vmatpush.msra.mxu3 %v4195_v6 }
 0xbc5   :  { %3127 = vmatpush.msrb.mxu3 %v4209_v54 }
 0xbc7   :  { %3128 = vmatpush.msrb.mxu3 %v4210_v8 }
 0xbde   :  { %v5571_v9 = vpop.f32.mrf.mxu3 }
 0xbdf   :  { %v2727_v10 = vsel %vm1315_vm7, %v5571_v9, -inf }
 0xbe0   :  { %2728 = vmax.xlane.f32.xlu1 %v2727_v10 }
 0xbe6   :  { %v5583_v14 = vpop.f32.mrf.mxu3 }
 0xbe7   :  { %v2730_v26 = vsel %vm1315_vm7, %v5583_v14, -inf }
 0xbe8   :  { %v5575_v11 = vpop.f32.mrf.mxu1 }
 0xbe9   :  { %v2739_v29 = vsel %vm1315_vm7, %v5575_v11, -inf }
 0xbea   :  { %2740 = vmax.xlane.f32.xlu2 %v2739_v29 }
 0xbee   :  { %v5585_v33 = vpop.f32.mrf.mxu3 }
 0xbef   :  { %v2751_v40 = vsel %vm1315_vm7, %v5585_v33, -inf }
 0xbf0   :  { %v5579_v42 = vpop.f32.mrf.mxu1 }
 0xbf1   :  { %v2742_v15 = vsel %vm1315_vm7, %v5579_v42, -inf }
 0xbf2   :  { %2743 = vmax.xlane.f32.xlu0 %v2742_v15 }
 0xbf6   :  { %v5615_v41 = vpop.f32.mrf.mxu2 }
 0xbf7   :  { %v5591_v34 = vpop.f32.mrf.mxu3  ;;  %v2745_v47 = vsel %vm1315_vm7, %v5615_v41, -inf }
 0xbf8   :  { %v2754_v51 = vsel %vm1315_vm7, %v5591_v34, -inf }
 0xbfe   :  { %v5624_v57 = vpop.f32.mrf.mxu2 }
 0xc00   :  { %v5587_v12 = vpop.f32.mrf.mxu0 }
 0xc01   :  { %v2733_v48 = vsel %vm1315_vm7, %v5587_v12, -inf }
 0xc02   :  { %2734 = vmax.xlane.f32.xlu2 %v2733_v48 }
 0xc08   :  { %v5593_v17 = vpop.f32.mrf.mxu0 }
 0xc09   :  { %v2736_v5 = vsel %vm1315_vm7, %v5593_v17, -inf }
 0xc0a   :  { %2755 = vmax.xlane.f32.xlu2 %v2754_v51  ;;  %2737 = vmax.xlane.f32.xlu0 %v2736_v5 }
 0xc0f   :  { %v2717_v55 = vpop.xlane.xlu0 %2716 }
 0xc10   :  { %v2763_v19 = vsub.f32 %v2450_v45, %v2717_v55  ;;  %v2748_v45 = vsel %vm1315_vm7, %v5624_v57, -inf }
 0xc12   :  { %v2779_v62 = vmul.f32 1.442695, %v2763_v19 }
 0xc14   :  { %4345 = vpow2.f32 %v2779_v62 }
 0xc17   :  { %v2720_v32 = vpop.xlane.xlu2 %2719 }
 0xc18   :  { %v2764_v23 = vsub.f32 %v2453_v61, %v2720_v32 }
 0xc1a   :  { %v5599_v18 = vpop.eup %4345  ;;  %v2781_v20 = vmul.f32 1.442695, %v2764_v23 }
 0xc1b   :  { %v2811_v59 = vsel %vm1315_vm7, %v5599_v18, 0.0 }
 0xc1c   :  { %2812 = vadd.xlane.f32.xlu1 %v2811_v59  ;;  %4347 = vpow2.f32 %v2781_v20  ;;  %v2723_v24 = vpop.xlane.xlu0 %2722 }
 0xc1d   :  { %v2765_v16 = vsub.f32 %v5558_v36, %v2723_v24 }
 0xc22   :  { %4212 = vrot.lane.b32.xlu2 %v4211_v44, %s6003_s0  ;;  %v5609_v22 = vpop.eup %4347  ;;  %v2783_v44 = vmul.f32 1.442695, %v2765_v16 }
 0xc23   :  { %v2814_v13 = vsel %vm1315_vm7, %v5609_v22, 0.0 }
 0xc24   :  { %2731 = vmax.xlane.f32.xlu1 %v2730_v26  ;;  %v2726_v49 = vpop.xlane.xlu0 %2725  ;;  %4349 = vpow2.f32 %v2783_v44 }
 0xc25   :  { %v2766_v28 = vsub.f32 %v5562_v38, %v2726_v49 }
 0xc27   :  { %v2785_v39 = vmul.f32 1.442695, %v2766_v28 }
 0xc29   :  { %4351 = vpow2.f32 %v2785_v39 }
 0xc2a   :  { %v5631_v61 = vpop.eup %4349 }
 0xc2b   :  { %v2817_v36 = vsel %vm1315_vm7, %v5631_v61, 0.0 }
 0xc2c   :  { %2815 = vadd.xlane.f32.xlu1 %v2814_v13 }
 0xc2f   :  { %v5637_v60 = vpop.eup %4351 }
 0xc30   :  { %v2820_v38 = vsel %vm1315_vm7, %v5637_v60, 0.0 }
 0xc34   :  { %2752 = vmax.xlane.f32.xlu1 %v2751_v40 }
 0xc37   :  { %v5617_v35 = vpop.f32.mrf.mxu0 }
 0xc38   :  { %v2757_v46 = vsel %vm1315_vm7, %v5617_v35, -inf }
 0xc3c   :  { %2746 = vmax.xlane.f32.xlu1 %v2745_v47 }
 0xc3f   :  { %v5622_v50 = vpop.f32.mrf.mxu0 }
 0xc40   :  { %v2760_v43 = vsel %vm1315_vm7, %v5622_v50, -inf }
 0xc41   :  { %2761 = vmax.xlane.f32.xlu0 %v2760_v43 }
 0xc44   :  { %2749 = vmax.xlane.f32.xlu1 %v2748_v45 }
 0xc4b   :  { %2758 = vmax.xlane.f32.xlu2 %v2757_v46 }
 0xc4c   :  { %2818 = vadd.xlane.f32.xlu1 %v2817_v36 }
 0xc53   :  { %2821 = vadd.xlane.f32.xlu2 %v2820_v38  ;;  %v2729_v27 = vpop.xlane.xlu1 %2728 }
 0xc54   :  { %v2767_v63 = vsub.f32 %v5571_v9, %v2729_v27 }
 0xc56   :  { %v2787_v53 = vmul.f32 1.442695, %v2767_v63 }
 0xc58   :  { %4353 = vpow2.f32 %v2787_v53 }
 0xc5d   :  { %v2741_v52 = vpop.xlane.xlu2 %2740 }
 0xc5e   :  { %v5642_v2 = vpop.eup %4353  ;;  %v2771_v58 = vsub.f32 %v5575_v11, %v2741_v52 }
 0xc5f   :  { %v2823_v21 = vsel %vm1315_vm7, %v5642_v2, 0.0 }
 0xc60   :  { %v2795_v6 = vmul.f32 1.442695, %v2771_v58  ;;  %2824 = vadd.xlane.f32.xlu2 %v2823_v21 }
 0xc62   :  { %4355 = vpow2.f32 %v2795_v6 }
 0xc65   :  { %v2744_v54 = vpop.xlane.xlu0 %2743 }
 0xc66   :  { %v2772_v8 = vsub.f32 %v5579_v42, %v2744_v54 }
 0xc68   :  { %v5648_v10 = vpop.eup %4355  ;;  %v2797_v29 = vmul.f32 1.442695, %v2772_v8 }
 0xc69   :  { %v2835_v9 = vsel %vm1315_vm7, %v5648_v10, 0.0 }
 0xc6a   :  { %4357 = vpow2.f32 %v2797_v29  ;;  %2836 = vadd.xlane.f32.xlu1 %v2835_v9 }
 0xc70   :  { %v5652_v15 = vpop.eup %4357 }
 0xc71   :  { %v2838_v11 = vsel %vm1315_vm7, %v5652_v15, 0.0 }
 0xc72   :  { %2839 = vadd.xlane.f32.xlu2 %v2838_v11 }
 0xc75   :  { %v2735_v48 = vpop.xlane.xlu2 %2734 }
 0xc76   :  { %v2769_v51 = vsub.f32 %v5587_v12, %v2735_v48 }
 0xc78   :  { %v2791_v5 = vmul.f32 1.442695, %v2769_v51 }
 0xc7a   :  { %4359 = vpow2.f32 %v2791_v5 }
 0xc7d   :  { %v2756_v42 = vpop.xlane.xlu2 %2755 }
 0xc7e   :  { %v2776_v40 = vsub.f32 %v5591_v34, %v2756_v42 }
 0xc80   :  { %v5657_v55 = vpop.eup %4359  ;;  %v2805_v16 = vmul.f32 1.442695, %v2776_v40 }
 0xc81   :  { %v2829_v19 = vsel %vm1315_vm7, %v5657_v55, 0.0 }
 0xc82   :  { %2830 = vadd.xlane.f32.xlu2 %v2829_v19 }
 0xc85   :  { %v4213_v62 = vpop.permute.xlu2 %4212 }
 0xc86   :  { %v4214_v32 = vunpack.i.l.bf16 %v4213_v62  ;;  %v4215_v23 = vunpack.i.h.bf16 %v4213_v62 }
 0xc88   :  { %3022 = vmatpush.msrb.mxu0 %v4214_v32 }
 0xc8a   :  { %3023 = vmatpush.msrb.mxu0 %v4215_v23 }
 0xc8f   :  { %v2813_v59 = vpop.xlane.xlu1 %2812 }
 0xc90   :  { %4361 = vrcp.f32 %v2813_v59 }
 0xc96   :  { %v4362_v20 = vpop.eup %4361 }
 0xc97   :  { %v2875_v26 = vmul.f32 %v4362_v20, %v5599_v18  ;;  %v2732_v12 = vpop.xlane.xlu1 %2731 }
 0xc98   :  { %v2768_v13 = vsub.f32 %v5583_v14, %v2732_v12 }
 0xc99   :  { %4067 = vmatmul.msk.f32.vlgmr.msrb.gmra.mxu1 %vm1315_vm7, %v2875_v26 }
 0xc9a   :  { %v2789_v24 = vmul.f32 1.442695, %v2768_v13  ;;  %v4083_v13 = vld [vmem:[%s5971_s6 + $0x20] sm:$0xff] }
 0xc9b   :  { %3205 = vmatpush.msrb.mxu1 %v4083_v13 }
 0xc9c   :  { %4363 = vpow2.f32 %v2789_v24 }
 0xc9f   :  { %v2816_v47 = vpop.xlane.xlu1 %2815 }
 0xca0   :  { %4365 = vrcp.f32 %v2816_v47 }
 0xca1   :  { %4367 = vpow2.f32 %v2805_v16 }
 0xca2   :  { %v5665_v44 = vpop.eup %4363 }
 0xca3   :  { %v2826_v49 = vsel %vm1315_vm7, %v5665_v44, 0.0 }
 0xca4   :  { %2827 = vadd.xlane.f32.xlu0 %v2826_v49 }
 0xca6   :  { %v4366_v18 = vpop.eup %4365 }
 0xca7   :  { %v2753_v43 = vpop.xlane.xlu1 %2752  ;;  %v2876_v14 = vmul.f32 %v4366_v18, %v5609_v22  ;;  %v5670_v28 = vpop.eup %4367 }
 0xca8   :  { %v2775_v34 = vsub.f32 %v5585_v33, %v2753_v43  ;;  %v2850_v39 = vsel %vm1315_vm7, %v5670_v28, 0.0 }
 0xca9   :  { %4068 = vmatmul.msk.f32.gmra.mxu1 %vm1315_vm7, %v2876_v14 }
 0xcaa   :  { %v2803_v45 = vmul.f32 1.442695, %v2775_v34 }
 0xcac   :  { %4369 = vpow2.f32 %v2803_v45  ;;  %2851 = vadd.xlane.f32.xlu0 %v2850_v39 }
 0xcaf   :  { %v2747_v46 = vpop.xlane.xlu1 %2746 }
 0xcb0   :  { %v2773_v36 = vsub.f32 %v5615_v41, %v2747_v46  ;;  %v4221_v41 = vpack.i.bf16 %v5526_v37, %v5506_v3  ;;  %v2738_v3 = vpop.xlane.xlu0 %2737 }
 0xcb1   :  { %v2770_v25 = vsub.f32 %v5593_v17, %v2738_v3 }
 0xcb2   :  { %v5677_v38 = vpop.eup %4369  ;;  %v2799_v27 = vmul.f32 1.442695, %v2773_v36 }
 0xcb3   :  { %v2847_v22 = vsel %vm1315_vm7, %v5677_v38, 0.0 }
 0xcb4   :  { %4371 = vpow2.f32 %v2799_v27  ;;  %2848 = vadd.xlane.f32.xlu1 %v2847_v22 }
 0xcb7   :  { %v2750_v33 = vpop.xlane.xlu1 %2749 }
 0xcb8   :  { %v2774_v63 = vsub.f32 %v5624_v57, %v2750_v33  ;;  %v2762_v51 = vpop.xlane.xlu0 %2761 }
 0xcb9   :  { %v2778_v5 = vsub.f32 %v5622_v50, %v2762_v51  ;;  %v2793_v50 = vmul.f32 1.442695, %v2770_v25 }
 0xcba   :  { %v5682_v53 = vpop.eup %4371  ;;  %v2801_v52 = vmul.f32 1.442695, %v2774_v63 }
 0xcbb   :  { %v2841_v58 = vsel %vm1315_vm7, %v5682_v53, 0.0  ;;  %v2809_v19 = vmul.f32 1.442695, %v2778_v5 }
 0xcbc   :  { %4373 = vpow2.f32 %v2801_v52  ;;  %2842 = vadd.xlane.f32.xlu2 %v2841_v58 }
 0xcbe   :  { %v2759_v21 = vpop.xlane.xlu2 %2758 }
 0xcbf   :  { %v2819_v6 = vpop.xlane.xlu1 %2818  ;;  %v2777_v59 = vsub.f32 %v5617_v35, %v2759_v21  ;;  %v4084_v21 = vld [vmem:[%s5971_s6 + $0x28] sm:$0xff] }
 0xcc0   :  { %4375 = vrcp.f32 %v2819_v6  ;;  %4222 = vrot.lane.b32.xlu0 %v4221_v41, %s6003_s0 }
 0xcc1   :  { %v2807_v17 = vmul.f32 1.442695, %v2777_v59 }
 0xcc2   :  { %v5689_v54 = vpop.eup %4373 }
 0xcc3   :  { %v2844_v57 = vsel %vm1315_vm7, %v5689_v54, 0.0 }
 0xcc4   :  { %2845 = vadd.xlane.f32.xlu2 %v2844_v57 }
 0xcc6   :  { %v4376_v8 = vpop.eup %4375  ;;  %v2822_v29 = vpop.xlane.xlu2 %2821 }
 0xcc7   :  { %v2877_v9 = vmul.f32 %v4376_v8, %v5631_v61  ;;  %4377 = vrcp.f32 %v2822_v29 }
 0xcc9   :  { %4069 = vmatmul.msk.f32.vlgmr.msra.gmra.mxu2 %vm1315_vm7, %v2877_v9 }
 0xccd   :  { %v4378_v11 = vpop.eup %4377  ;;  %4217 = vrot.lane.b32.xlu1 %v4216_v1, %s6003_s0 }
 0xcce   :  { %v2878_v37 = vmul.f32 %v4378_v11, %v5637_v60 }
 0xcd1   :  { %4070 = vmatmul.msk.f32.gmra.mxu2 %vm1315_vm7, %v2878_v37 }
 0xcd3   :  { %v2825_v48 = vpop.xlane.xlu2 %2824 }
 0xcd4   :  { %4379 = vrcp.f32 %v2825_v48 }
 0xcda   :  { %v4380_v61 = vpop.eup %4379 }
 0xcdb   :  { %v2879_v42 = vmul.f32 %v4380_v61, %v5642_v2 }
 0xcdd   :  { %4071 = vmatmul.msk.f32.vlgmr.msra.gmra.mxu3 %vm1315_vm7, %v2879_v42  ;;  %v2837_v62 = vpop.xlane.xlu1 %2836 }
 0xcde   :  { %4381 = vrcp.f32 %v2837_v62  ;;  %v4086_v62 = vld [vmem:[%s5971_s6 + $0x38] sm:$0xff] }
 0xcdf   :  { %4383 = vpow2.f32 %v2809_v19 }
 0xce4   :  { %v4382_v56 = vpop.eup %4381 }
 0xce5   :  { %v2883_v1 = vmul.f32 %v4382_v56, %v5648_v10  ;;  %v2840_v60 = vpop.xlane.xlu2 %2839  ;;  %v5706_v32 = vpop.eup %4383 }
 0xce6   :  { %4385 = vrcp.f32 %v2840_v60  ;;  %v2856_v2 = vsel %vm1315_vm7, %v5706_v32, 0.0 }
 0xce7   :  { %4075 = vmatmul.msk.f32.vlgmr.msra.gmra.mxu1 %vm1315_vm7, %v2883_v1  ;;  %4387 = vpow2.f32 %v2793_v50 }
 0xce8   :  { %4389 = vpow2.f32 %v2807_v17  ;;  %v4238_v17 = vld [vmem:[%s5972_s7 + $0x1] ss:$0 sm:$0xff] }
 0xcea   :  { %2857 = vadd.xlane.f32.xlu0 %v2856_v2 }
 0xcec   :  { %v4386_v23 = vpop.eup %4385 }
 0xced   :  { %v2884_v20 = vmul.f32 %v4386_v23, %v5652_v15  ;;  %v5714_v10 = vpop.eup %4387 }
 0xcee   :  { %v2832_v12 = vsel %vm1315_vm7, %v5714_v10, 0.0  ;;  %v5721_v35 = vpop.eup %4389 }
 0xcef   :  { %4076 = vmatmul.msk.f32.gmra.mxu1 %vm1315_vm7, %v2884_v20  ;;  %v2853_v24 = vsel %vm1315_vm7, %v5721_v35, 0.0 }
 0xcf5   :  { %v2831_v26 = vpop.xlane.xlu2 %2830 }
 0xcf6   :  { %4391 = vrcp.f32 %v2831_v26 }
 0xcf7   :  { %2833 = vadd.xlane.f32.xlu1 %v2832_v12 }
 0xcfc   :  { %v4392_v15 = vpop.eup %4391 }
 0xcfd   :  { %v2881_v40 = vmul.f32 %v4392_v15, %v5657_v55 }
 0xcff   :  { %2854 = vadd.xlane.f32.xlu1 %v2853_v24  ;;  %4073 = vmatmul.msk.f32.vlgmr.msrb.gmra.mxu0 %vm1315_vm7, %v2881_v40 }
 0xd16   :  { %v2920_v16 = vpop.f32.mrf.mxu1 }
 0xd17   :  { %v2828_v47 = vpop.xlane.xlu0 %2827  ;;  %4088 = vmatmul.msk.f32.vlgmr.msrb.gmra.mxu1 %vm1022_vm6, %v2920_v16 }
 0xd18   :  { %4393 = vrcp.f32 %v2828_v47 }
 0xd1e   :  { %v4394_v49 = vpop.eup %4393 }
 0xd1f   :  { %v2880_v18 = vmul.f32 %v4394_v49, %v5665_v44  ;;  %v2852_v14 = vpop.xlane.xlu0 %2851 }
 0xd21   :  { %4072 = vmatmul.msk.f32.gmra.mxu3 %vm1315_vm7, %v2880_v18 }
 0xd26   :  { %v2923_v43 = vpop.f32.mrf.mxu1 }
 0xd27   :  { %4089 = vmatmul.msk.f32.gmra.mxu1 %vm1022_vm6, %v2923_v43  ;;  %v2849_v55 = vpop.xlane.xlu1 %2848 }
 0xd28   :  { %4395 = vrcp.f32 %v2849_v55 }
 0xd29   :  { %4397 = vrcp.f32 %v2852_v14 }
 0xd2e   :  { %v4396_v34 = vpop.eup %4395 }
 0xd2f   :  { %v2887_v45 = vmul.f32 %v4396_v34, %v5677_v38  ;;  %v4398_v36 = vpop.eup %4397  ;;  %v2843_v27 = vpop.xlane.xlu2 %2842 }
 0xd30   :  { %v2888_v44 = vmul.f32 %v4398_v36, %v5670_v28  ;;  %4399 = vrcp.f32 %v2843_v27  ;;  %v4085_v28 = vld [vmem:[%s5971_s6 + $0x30] sm:$0xff] }
 0xd31   :  { %4079 = vmatmul.msk.f32.vlgmr.msrb.gmra.mxu3 %vm1315_vm7, %v2887_v45 }
 0xd32   :  { %v4223_v39 = vpop.permute.xlu0 %4222  ;;  %3298 = vmatpush.msra.mxu3 %v4085_v28 }
 0xd33   :  { %v4224_v46 = vunpack.i.l.bf16 %v4223_v39  ;;  %v4225_v22 = vunpack.i.h.bf16 %v4223_v39 }
 0xd35   :  { %3162 = vmatpush.msra.mxu0 %v4224_v46 }
 0xd36   :  { %v4400_v52 = vpop.eup %4399 }
 0xd37   :  { %3163 = vmatpush.msra.mxu0 %v4225_v22  ;;  %v2846_v33 = vpop.xlane.xlu2 %2845  ;;  %v2885_v41 = vmul.f32 %v4400_v52, %v5682_v53 }
 0xd38   :  { %4401 = vrcp.f32 %v2846_v33 }
 0xd39   :  { %4080 = vmatmul.msk.f32.gmra.mxu3 %vm1315_vm7, %v2888_v44  ;;  %3343 = vmatpush.msrb.mxu0 %v4086_v62 }
 0xd3e   :  { %v4402_v6 = vpop.eup %4401 }
 0xd3f   :  { %v4218_v63 = vpop.permute.xlu1 %4217  ;;  %v2886_v57 = vmul.f32 %v4402_v6, %v5689_v54 }
 0xd40   :  { %v4219_v58 = vunpack.i.l.bf16 %v4218_v63  ;;  %v4220_v38 = vunpack.i.h.bf16 %v4218_v63 }
 0xd42   :  { %3092 = vmatpush.msrb.mxu2 %v4219_v58 }
 0xd44   :  { %3093 = vmatpush.msrb.mxu2 %v4220_v38 }
 0xd45   :  { %4077 = vmatmul.msk.f32.vlgmr.msrb.gmra.mxu2 %vm1315_vm7, %v2885_v41 }
 0xd46   :  { %3253 = vmatpush.msra.mxu2 %v4084_v21 }
 0xd4c   :  { %v2955_v8 = vpop.f32.mrf.mxu2 }
 0xd4d   :  { %4078 = vmatmul.msk.f32.gmra.mxu2 %vm1315_vm7, %v2886_v57  ;;  %4090 = vmatmul.msk.f32.gmra.mxu1 %vm1022_vm6, %v2955_v8 }
 0xd54   :  { %v2958_v53 = vpop.f32.mrf.mxu2 }
 0xd55   :  { %4091 = vmatmul.msk.f32.gmra.mxu1 %vm1022_vm6, %v2958_v53 }
 0xd5d   :  { %v2858_v51 = vpop.xlane.xlu0 %2857 }
 0xd60   :  { %v2990_v29 = vpop.f32.mrf.mxu3 }
 0xd61   :  { %4092 = vmatmul.msk.f32.vlgmr.msra.gmra.mxu2 %vm1022_vm6, %v2990_v29 }
 0xd64   :  { %v3060_v9 = vpop.f32.mrf.mxu1 }
 0xd65   :  { %4096 = vmatmul.msk.f32.vlgmr.msra.gmra.mxu3 %vm1022_vm6, %v3060_v9 }
 0xd6a   :  { %v2834_v11 = vpop.xlane.xlu1 %2833 }
 0xd6b   :  { %4403 = vrcp.f32 %v2834_v11 }
 0xd6c   :  { %v3063_v3 = vpop.f32.mrf.mxu1 }
 0xd6d   :  { %4097 = vmatmul.msk.f32.gmra.mxu3 %vm1022_vm6, %v3063_v3 }
 0xd71   :  { %v4404_v54 = vpop.eup %4403 }
 0xd72   :  { %v2855_v37 = vpop.xlane.xlu1 %2854  ;;  %v2882_v48 = vmul.f32 %v4404_v54, %v5714_v10 }
 0xd73   :  { %4405 = vrcp.f32 %v2855_v37 }
 0xd74   :  { %4074 = vmatmul.msk.f32.gmra.mxu0 %vm1315_vm7, %v2882_v48  ;;  %4407 = vrcp.f32 %v2858_v51 }
 0xd79   :  { %v4406_v5 = vpop.eup %4405 }
 0xd7a   :  { %v2889_v61 = vmul.f32 %v4406_v5, %v5721_v35  ;;  %v4408_v42 = vpop.eup %4407 }
 0xd7b   :  { %v2890_v19 = vmul.f32 %v4408_v42, %v5706_v32 }
 0xd7c   :  { %4081 = vmatmul.msk.f32.vlgmr.msra.gmra.mxu0 %vm1315_vm7, %v2889_v61  ;;  %v3025_v25 = vpop.f32.mrf.mxu0 }
 0xd84   :  { %4082 = vmatmul.msk.f32.gmra.mxu0 %vm1315_vm7, %v2890_v19 }
 0xd94   :  { %v3207_v20 = vpop.f32.mrf.mxu1 }
 0xd95   :  { %v3222_v26 = vadd.f32 %v4238_v17, %v3207_v20 }
 0xda4   :  { %v2993_v56 = vpop.f32.mrf.mxu3  ;;  %v3210_v35 = vpop.f32.mrf.mxu1 }
 0xda5   :  { %4093 = vmatmul.msk.f32.gmra.mxu2 %vm1022_vm6, %v2993_v56  ;;  %v3223_v16 = vadd.f32 %v4238_v17, %v3210_v35 }
 0xdad   :  { %4094 = vmatmul.msk.f32.gmra.mxu2 %vm1022_vm6, %v3025_v25 }
 0xdb4   :  { %v3130_v1 = vpop.f32.mrf.mxu3 }
 0xdb5   :  { %4100 = vmatmul.msk.f32.vlgmr.msrb.gmra.mxu0 %vm1022_vm6, %v3130_v1 }
 0xdbc   :  { %v3133_v60 = vpop.f32.mrf.mxu3 }
 0xdbd   :  { %4101 = vmatmul.msk.f32.gmra.mxu0 %vm1022_vm6, %v3133_v60 }
 0xdc8   :  { %v3095_v32 = vpop.f32.mrf.mxu2 }
 0xdc9   :  { %4098 = vmatmul.msk.f32.gmra.mxu3 %vm1022_vm6, %v3095_v32 }
 0xdca   :  { %v3213_v36 = vpop.f32.mrf.mxu1 }
 0xdcb   :  { %v3224_v22 = vadd.f32 %v4238_v17, %v3213_v36 }
 0xdd0   :  { %v3098_v50 = vpop.f32.mrf.mxu2 }
 0xdd1   :  { %4099 = vmatmul.msk.f32.gmra.mxu3 %vm1022_vm6, %v3098_v50 }
 0xdd2   :  { %v3216_v63 = vpop.f32.mrf.mxu1 }
 0xdd3   :  { %v3225_v38 = vadd.f32 %v4238_v17, %v3216_v63 }
 0xde4   :  { %v3255_v10 = vpop.f32.mrf.mxu2 }
 0xde5   :  { %v3267_v13 = vadd.f32 %v3255_v10, %v3222_v26  ;;  %v4107_v10 = vld [vmem:[%s5975_s10 + $0x28] sm:$0xff] }
 0xde8   :  { %v3300_v12 = vpop.f32.mrf.mxu3 }
 0xde9   :  { %v3312_v15 = vadd.f32 %v3300_v12, %v3267_v13  ;;  %v4106_v12 = vld [vmem:[%s5975_s10 + $0x20] sm:$0xff] }
 0xdf0   :  { %v3303_v55 = vpop.f32.mrf.mxu3 }
 0xdf1   :  { %v3028_v2 = vpop.f32.mrf.mxu0 }
 0xdf2   :  { %4095 = vmatmul.msk.f32.gmra.mxu2 %vm1022_vm6, %v3028_v2 }
 0xdf9   :  { %v3165_v23 = vpop.f32.mrf.mxu0 }
 0xdfa   :  { %4102 = vmatmul.msk.f32.gmra.mxu0 %vm1022_vm6, %v3165_v23  ;;  %v4109_v23 = vld [vmem:[%s5975_s10 + $0x38] sm:$0xff] }
 0xdfb   :  { %3505 = vmatpush.msra.mxu1 %v4109_v23  ;;  %v4118_v23 = vld [vmem:[%s5977_s12 + $0x58] sm:$0xff] }
 0xe01   :  { %v3168_v59 = vpop.f32.mrf.mxu0 }
 0xe02   :  { %4103 = vmatmul.msk.f32.gmra.mxu0 %vm1022_vm6, %v3168_v59  ;;  %v4108_v59 = vld [vmem:[%s5975_s10 + $0x30] sm:$0xff] }
 0xe03   :  { %3506 = vmatpush.msra.mxu1 %v4108_v59 }
 0xe05   :  { %3507 = vmatpush.msra.mxu1 %v4107_v10  ;;  %v4116_v10 = vld [vmem:[%s5977_s12 + $0x48] sm:$0xff] }
 0xe07   :  { %3508 = vmatpush.msra.mxu1 %v4106_v12  ;;  %v4115_v12 = vld [vmem:[%s5977_s12 + $0x40] sm:$0xff] }
 0xe28   :  { %v3258_v40 = vpop.f32.mrf.mxu2 }
 0xe29   :  { %v3268_v49 = vadd.f32 %v3258_v40, %v3223_v16 }
 0xe2b   :  { %v3313_v14 = vadd.f32 %v3303_v55, %v3268_v49 }
 0xe30   :  { %v3261_v27 = vpop.f32.mrf.mxu2 }
 0xe31   :  { %v3269_v33 = vadd.f32 %v3261_v27, %v3224_v22 }
 0xe32   :  { %v3345_v24 = vpop.f32.mrf.mxu0 }
 0xe33   :  { %v3357_v47 = vadd.f32 %v3345_v24, %v3312_v15 }
 0xe35   :  { %v3361_v18 = vadd.f32 %v3357_v47, %v5376_v31 }
 0xe37   :  { %v3369_v43 = vsel %vm807_vm8, %v3361_v18, 0.0 }
 0xe38   :  { %3370 = vadd.xlane.f32.xlu2 %v3369_v43 }
 0xe3a   :  { %v3348_v34 = vpop.f32.mrf.mxu0 }
 0xe3b   :  { %v3358_v45 = vadd.f32 %v3348_v34, %v3313_v14  ;;  %v4239_v14 = vld [vmem:[%s5973_s8 + $0x1] ss:$0 sm:$0xff] }
 0xe3d   :  { %v3362_v39 = vadd.f32 %v3358_v45, %v5381_v0 }
 0xe3f   :  { %v3372_v46 = vsel %vm807_vm8, %v3362_v39, 0.0 }
 0xe40   :  { %3373 = vadd.xlane.f32.xlu2 %v3372_v46 }
 0xe4c   :  { %v3306_v44 = vpop.f32.mrf.mxu3 }
 0xe4d   :  { %v3314_v52 = vadd.f32 %v3306_v44, %v3269_v33 }
 0xe54   :  { %v3309_v0 = vpop.f32.mrf.mxu3 }
 0xe75   :  { %v3264_v31 = vpop.f32.mrf.mxu2 }
 0xe76   :  { %v3270_v21 = vadd.f32 %v3264_v31, %v3225_v38 }
 0xe77   :  { %v3351_v58 = vpop.f32.mrf.mxu0 }
 0xe78   :  { %v3359_v41 = vadd.f32 %v3351_v58, %v3314_v52  ;;  %v3315_v57 = vadd.f32 %v3309_v0, %v3270_v21 }
 0xe7a   :  { %v3363_v28 = vadd.f32 %v3359_v41, %v5386_v4 }
 0xe7c   :  { %v3375_v6 = vsel %vm807_vm8, %v3363_v28, 0.0 }
 0xe7d   :  { %3376 = vadd.xlane.f32.xlu1 %v3375_v6 }
 0xe7f   :  { %v3354_v8 = vpop.f32.mrf.mxu0 }
 0xe80   :  { %v3360_v53 = vadd.f32 %v3354_v8, %v3315_v57 }
 0xe82   :  { %v3364_v29 = vadd.f32 %v3360_v53, %v5391_v30 }
 0xe84   :  { %v3378_v9 = vsel %vm807_vm8, %v3364_v29, 0.0 }
 0xe85   :  { %3379 = vadd.xlane.f32.xlu2 %v3378_v9 }
 0xeab   :  { %v3371_v11 = vpop.xlane.xlu2 %3370 }
 0xeac   :  { %v3381_v3 = vmul.f32 %v3371_v11, %v4875_v7 }
 0xeae   :  { %v3385_v54 = vsub.f32 %v3361_v18, %v3381_v3 }
 0xeb0   :  { %v3389_v37 = vmul.f32 %v3385_v54, %v3385_v54 }
 0xeb2   :  { %v3393_v48 = vsel %vm807_vm8, %v3389_v37, 0.0 }
 0xeb3   :  { %v3374_v4 = vpop.xlane.xlu2 %3373  ;;  %3394 = vadd.xlane.f32.xlu1 %v3393_v48 }
 0xeb4   :  { %v3382_v51 = vmul.f32 %v3374_v4, %v4875_v7 }
 0xeb6   :  { %v3386_v5 = vsub.f32 %v3362_v39, %v3382_v51  ;;  %v4240_v39 = vld [vmem:[%s5974_s9 + $0x1] ss:$0 sm:$0xff] }
 0xeb8   :  { %v3390_v61 = vmul.f32 %v3386_v5, %v3386_v5 }
 0xeba   :  { %v3396_v42 = vsel %vm807_vm8, %v3390_v61, 0.0 }
 0xebb   :  { %3397 = vadd.xlane.f32.xlu2 %v3396_v42 }
 0xef0   :  { %v3377_v30 = vpop.xlane.xlu1 %3376 }
 0xef1   :  { %v3383_v19 = vmul.f32 %v3377_v30, %v4875_v7 }
 0xef3   :  { %v5784_v62 = vsub.f32 %v3363_v28, %v3383_v19 }
 0xef5   :  { %v3391_v56 = vmul.f32 %v5784_v62, %v5784_v62 }
 0xef7   :  { %v3399_v25 = vsel %vm807_vm8, %v3391_v56, 0.0 }
 0xef8   :  { %3400 = vadd.xlane.f32.xlu1 %v3399_v25  ;;  %v3380_v1 = vpop.xlane.xlu2 %3379 }
 0xef9   :  { %v3384_v60 = vmul.f32 %v3380_v1, %v4875_v7 }
 0xefb   :  { %v5790_v32 = vsub.f32 %v3364_v29, %v3384_v60  ;;  %v4121_v60 = vld [vmem:[%s5977_s12 + $0x70] sm:$0xff] }
 0xefd   :  { %v3392_v50 = vmul.f32 %v5790_v32, %v5790_v32 }
 0xeff   :  { %v3402_v2 = vsel %vm807_vm8, %v3392_v50, 0.0  ;;  %v4120_v50 = vld [vmem:[%s5977_s12 + $0x68] sm:$0xff] }
 0xf00   :  { %3403 = vadd.xlane.f32.xlu2 %v3402_v2  ;;  %v4241_v2 = vld [vmem:[%s5976_s11 + $0x1] ss:$0 sm:$0xff] }
 0xf26   :  { %v3395_v20 = vpop.xlane.xlu1 %3394 }
 0xf27   :  { %v3405_v17 = vmul.f32 %v3395_v20, %v4875_v7  ;;  %v4117_v20 = vld [vmem:[%s5977_s12 + $0x50] sm:$0xff] }
 0xf29   :  { %v3409_v26 = vadd.f32 1e-05, %v3405_v17 }
 0xf2b   :  { %4409 = vrsqrt.f32 %v3409_v26  ;;  %vm3419_vm7 = vweird.f32 %v3409_v26 }
 0xf2e   :  { %v3398_v13 = vpop.xlane.xlu2 %3397 }
 0xf2f   :  { %v3406_v35 = vmul.f32 %v3398_v13, %v4875_v7 }
 0xf31   :  { %v4410_v15 = vpop.eup %4409  ;;  %v3410_v40 = vadd.f32 1e-05, %v3406_v35 }
 0xf32   :  { %v3414_v24 = vmul.f32 %v4410_v15, %v3409_v26  ;;  %vm3420_vm6 = vweird.f32 %v4410_v15 }
 0xf33   :  { %4411 = vrsqrt.f32 %v3410_v40  ;;  %vm3421_vm9 = vmor %vm3419_vm7, %vm3420_vm6  ;;  %vm3429_vm11 = vweird.f32 %v3410_v40 }
 0xf34   :  { %v3415_v16 = vmul.f32 %v4410_v15, %v3414_v24 }
 0xf36   :  { %v3416_v47 = vmul.f32 0.5, %v3415_v16 }
 0xf38   :  { %v3417_v49 = vsub.f32 1.5, %v3416_v47 }
 0xf39   :  { %v4412_v18 = vpop.eup %4411 }
 0xf3a   :  { %v3418_v43 = vmul.f32 %v4410_v15, %v3417_v49  ;;  %v3424_v55 = vmul.f32 %v4412_v18, %v3410_v40  ;;  %vm3430_vm10 = vweird.f32 %v4412_v18 }
 0xf3b   :  { %vm3431_vm12 = vmor %vm3429_vm11, %vm3430_vm10 }
 0xf3c   :  { %v3422_v34 = vsel %vm3421_vm9, %v4410_v15, %v3418_v43  ;;  %v3425_v45 = vmul.f32 %v4412_v18, %v3424_v55 }
 0xf3d   :  { %v3453_v46 = vmul.f32 %v3422_v34, %v3385_v54 }
 0xf3e   :  { %v3426_v36 = vmul.f32 0.5, %v3425_v45 }
 0xf3f   :  { %v3460_v27 = vmul.f32 %v4239_v14, %v3453_v46 }
 0xf40   :  { %v3427_v22 = vsub.f32 1.5, %v3426_v36 }
 0xf41   :  { %v5815_v44 = vadd.f32 %v4240_v39, %v3460_v27 }
 0xf42   :  { %v3428_v33 = vmul.f32 %v4412_v18, %v3427_v22 }
 0xf43   :  { %4111 = vmatmul.msk.f32.vlgmr.msra.gmra.mxu1 %vm807_vm8, %v5815_v44 }
 0xf44   :  { %v3432_v63 = vsel %vm3431_vm12, %v4412_v18, %v3428_v33 }
 0xf45   :  { %v3454_v52 = vmul.f32 %v3432_v63, %v3386_v5 }
 0xf47   :  { %v3461_v31 = vmul.f32 %v4239_v14, %v3454_v52 }
 0xf49   :  { %v5819_v58 = vadd.f32 %v4240_v39, %v3461_v31 }
 0xf4b   :  { %4112 = vmatmul.msk.f32.gmra.mxu1 %vm807_vm8, %v5819_v58 }
 0xf6b   :  { %v3401_v38 = vpop.xlane.xlu1 %3400 }
 0xf6c   :  { %v3407_v41 = vmul.f32 %v3401_v38, %v4875_v7 }
 0xf6e   :  { %v3411_v21 = vadd.f32 1e-05, %v3407_v41 }
 0xf70   :  { %4413 = vrsqrt.f32 %v3411_v21  ;;  %vm3439_vm14 = vweird.f32 %v3411_v21 }
 0xf73   :  { %v3404_v28 = vpop.xlane.xlu2 %3403 }
 0xf74   :  { %v3408_v6 = vmul.f32 %v3404_v28, %v4875_v7 }
 0xf76   :  { %v4414_v0 = vpop.eup %4413  ;;  %v3412_v57 = vadd.f32 1e-05, %v3408_v6 }
 0xf77   :  { %v3434_v8 = vmul.f32 %v4414_v0, %v3411_v21  ;;  %vm3440_vm13 = vweird.f32 %v4414_v0 }
 0xf78   :  { %4415 = vrsqrt.f32 %v3412_v57  ;;  %vm3441_vm15 = vmor %vm3439_vm14, %vm3440_vm13  ;;  %vm3449_vm1 = vweird.f32 %v3412_v57 }
 0xf79   :  { %v3435_v53 = vmul.f32 %v4414_v0, %v3434_v8 }
 0xf7b   :  { %v3436_v29 = vmul.f32 0.5, %v3435_v53 }
 0xf7d   :  { %v3437_v9 = vsub.f32 1.5, %v3436_v29 }
 0xf7e   :  { %v4416_v11 = vpop.eup %4415 }
 0xf7f   :  { %v3438_v3 = vmul.f32 %v4414_v0, %v3437_v9  ;;  %v3444_v54 = vmul.f32 %v4416_v11, %v3412_v57  ;;  %vm3450_vm0 = vweird.f32 %v4416_v11 }
 0xf80   :  { %vm3451_vm2 = vmor %vm3449_vm1, %vm3450_vm0  ;;  %vm3770_vm0 = vcmask 7168  }
 0xf81   :  { %v3442_v37 = vsel %vm3441_vm15, %v4414_v0, %v3438_v3  ;;  %v3445_v48 = vmul.f32 %v4416_v11, %v3444_v54 }
 0xf82   :  { %v3455_v4 = vmul.f32 %v3442_v37, %v5784_v62  ;;  %v4122_v62 = vld [vmem:[%s5977_s12 + $0x78] sm:$0xff] }
 0xf83   :  { %v3446_v51 = vmul.f32 0.5, %v3445_v48  ;;  %3592 = vmatpush.msrb.mxu2 %v4122_v62 }
 0xf84   :  { %v3462_v5 = vmul.f32 %v4239_v14, %v3455_v4 }
 0xf85   :  { %v3447_v61 = vsub.f32 1.5, %v3446_v51  ;;  %3593 = vmatpush.msrb.mxu2 %v4121_v60 }
 0xf86   :  { %v5826_v42 = vadd.f32 %v4240_v39, %v3462_v5  ;;  %v4242_v5 = vld [vmem:[%s5978_s13 + $0x1] ss:$0 sm:$0xff] }
 0xf87   :  { %v3448_v30 = vmul.f32 %v4416_v11, %v3447_v61  ;;  %3594 = vmatpush.msrb.mxu2 %v4120_v50 }
 0xf88   :  { %4113 = vmatmul.msk.f32.gmra.mxu1 %vm807_vm8, %v5826_v42 }
 0xf89   :  { %v3452_v19 = vsel %vm3451_vm2, %v4416_v11, %v3448_v30 }
 0xf8a   :  { %v3456_v56 = vmul.f32 %v3452_v19, %v5790_v32  ;;  %v4119_v32 = vld [vmem:[%s5977_s12 + $0x60] sm:$0xff]  ;;  %s3923_s12 = sshll.u32 %s5985_s20, 4  ;;  %s3924_s12 = int_to_ptr.hbm [resolvable:$true] %s3923_s12 }
 0xf8b   :  { %3595 = vmatpush.msrb.mxu2 %v4119_v32 }
 0xf8c   :  { %v3463_v25 = vmul.f32 %v4239_v14, %v3456_v56 }
 0xf8d   :  { %3596 = vmatpush.msrb.mxu2 %v4118_v23 }
 0xf8e   :  { %v5831_v1 = vadd.f32 %v4240_v39, %v3463_v25 }
 0xf8f   :  { %3597 = vmatpush.msrb.mxu2 %v4117_v20 }
 0xf90   :  { %4114 = vmatmul.msk.f32.gmra.mxu1 %vm807_vm8, %v5831_v1 }
 0xf91   :  { %3598 = vmatpush.msrb.mxu2 %v4116_v10 }
 0xf93   :  { %3599 = vmatpush.msrb.mxu2 %v4115_v12 }
 0xfc0   :  { %v3510_v59 = vpop.f32.mrf.mxu1 }
 0xfc1   :  { %v3511_v17 = vadd.f32 %v4241_v2, %v3510_v59 }
 0xfc3   :  { %v3522_v26 = vmul.f32 %v3511_v17, %v3511_v17 }
 0xfc5   :  { %v3526_v13 = vmul.f32 %v3522_v26, %v3511_v17 }
 0xfc7   :  { %v3530_v35 = vmul.f32 0.044715, %v3526_v13 }
 0xfc8   :  { %v3513_v15 = vpop.f32.mrf.mxu1 }
 0xfc9   :  { %v3534_v40 = vadd.f32 %v3530_v35, %v3511_v17  ;;  %v3514_v24 = vadd.f32 %v4241_v2, %v3513_v15 }
 0xfcb   :  { %v3538_v16 = vmul.f32 0.7978846, %v3534_v40  ;;  %v3523_v47 = vmul.f32 %v3514_v24, %v3514_v24 }
 0xfcd   :  { %4417 = vtanh.f32 %v3538_v16  ;;  %v3527_v49 = vmul.f32 %v3523_v47, %v3514_v24 }
 0xfcf   :  { %v3531_v18 = vmul.f32 0.044715, %v3527_v49 }
 0xfd1   :  { %v3535_v43 = vadd.f32 %v3531_v18, %v3514_v24 }
 0xfd3   :  { %v4418_v55 = vpop.eup %4417  ;;  %v3539_v14 = vmul.f32 0.7978846, %v3535_v43 }
 0xfd4   :  { %v3546_v34 = vadd.f32 1.0, %v4418_v55 }
 0xfd5   :  { %4419 = vtanh.f32 %v3539_v14 }
 0xfd6   :  { %v3550_v45 = vmul.f32 0.5, %v3546_v34 }
 0xfd8   :  { %v3554_v39 = vmul.f32 %v3550_v45, %v3511_v17 }
 0xfda   :  { %4124 = vmatmul.msk.f32.vlgmr.msrb.gmra.mxu2 %vm2165_vm5, %v3554_v39 }
 0xfdb   :  { %v4420_v46 = vpop.eup %4419 }
 0xfdc   :  { %v3547_v36 = vadd.f32 1.0, %v4420_v46  ;;  %v3724_v46 = vld [vmem:[%s5981_s16 + $0x18] sm:$0xff] }
 0xfdd   :  { %3753 = vmatpush.msrb.mxu3 %v3724_v46 }
 0xfde   :  { %v3551_v27 = vmul.f32 0.5, %v3547_v36  ;;  %v3723_v36 = vld [vmem:[%s5981_s16 + $0x10] sm:$0xff] }
 0xfdf   :  { %3754 = vmatpush.msrb.mxu3 %v3723_v36 }
 0xfe0   :  { %v3555_v22 = vmul.f32 %v3551_v27, %v3514_v24 }
 0xfe2   :  { %4125 = vmatmul.msk.f32.gmra.mxu2 %vm2165_vm5, %v3555_v22 }
0x1005   :  { %v3516_v33 = vpop.f32.mrf.mxu1 }
0x1006   :  { %v3517_v63 = vadd.f32 %v4241_v2, %v3516_v33  ;;  %v3722_v33 = vld [vmem:[%s5981_s16 + $0x8] sm:$0xff] }
0x1007   :  { %3755 = vmatpush.msrb.mxu3 %v3722_v33 }
0x1008   :  { %v3524_v52 = vmul.f32 %v3517_v63, %v3517_v63 }
0x100a   :  { %v3528_v31 = vmul.f32 %v3524_v52, %v3517_v63  ;;  %v3721_v52 = vld [vmem:[%s5981_s16] sm:$0xff] }
0x100b   :  { %3756 = vmatpush.msrb.mxu3 %v3721_v52 }
0x100c   :  { %v3532_v38 = vmul.f32 0.044715, %v3528_v31 }
0x100d   :  { %v3519_v41 = vpop.f32.mrf.mxu1 }
0x100e   :  { %v3536_v21 = vadd.f32 %v3532_v38, %v3517_v63  ;;  %v3520_v28 = vadd.f32 %v4241_v2, %v3519_v41 }
0x1010   :  { %v3540_v6 = vmul.f32 0.7978846, %v3536_v21  ;;  %v3525_v0 = vmul.f32 %v3520_v28, %v3520_v28 }
0x1012   :  { %4421 = vtanh.f32 %v3540_v6  ;;  %v3529_v57 = vmul.f32 %v3525_v0, %v3520_v28 }
0x1014   :  { %v3533_v8 = vmul.f32 0.044715, %v3529_v57 }
0x1016   :  { %v3537_v53 = vadd.f32 %v3533_v8, %v3520_v28 }
0x1018   :  { %v4422_v29 = vpop.eup %4421  ;;  %v3541_v9 = vmul.f32 0.7978846, %v3537_v53 }
0x1019   :  { %v3548_v11 = vadd.f32 1.0, %v4422_v29 }
0x101a   :  { %4423 = vtanh.f32 %v3541_v9  ;;  %v4243_v9 = vld [vmem:[%s5979_s14] ss:$0 sm:$0xff] }
0x101b   :  { %v3552_v3 = vmul.f32 0.5, %v3548_v11 }
0x101d   :  { %v3556_v54 = vmul.f32 %v3552_v3, %v3517_v63 }
0x101f   :  { %4126 = vmatmul.msk.f32.gmra.mxu2 %vm2165_vm5, %v3556_v54  ;;  %v4244_v54 = vld [vmem:[%s5980_s15] ss:$0 sm:$0xff] }
0x1020   :  { %v4424_v37 = vpop.eup %4423 }
0x1021   :  { %v3549_v48 = vadd.f32 1.0, %v4424_v37 }
0x1023   :  { %v3553_v4 = vmul.f32 0.5, %v3549_v48 }
0x1025   :  { %v3557_v51 = vmul.f32 %v3553_v4, %v3520_v28 }
0x1027   :  { %4127 = vmatmul.msk.f32.gmra.mxu2 %vm2165_vm5, %v3557_v51 }
0x105d   :  { %v3601_v61 = vpop.f32.mrf.mxu2 }
0x105e   :  { %v3602_v30 = vadd.f32 %v4242_v5, %v3601_v61 }
0x1060   :  { %v3613_v19 = vadd.f32 %v3602_v30, %v5815_v44 }
0x1062   :  { %v3619_v56 = vsel %vm807_vm8, %v3613_v19, 0.0 }
0x1063   :  { %3620 = vadd.xlane.f32.xlu0 %v3619_v56 }
0x1065   :  { %v3604_v25 = vpop.f32.mrf.mxu2 }
0x1066   :  { %v3605_v62 = vadd.f32 %v4242_v5, %v3604_v25 }
0x1068   :  { %v3614_v60 = vadd.f32 %v3605_v62, %v5819_v58 }
0x106a   :  { %v3622_v50 = vsel %vm807_vm8, %v3614_v60, 0.0 }
0x106b   :  { %3623 = vadd.xlane.f32.xlu1 %v3622_v50 }
0x10a2   :  { %v3607_v32 = vpop.f32.mrf.mxu2 }
0x10a3   :  { %v3608_v2 = vadd.f32 %v4242_v5, %v3607_v32 }
0x10a5   :  { %v3615_v23 = vadd.f32 %v3608_v2, %v5826_v42 }
0x10a7   :  { %v3625_v59 = vsel %vm807_vm8, %v3615_v23, 0.0 }
0x10a8   :  { %3626 = vadd.xlane.f32.xlu2 %v3625_v59 }
0x10aa   :  { %v3610_v20 = vpop.f32.mrf.mxu2 }
0x10ab   :  { %v3611_v17 = vadd.f32 %v4242_v5, %v3610_v20 }
0x10ad   :  { %v3616_v44 = vadd.f32 %v3611_v17, %v5831_v1 }
0x10af   :  { %v3628_v10 = vsel %vm807_vm8, %v3616_v44, 0.0 }
0x10b0   :  { %3629 = vadd.xlane.f32.xlu0 %v3628_v10 }
0x10d6   :  { %v3621_v26 = vpop.xlane.xlu0 %3620 }
0x10d7   :  { %v3631_v58 = vmul.f32 %v3621_v26, %v4875_v7 }
0x10d9   :  { %v3635_v12 = vsub.f32 %v3613_v19, %v3631_v58 }
0x10db   :  { %v3639_v13 = vmul.f32 %v3635_v12, %v3635_v12 }
0x10dd   :  { %v3643_v35 = vsel %vm807_vm8, %v3639_v13, 0.0 }
0x10de   :  { %3644 = vadd.xlane.f32.xlu1 %v3643_v35  ;;  %v3624_v15 = vpop.xlane.xlu1 %3623 }
0x10df   :  { %v3632_v42 = vmul.f32 %v3624_v15, %v4875_v7 }
0x10e1   :  { %v3636_v40 = vsub.f32 %v3614_v60, %v3632_v42 }
0x10e3   :  { %v3640_v24 = vmul.f32 %v3636_v40, %v3636_v40 }
0x10e5   :  { %v3646_v16 = vsel %vm807_vm8, %v3640_v24, 0.0 }
0x10e6   :  { %3647 = vadd.xlane.f32.xlu2 %v3646_v16 }
0x111b   :  { %v3627_v1 = vpop.xlane.xlu2 %3626 }
0x111c   :  { %v3633_v47 = vmul.f32 %v3627_v1, %v4875_v7 }
0x111e   :  { %v5882_v49 = vsub.f32 %v3615_v23, %v3633_v47 }
0x1120   :  { %v3641_v18 = vmul.f32 %v5882_v49, %v5882_v49 }
0x1122   :  { %v3649_v43 = vsel %vm807_vm8, %v3641_v18, 0.0 }
0x1123   :  { %v3630_v55 = vpop.xlane.xlu0 %3629  ;;  %3650 = vadd.xlane.f32.xlu0 %v3649_v43 }
0x1124   :  { %v3634_v14 = vmul.f32 %v3630_v55, %v4875_v7  ;;  %v4245_v55 = vld [vmem:[#allocation4] ss:$0 sm:$0xff] }
0x1126   :  { %v5888_v34 = vsub.f32 %v3616_v44, %v3634_v14 }
0x1128   :  { %v3642_v45 = vmul.f32 %v5888_v34, %v5888_v34 }
0x112a   :  { %v3652_v39 = vsel %vm807_vm8, %v3642_v45, 0.0 }
0x112b   :  { %3653 = vadd.xlane.f32.xlu1 %v3652_v39 }
0x1151   :  { %v3645_v27 = vpop.xlane.xlu1 %3644 }
0x1152   :  { %v3655_v22 = vmul.f32 %v3645_v27, %v4875_v7 }
0x1154   :  { %v3659_v63 = vadd.f32 1e-05, %v3655_v22 }
0x1156   :  { %4425 = vrsqrt.f32 %v3659_v63  ;;  %vm3669_vm3 = vweird.f32 %v3659_v63 }
0x1159   :  { %v3648_v31 = vpop.xlane.xlu2 %3647 }
0x115a   :  { %v3656_v38 = vmul.f32 %v3648_v31, %v4875_v7 }
0x115c   :  { %v4426_v41 = vpop.eup %4425  ;;  %v3660_v21 = vadd.f32 1e-05, %v3656_v38 }
0x115d   :  { %v3664_v28 = vmul.f32 %v4426_v41, %v3659_v63  ;;  %vm3670_vm5 = vweird.f32 %v4426_v41 }
0x115e   :  { %4427 = vrsqrt.f32 %v3660_v21  ;;  %vm3671_vm4 = vmor %vm3669_vm3, %vm3670_vm5  ;;  %vm3679_vm7 = vweird.f32 %v3660_v21  ;;  %vm3914_vm3 = vcmask 74752  }
0x115f   :  { %v3665_v6 = vmul.f32 %v4426_v41, %v3664_v28 }
0x1161   :  { %v3666_v0 = vmul.f32 0.5, %v3665_v6 }
0x1163   :  { %v3667_v57 = vsub.f32 1.5, %v3666_v0 }
0x1164   :  { %v4428_v8 = vpop.eup %4427 }
0x1165   :  { %v3668_v53 = vmul.f32 %v4426_v41, %v3667_v57  ;;  %v3674_v29 = vmul.f32 %v4428_v8, %v3660_v21  ;;  %vm3680_vm6 = vweird.f32 %v4428_v8 }
0x1166   :  { %vm3681_vm9 = vmor %vm3679_vm7, %vm3680_vm6 }
0x1167   :  { %v3672_v11 = vsel %vm3671_vm4, %v4426_v41, %v3668_v53  ;;  %v3675_v3 = vmul.f32 %v4428_v8, %v3674_v29 }
0x1168   :  { %v3703_v37 = vmul.f32 %v3672_v11, %v3635_v12 }
0x1169   :  { %v3676_v48 = vmul.f32 0.5, %v3675_v3 }
0x116a   :  { %v3710_v4 = vmul.f32 %v4243_v9, %v3703_v37 }
0x116b   :  { %v3677_v51 = vsub.f32 1.5, %v3676_v48 }
0x116c   :  { %v5913_v5 = vadd.f32 %v4244_v54, %v3710_v4 }
0x116d   :  { %v3678_v61 = vmul.f32 %v4428_v8, %v3677_v51 }
0x116e   :  { %4128 = vmatmul.msk.f32.vlgmr.msrb.gmra.mxu3 %vm807_vm8, %v5913_v5 }
0x116f   :  { %v3682_v30 = vsel %vm3681_vm9, %v4428_v8, %v3678_v61 }
0x1170   :  { %v3704_v19 = vmul.f32 %v3682_v30, %v3636_v40 }
0x1172   :  { %v3711_v56 = vmul.f32 %v4243_v9, %v3704_v19 }
0x1174   :  { %v5917_v25 = vadd.f32 %v4244_v54, %v3711_v56 }
0x1176   :  { %4129 = vmatmul.msk.f32.gmra.mxu3 %vm807_vm8, %v5917_v25 }
0x1196   :  { %v3651_v62 = vpop.xlane.xlu0 %3650 }
0x1197   :  { %v3657_v60 = vmul.f32 %v3651_v62, %v4875_v7 }
0x1199   :  { %v3661_v50 = vadd.f32 1e-05, %v3657_v60 }
0x119b   :  { %4429 = vrsqrt.f32 %v3661_v50  ;;  %vm3689_vm11 = vweird.f32 %v3661_v50 }
0x119e   :  { %v3654_v32 = vpop.xlane.xlu1 %3653 }
0x119f   :  { %v3658_v2 = vmul.f32 %v3654_v32, %v4875_v7 }
0x11a1   :  { %v4430_v23 = vpop.eup %4429  ;;  %v3662_v59 = vadd.f32 1e-05, %v3658_v2 }
0x11a2   :  { %v3684_v20 = vmul.f32 %v4430_v23, %v3661_v50  ;;  %vm3690_vm10 = vweird.f32 %v4430_v23 }
0x11a3   :  { %4431 = vrsqrt.f32 %v3662_v59  ;;  %vm3691_vm12 = vmor %vm3689_vm11, %vm3690_vm10  ;;  %vm3699_vm14 = vweird.f32 %v3662_v59 }
0x11a4   :  { %v3685_v17 = vmul.f32 %v4430_v23, %v3684_v20 }
0x11a6   :  { %v3686_v44 = vmul.f32 0.5, %v3685_v17 }
0x11a8   :  { %v3687_v10 = vsub.f32 1.5, %v3686_v44 }
0x11a9   :  { %v4432_v26 = vpop.eup %4431 }
0x11aa   :  { %v3688_v58 = vmul.f32 %v4430_v23, %v3687_v10  ;;  %v3694_v12 = vmul.f32 %v4432_v26, %v3662_v59  ;;  %vm3700_vm13 = vweird.f32 %v4432_v26 }
0x11ab   :  { %vm3701_vm15 = vmor %vm3699_vm14, %vm3700_vm13 }
0x11ac   :  { %v3692_v13 = vsel %vm3691_vm12, %v4430_v23, %v3688_v58  ;;  %v3695_v35 = vmul.f32 %v4432_v26, %v3694_v12 }
0x11ad   :  { %v3705_v15 = vmul.f32 %v3692_v13, %v5882_v49 }
0x11ae   :  { %v3696_v42 = vmul.f32 0.5, %v3695_v35 }
0x11af   :  { %v3712_v40 = vmul.f32 %v4243_v9, %v3705_v15 }
0x11b0   :  { %v3697_v7 = vsub.f32 1.5, %v3696_v42 }
0x11b1   :  { %v5924_v24 = vadd.f32 %v4244_v54, %v3712_v40 }
0x11b2   :  { %v3698_v16 = vmul.f32 %v4432_v26, %v3697_v7 }
0x11b3   :  { %4130 = vmatmul.msk.f32.gmra.mxu3 %vm807_vm8, %v5924_v24 }
0x11b4   :  { %v3702_v1 = vsel %vm3701_vm15, %v4432_v26, %v3698_v16 }
0x11b5   :  { %v3706_v47 = vmul.f32 %v3702_v1, %v5888_v34  ;;  %v4477_v34 = vmov 0  }
0x11b6   :  { %4228 = vset.pattern.permute.xlu1 %v4477_v34  ;;  %4227 = vset.pattern.permute.xlu0 %v4477_v34 }
0x11b7   :  { %v3713_v18 = vmul.f32 %v4243_v9, %v3706_v47  ;;  %4226 = vset.pattern.permute.xlu2 %v4477_v34 }
0x11b9   :  { %v5929_v43 = vadd.f32 %v4244_v54, %v3713_v18 }
0x11bb   :  { %4131 = vmatmul.msk.f32.gmra.mxu3 %vm807_vm8, %v5929_v43 }
0x11f1   :  { %v3758_v49 = vpop.f32.mrf.mxu3 }
0x11f2   :  { %v3759_v14 = vadd.f32 %v4245_v55, %v3758_v49 }
0x11f4   :  { %v3771_v46 = vsel %vm3770_vm0, %v3759_v14, -inf }
0x11f9   :  { %v3761_v45 = vpop.f32.mrf.mxu3 }
0x11fa   :  { %v3762_v39 = vadd.f32 %v4245_v55, %v3761_v45 }
0x11fc   :  { %v3772_v36 = vsel %vm3770_vm0, %v3762_v39, -inf }
0x11fd   :  { %v3773_v27 = vmax.f32 %v3771_v46, %v3772_v36  ;;  %v3849_v36 = vlaneseq }
0x11ff   :  { %v3774_v22 = vrot.slane %v3773_v27, 4 }
0x1201   :  { %v3775_v33 = vmax.f32 %v3773_v27, %v3774_v22  ;;  %v3850_v27 = vshrl.u32 %v3849_v36, 7 }
0x1203   :  { %v3776_v63 = vrot.slane %v3775_v33, 2  ;;  %v3853_v22 = vmul.u32 16, %v3850_v27 }
0x1205   :  { %v3777_v52 = vmax.f32 %v3775_v33, %v3776_v63  ;;  %v3852_v33 = vand.u32 127, %v3849_v36  ;;  %v3855_v34 = vadd.s32 16, %v3853_v22 }
0x1207   :  { %v3778_v31 = vrot.slane %v3777_v52, 1  ;;  %vm3854_vm1 = vcmp.ge.s32.totalorder %v3852_v33, %v3853_v22  ;;  %vm3856_vm2 = vcmp.lt.s32.totalorder %v3852_v33, %v3855_v34 }
0x1208   :  { %vm3857_vm5 = vmand %vm3854_vm1, %vm3856_vm2 }
0x1209   :  { %v3779_v38 = vmax.f32 %v3777_v52, %v3778_v31 }
0x120b   :  { %v3789_v41 = vsub.f32 %v3759_v14, %v3779_v38  ;;  %v3790_v21 = vsub.f32 %v3762_v39, %v3779_v38 }
0x120d   :  { %v3793_v28 = vmul.f32 1.442695, %v3789_v41  ;;  %v3795_v6 = vmul.f32 1.442695, %v3790_v21 }
0x120f   :  { %4433 = vpow2.f32 %v3793_v28 }
0x1210   :  { %4435 = vpow2.f32 %v3795_v6  ;;  %v3886_v6 = vld [vmem:[%s5983_s18 + $0x18] sm:$0xff] }
0x1215   :  { %v4434_v0 = vpop.eup %4433 }
0x1216   :  { %v4436_v57 = vpop.eup %4435  ;;  %v3801_v8 = vsel %vm3770_vm0, %v4434_v0, 0.0 }
0x1217   :  { %v3802_v53 = vsel %vm3770_vm0, %v4436_v57, 0.0 }
0x1218   :  { %v3803_v29 = vadd.f32 %v3802_v53, %v3801_v8 }
0x121a   :  { %v3804_v9 = vrot.slane %v3803_v29, 4 }
0x121c   :  { %v3805_v11 = vadd.f32 %v3804_v9, %v3803_v29 }
0x121e   :  { %v3806_v3 = vrot.slane %v3805_v11, 2 }
0x1220   :  { %v3807_v54 = vadd.f32 %v3806_v3, %v3805_v11 }
0x1222   :  { %v3808_v37 = vrot.slane %v3807_v54, 1 }
0x1224   :  { %v3809_v48 = vadd.f32 %v3808_v37, %v3807_v54 }
0x1226   :  { %4437 = vrcp.f32 %v3809_v48 }
0x122c   :  { %v4438_v4 = vpop.eup %4437 }
0x122d   :  { %v3822_v51 = vmul.f32 %v4438_v4, %v4436_v57  ;;  %v3821_v61 = vmul.f32 %v4438_v4, %v4434_v0  ;;  %v4246_v57 = vld [vmem:[%s5984_s19] ss:$0 sm:$0xff] }
0x122f   :  { %3832 = vperm.xlu1 %4228, %v3822_v51  }
0x1236   :  { %v3764_v30 = vpop.f32.mrf.mxu3 }
0x1237   :  { %v3765_v19 = vadd.f32 %v4245_v55, %v3764_v30 }
0x1239   :  { %v3780_v60 = vsel %vm3770_vm0, %v3765_v19, -inf }
0x123e   :  { %v3767_v56 = vpop.f32.mrf.mxu3 }
0x123f   :  { %v3768_v62 = vadd.f32 %v4245_v55, %v3767_v56 }
0x1241   :  { %v3781_v50 = vsel %vm3770_vm0, %v3768_v62, -inf }
0x1242   :  { %v3782_v32 = vmax.f32 %v3780_v60, %v3781_v50 }
0x1244   :  { %v3783_v2 = vrot.slane %v3782_v32, 4 }
0x1246   :  { %v3784_v23 = vmax.f32 %v3782_v32, %v3783_v2 }
0x1248   :  { %v3785_v59 = vrot.slane %v3784_v23, 2 }
0x124a   :  { %v3786_v20 = vmax.f32 %v3784_v23, %v3785_v59 }
0x124c   :  { %v3787_v17 = vrot.slane %v3786_v20, 1 }
0x124e   :  { %v3788_v44 = vmax.f32 %v3786_v20, %v3787_v17 }
0x1250   :  { %v3791_v10 = vsub.f32 %v3765_v19, %v3788_v44  ;;  %v3792_v26 = vsub.f32 %v3768_v62, %v3788_v44 }
0x1252   :  { %v3797_v58 = vmul.f32 1.442695, %v3791_v10  ;;  %v3799_v12 = vmul.f32 1.442695, %v3792_v26 }
0x1254   :  { %4439 = vpow2.f32 %v3797_v58 }
0x1255   :  { %4441 = vpow2.f32 %v3799_v12 }
0x125a   :  { %v4440_v13 = vpop.eup %4439 }
0x125b   :  { %v4442_v35 = vpop.eup %4441  ;;  %v3810_v15 = vsel %vm3770_vm0, %v4440_v13, 0.0 }
0x125c   :  { %v3811_v42 = vsel %vm3770_vm0, %v4442_v35, 0.0 }
0x125d   :  { %v3812_v40 = vadd.f32 %v3811_v42, %v3810_v15 }
0x125f   :  { %v3813_v7 = vrot.slane %v3812_v40, 4 }
0x1261   :  { %v3814_v16 = vadd.f32 %v3813_v7, %v3812_v40 }
0x1263   :  { %v3815_v1 = vrot.slane %v3814_v16, 2 }
0x1265   :  { %v3816_v47 = vadd.f32 %v3815_v1, %v3814_v16 }
0x1267   :  { %v3817_v18 = vrot.slane %v3816_v47, 1 }
0x1269   :  { %v3818_v49 = vadd.f32 %v3817_v18, %v3816_v47 }
0x126b   :  { %4443 = vrcp.f32 %v3818_v49 }
0x1271   :  { %v4444_v55 = vpop.eup %4443 }
0x1272   :  { %v3824_v14 = vmul.f32 %v4444_v55, %v4442_v35  ;;  %v3823_v45 = vmul.f32 %v4444_v55, %v4440_v13 }
0x1274   :  { %3842 = vperm.xlu2 %4226, %v3824_v14   ;;  %3837 = vperm.xlu0 %4227, %v3823_v45  }
0x127c   :  { %3827 = vperm.xlu2 %4226, %v3821_v61  }
0x12a1   :  { %v3833_v63 = vpop.permute.xlu1 %3832 }
0x12a2   :  { %v3846_v41 = vmul.f32 %v3833_v63, %v5917_v25  ;;  %v3884_v25 = vld [vmem:[%s5983_s18 + $0x8] sm:$0xff] }
0x12ce   :  { %v3843_v39 = vpop.permute.xlu2 %3842 }
0x12cf   :  { %v3848_v46 = vmul.f32 %v3843_v39, %v5929_v43  ;;  %v4478_v43 = vmov 0.0  }
0x12d0   :  { %v4132_v28 = vsel %vm3857_vm5, 1.0, %v4478_v43 }
0x12d1   :  { %3875 = vmatpush.msra.mxu0 %v3848_v46 }
0x12d6   :  { %v3828_v38 = vpop.permute.xlu2 %3827 }
0x12d7   :  { %v3845_v21 = vmul.f32 %v3828_v38, %v5913_v5  ;;  %v3883_v5 = vld [vmem:[%s5983_s18] sm:$0xff] }
0x12e6   :  { %v3838_v52 = vpop.permute.xlu0 %3837 }
0x12e7   :  { %v3847_v31 = vmul.f32 %v3838_v52, %v5924_v24  ;;  %v3885_v24 = vld [vmem:[%s5983_s18 + $0x10] sm:$0xff] }
0x12e9   :  { %3876 = vmatpush.msra.mxu0 %v3847_v31 }
0x12eb   :  { %3877 = vmatpush.msra.mxu0 %v3846_v41 }
0x12ed   :  { %3878 = vmatpush.msra.mxu0 %v3845_v21 }
0x12ee   :  { %4133 = vmatmul.msk.f32.vlgmr.msra.gmra.mxu0 %vm807_vm8, %v4132_v28 }
0x12ef   :  { %3906 = vmatpush.msrb.mxu0 %v3886_v6 }
0x12f1   :  { %3907 = vmatpush.msrb.mxu0 %v3885_v24 }
0x12f3   :  { %3908 = vmatpush.msrb.mxu0 %v3884_v25 }
0x12f5   :  { %3909 = vmatpush.msrb.mxu0 %v3883_v5 }
0x136b   :  { %v3880_v0 = vpop.f32.mrf.mxu0 }
0x136c   :  { %4134 = vmatmul.msk.f32.vlgmr.msrb.gmra.mxu0 %vm807_vm8, %v3880_v0 }
0x13e9   :  { %v3911_v8 = vpop.f32.mrf.mxu0 }
0x13ea   :  { %v3912_v53 = vadd.f32 %v4246_v57, %v3911_v8 }
0x13ec   :  { %3915 = vst.msk [vmem:[#allocation5] sm:$0x3] %vm3914_vm3, %v3912_v53 }
0x13ed   :  { %3926 = dma.vmem_to_hbm [thread:$0]  %s3922_s4, 32, %s3924_s12, [#allocation6]  }
0x13ee   :  { %4469 = dma.done.wait [#allocation6], 32  }
0x13ef   :  { %4470 = vsyncadd [#allocation6], 4294967264 }
0x13f0   :  { %3931 = vsyncpa [#allocation6], 1 }

</bundles_post_ra>
